<compile_context>
chip_gen: v6e
topology: v6e:2x2x1
jax: 0.10.0
libtpu: 0.0.40
codegen_flags: <defaults>
</compile_context>

<pallas_src>
import functools

import jax
import jax.numpy as jnp
from jax.experimental import pallas as pl
from jax.experimental.pallas import tpu as pltpu


def _gates_to_hc(gates, c, E):
    """PyTorch LSTMCell gate math; gates: (B, 4E), c: (B, E)."""
    i = jax.nn.sigmoid(gates[:, 0 * E:1 * E])
    f = jax.nn.sigmoid(gates[:, 1 * E:2 * E])
    g = jnp.tanh(gates[:, 2 * E:3 * E])
    o = jax.nn.sigmoid(gates[:, 3 * E:4 * E])
    c_new = f * c + i * g
    h_new = o * jnp.tanh(c_new)
    return h_new, c_new


def seq2seq_kernel(x_ref,
                   enc_e1_w_ref, enc_e1_b_ref, e1_whh_ref,
                   e2_w_ref, e2_b_ref,
                   d1_whh_ref, d1_w_comb_ref, d1_b_ref, d1_b0_ref,
                   dec_w_ref, dec_b_ref,
                   out_ref,
                   *, future_preds):
    B, T, F = x_ref.shape
    E = e1_whh_ref.shape[0]
    P = future_preds

    # ---------------- Encoder ----------------
    # Fused encoder Linear + lstm1 input projection for all T timesteps:
    # a single (B*T, F) x (F, 4E) matmul with the bias already folded in.
    gates_x = (jnp.dot(x_ref[...].reshape(B * T, F), enc_e1_w_ref[...],
                       preferred_element_type=jnp.float32)
               + enc_e1_b_ref[...]).reshape(B, T, 4 * E)

    e1_whh = e1_whh_ref[...]                                  # (E, 4E)
    e2_w = e2_w_ref[...]                                      # (2E, 4E) = [wih; whh]
    e2_b = jnp.broadcast_to(e2_b_ref[...], (B, 4 * E))        # hoisted broadcast

    h1 = jnp.zeros((B, E), jnp.float32)
    c1 = jnp.zeros((B, E), jnp.float32)
    h2 = jnp.zeros((B, E), jnp.float32)
    c2 = jnp.zeros((B, E), jnp.float32)

    # Small static trip count -> unroll so the scheduler sees the whole chain.
    for t in range(T):
        g1 = gates_x[:, t, :] + jnp.dot(h1, e1_whh,
                                        preferred_element_type=jnp.float32)
        h1, c1 = _gates_to_hc(g1, c1, E)
        # lstm2: single matmul on lane-concatenated [h1, h2].
        g2 = jnp.dot(jnp.concatenate([h1, h2], axis=-1), e2_w,
                     preferred_element_type=jnp.float32) + e2_b
        h2, c2 = _gates_to_hc(g2, c2, E)

    # ---------------- Decoder ----------------
    d1_whh = d1_whh_ref[...]                                  # (E, 4E)
    d1_w_comb = d1_w_comb_ref[...]                            # (E, 4E) = wih + whh
    d1_b = jnp.broadcast_to(d1_b_ref[...], (B, 4 * E))        # hoisted broadcasts
    d1_b0 = jnp.broadcast_to(d1_b0_ref[...], (B, 4 * E))
    dec_w = dec_w_ref[...]                                    # (E, F)
    dec_b = jnp.broadcast_to(dec_b_ref[...], (B, F))

    h_t, c_t = h2, c2                                         # decoder gets (h_t2, c_t2)
    for p in range(P):
        if p == 0:
            # start token folded into d1_b0 (zeros start -> no extra term).
            g = jnp.dot(h_t, d1_whh, preferred_element_type=jnp.float32) + d1_b0
        else:
            # input == previous hidden  =>  h @ (wih + whh): one matmul/step.
            g = jnp.dot(h_t, d1_w_comb, preferred_element_type=jnp.float32) + d1_b
        h_t, c_t = _gates_to_hc(g, c_t, E)
        # Project & store this step immediately: off the recurrence chain,
        # overlaps with the remaining decoder steps, no stack epilogue.
        out_ref[:, p, :] = (jnp.dot(h_t, dec_w,
                                    preferred_element_type=jnp.float32) + dec_b)


def seq2seq_forward(x, params, *, future_preds=10, zeros=True):
    B, T, F = x.shape
    E = params["e1_whh"].shape[0]

    # --- wrapper-side (one-time) algebraic weight fusion, all exact ---
    enc_e1_w = jnp.dot(params["enc_w"], params["e1_wih"])                    # (F, 4E)
    enc_e1_b = jnp.dot(params["enc_b"], params["e1_wih"]) + params["e1_b"]   # (1, 4E)
    e2_w_cat = jnp.concatenate([params["e2_wih"], params["e2_whh"]], axis=0)  # (2E, 4E)
    d1_w_comb = params["d1_wih"] + params["d1_whh"]                          # (E, 4E)
    if zeros:
        d1_b0 = params["d1_b"]
    else:
        # ones start token: ones @ d1_wih == column sums of d1_wih.
        d1_b0 = params["d1_b"] + jnp.sum(params["d1_wih"], axis=0, keepdims=True)

    kernel = functools.partial(seq2seq_kernel, future_preds=future_preds)
    vmem = pl.BlockSpec(memory_space=pltpu.MemorySpace.VMEM)
    args = (x,
            enc_e1_w, enc_e1_b, params["e1_whh"],
            e2_w_cat, params["e2_b"],
            params["d1_whh"], d1_w_comb, params["d1_b"], d1_b0,
            params["dec_w"], params["dec_b"])
    return pl.pallas_call(
        kernel,
        out_shape=jax.ShapeDtypeStruct((B, future_preds, F), jnp.float32),
        in_specs=[vmem] * len(args),
        out_specs=vmem,
    )(*args)


def init_params(key, encoding_dim):
    """Deterministic synthetic parameters; shapes match the PyTorch module."""
    E, F = encoding_dim, 34
    ks = jax.random.split(key, 14)

    def u(k, shape, scale=0.1):
        return jax.random.uniform(k, shape, jnp.float32, -scale, scale)

    return {
        # encoder.linear: nn.Linear(34, E) -> stored transposed as (34, E)
        "enc_w": u(ks[0], (F, E)),
        "enc_b": u(ks[1], (1, E)),
        # encoder.lstm1 / lstm2: nn.LSTMCell(E, E); w_ih/w_hh stored as (E, 4E)
        "e1_wih": u(ks[2], (E, 4 * E)),
        "e1_whh": u(ks[3], (E, 4 * E)),
        "e1_b":  u(ks[4], (1, 4 * E)),   # bias_ih + bias_hh folded (bias=True)
        "e2_wih": u(ks[5], (E, 4 * E)),
        "e2_whh": u(ks[6], (E, 4 * E)),
        "e2_b":  u(ks[7], (1, 4 * E)),
        # decoder.lstm1 (decoder.lstm2 exists in the module but is never used)
        "d1_wih": u(ks[8], (E, 4 * E)),
        "d1_whh": u(ks[9], (E, 4 * E)),
        "d1_b":  u(ks[10], (1, 4 * E)),
        # decoder.linear: nn.Linear(E, 34) -> stored transposed as (E, 34)
        "dec_w": u(ks[11], (E, F)),
        "dec_b": u(ks[12], (1, F)),
    }


def seq2seq_reference(x, params, *, future_preds=10, zeros=True):
    """Pure-JAX reference mirroring the un-fused PyTorch math."""
    hp = jax.lax.Precision.HIGHEST
    B, T, F = x.shape
    E = params["e1_whh"].shape[0]

    def cell(xv, h, c, wih, whh, b):
        gates = (jnp.dot(xv, wih, precision=hp)
                 + jnp.dot(h, whh, precision=hp) + b)
        i = jax.nn.sigmoid(gates[:, 0 * E:1 * E])
        f = jax.nn.sigmoid(gates[:, 1 * E:2 * E])
        g = jnp.tanh(gates[:, 2 * E:3 * E])
        o = jax.nn.sigmoid(gates[:, 3 * E:4 * E])
        c_new = f * c + i * g
        return o * jnp.tanh(c_new), c_new

    enc = (jnp.dot(x.reshape(B * T, F), params["enc_w"], precision=hp)
           + params["enc_b"]).reshape(B, T, E)
    h1 = jnp.zeros((B, E), jnp.float32); c1 = jnp.zeros((B, E), jnp.float32)
    h2 = jnp.zeros((B, E), jnp.float32); c2 = jnp.zeros((B, E), jnp.float32)
    for t in range(T):
        h1, c1 = cell(enc[:, t, :], h1, c1,
                      params["e1_wih"], params["e1_whh"], params["e1_b"])
        h2, c2 = cell(h1, h2, c2,
                      params["e2_wih"], params["e2_whh"], params["e2_b"])
    h_t, c_t = h2, c2
    out = jnp.zeros((B, E), jnp.float32) if zeros else jnp.ones((B, E), jnp.float32)
    preds = []
    for _ in range(future_preds):
        h_t, c_t = cell(out, h_t, c_t,
                        params["d1_wih"], params["d1_whh"], params["d1_b"])
        out = h_t
        preds.append(out)
    pred = jnp.stack(preds, axis=1)
    return (jnp.dot(pred.reshape(B * future_preds, E), params["dec_w"], precision=hp)
            + params["dec_b"]).reshape(B, future_preds, F)


if __name__ == "__main__":
    B, T, F, E = 2, 8, 34, 32
    key = jax.random.PRNGKey(0)
    kx, kp = jax.random.split(key)
    x = jax.random.normal(kx, (B, T, F), jnp.float32)
    params = init_params(kp, E)

    out = seq2seq_forward(x, params, future_preds=10, zeros=True)
    out = jax.block_until_ready(out)
    assert out.shape == (B, 10, F), out.shape
    assert bool(jnp.all(jnp.isfinite(out)))

    ref = seq2seq_reference(x, params, future_preds=10, zeros=True)
    assert jnp.allclose(out, ref, atol=2e-3, rtol=2e-3), \
        float(jnp.max(jnp.abs(out - ref)))

    print("KERNEL_OK")
</pallas_src>

<mosaic_0001>
module attributes {stable_mosaic.version = 11 : i64} {
  func.func @seq2seq_kernel(%arg0: memref<2x8x34xf32, #tpu.memory_space<vmem>>, %arg1: memref<34x128xf32, #tpu.memory_space<vmem>>, %arg2: memref<1x128xf32, #tpu.memory_space<vmem>>, %arg3: memref<32x128xf32, #tpu.memory_space<vmem>>, %arg4: memref<64x128xf32, #tpu.memory_space<vmem>>, %arg5: memref<1x128xf32, #tpu.memory_space<vmem>>, %arg6: memref<32x128xf32, #tpu.memory_space<vmem>>, %arg7: memref<32x128xf32, #tpu.memory_space<vmem>>, %arg8: memref<1x128xf32, #tpu.memory_space<vmem>>, %arg9: memref<1x128xf32, #tpu.memory_space<vmem>>, %arg10: memref<32x34xf32, #tpu.memory_space<vmem>>, %arg11: memref<1x34xf32, #tpu.memory_space<vmem>>, %arg12: memref<2x10x34xf32, #tpu.memory_space<vmem>>) attributes {dimension_semantics = [], scalar_prefetch = 0 : i64, scratch_operands = 0 : i64, tpu.core_type = #tpu.core_type<tc>} {
    %c0 = arith.constant 0 : index
    %c0_0 = arith.constant 0 : index
    %c0_1 = arith.constant 0 : index
    %0 = vector.load %arg0[%c0, %c0_0, %c0_1] : memref<2x8x34xf32, #tpu.memory_space<vmem>>, vector<2x8x34xf32>
    %1 = vector.shape_cast %0 : vector<2x8x34xf32> to vector<16x34xf32>
    %c0_2 = arith.constant 0 : index
    %c0_3 = arith.constant 0 : index
    %2 = vector.load %arg1[%c0_2, %c0_3] : memref<34x128xf32, #tpu.memory_space<vmem>>, vector<34x128xf32>
    %cst = arith.constant dense<0.000000e+00> : vector<16x128xf32>
    %3 = tpu.matmul %1, %2, %cst {dimension_numbers = #tpu.dot_dimension_numbers<[1], [0], [0], [1], [0, 0, 1, 1], [], []>} : vector<16x34xf32>, vector<34x128xf32>, vector<16x128xf32> -> vector<16x128xf32>
    %c0_4 = arith.constant 0 : index
    %c0_5 = arith.constant 0 : index
    %4 = vector.load %arg2[%c0_4, %c0_5] : memref<1x128xf32, #tpu.memory_space<vmem>>, vector<1x128xf32>
    %5 = vector.broadcast %4 : vector<1x128xf32> to vector<16x128xf32>
    %6 = arith.addf %3, %5 : vector<16x128xf32>
    %7 = vector.shape_cast %6 : vector<16x128xf32> to vector<2x8x128xf32>
    %c0_6 = arith.constant 0 : index
    %c0_7 = arith.constant 0 : index
    %8 = vector.load %arg3[%c0_6, %c0_7] : memref<32x128xf32, #tpu.memory_space<vmem>>, vector<32x128xf32>
    %c0_8 = arith.constant 0 : index
    %c0_9 = arith.constant 0 : index
    %9 = vector.load %arg4[%c0_8, %c0_9] : memref<64x128xf32, #tpu.memory_space<vmem>>, vector<64x128xf32>
    %c0_10 = arith.constant 0 : index
    %c0_11 = arith.constant 0 : index
    %10 = vector.load %arg5[%c0_10, %c0_11] : memref<1x128xf32, #tpu.memory_space<vmem>>, vector<1x128xf32>
    %11 = vector.shape_cast %10 : vector<1x128xf32> to vector<1x128xf32>
    %12 = vector.broadcast %11 : vector<1x128xf32> to vector<2x128xf32>
    %cst_12 = arith.constant 0.000000e+00 : f32
    %13 = vector.broadcast %cst_12 : f32 to vector<2x32xf32>
    %cst_13 = arith.constant 0.000000e+00 : f32
    %14 = vector.broadcast %cst_13 : f32 to vector<2x32xf32>
    %cst_14 = arith.constant 0.000000e+00 : f32
    %15 = vector.broadcast %cst_14 : f32 to vector<2x32xf32>
    %cst_15 = arith.constant 0.000000e+00 : f32
    %16 = vector.broadcast %cst_15 : f32 to vector<2x32xf32>
    %17 = vector.extract_strided_slice %7 {offsets = [0, 0, 0], sizes = [2, 1, 128], strides = [1, 1, 1]} : vector<2x8x128xf32> to vector<2x1x128xf32>
    %18 = vector.shape_cast %17 : vector<2x1x128xf32> to vector<2x128xf32>
    %cst_16 = arith.constant dense<0.000000e+00> : vector<2x128xf32>
    %19 = tpu.matmul %13, %8, %cst_16 {dimension_numbers = #tpu.dot_dimension_numbers<[1], [0], [0], [1], [0, 0, 1, 1], [], []>} : vector<2x32xf32>, vector<32x128xf32>, vector<2x128xf32> -> vector<2x128xf32>
    %20 = arith.addf %18, %19 : vector<2x128xf32>
    %21 = vector.extract_strided_slice %20 {offsets = [0, 0], sizes = [2, 32], strides = [1, 1]} : vector<2x128xf32> to vector<2x32xf32>
    %22 = arith.negf %21 : vector<2x32xf32>
    %23 = math.exp %22 : vector<2x32xf32>
    %cst_17 = arith.constant 1.000000e+00 : f32
    %24 = vector.broadcast %cst_17 : f32 to vector<2x32xf32>
    %25 = arith.addf %24, %23 : vector<2x32xf32>
    %26 = arith.divf %24, %25 : vector<2x32xf32>
    %27 = vector.extract_strided_slice %20 {offsets = [0, 32], sizes = [2, 32], strides = [1, 1]} : vector<2x128xf32> to vector<2x32xf32>
    %28 = arith.negf %27 : vector<2x32xf32>
    %29 = math.exp %28 : vector<2x32xf32>
    %cst_18 = arith.constant 1.000000e+00 : f32
    %30 = vector.broadcast %cst_18 : f32 to vector<2x32xf32>
    %31 = arith.addf %30, %29 : vector<2x32xf32>
    %32 = arith.divf %30, %31 : vector<2x32xf32>
    %33 = vector.extract_strided_slice %20 {offsets = [0, 64], sizes = [2, 32], strides = [1, 1]} : vector<2x128xf32> to vector<2x32xf32>
    %34 = math.tanh %33 : vector<2x32xf32>
    %35 = vector.extract_strided_slice %20 {offsets = [0, 96], sizes = [2, 32], strides = [1, 1]} : vector<2x128xf32> to vector<2x32xf32>
    %36 = arith.negf %35 : vector<2x32xf32>
    %37 = math.exp %36 : vector<2x32xf32>
    %cst_19 = arith.constant 1.000000e+00 : f32
    %38 = vector.broadcast %cst_19 : f32 to vector<2x32xf32>
    %39 = arith.addf %38, %37 : vector<2x32xf32>
    %40 = arith.divf %38, %39 : vector<2x32xf32>
    %41 = arith.mulf %32, %14 : vector<2x32xf32>
    %42 = arith.mulf %26, %34 : vector<2x32xf32>
    %43 = arith.addf %41, %42 : vector<2x32xf32>
    %44 = math.tanh %43 : vector<2x32xf32>
    %45 = arith.mulf %40, %44 : vector<2x32xf32>
    %46 = tpu.concatenate %45, %15 in 1 : vector<2x32xf32>, vector<2x32xf32> -> vector<2x64xf32>
    %cst_20 = arith.constant dense<0.000000e+00> : vector<2x128xf32>
    %47 = tpu.matmul %46, %9, %cst_20 {dimension_numbers = #tpu.dot_dimension_numbers<[1], [0], [0], [1], [0, 0, 1, 1], [], []>} : vector<2x64xf32>, vector<64x128xf32>, vector<2x128xf32> -> vector<2x128xf32>
    %48 = arith.addf %47, %12 : vector<2x128xf32>
    %49 = vector.extract_strided_slice %48 {offsets = [0, 0], sizes = [2, 32], strides = [1, 1]} : vector<2x128xf32> to vector<2x32xf32>
    %50 = arith.negf %49 : vector<2x32xf32>
    %51 = math.exp %50 : vector<2x32xf32>
    %cst_21 = arith.constant 1.000000e+00 : f32
    %52 = vector.broadcast %cst_21 : f32 to vector<2x32xf32>
    %53 = arith.addf %52, %51 : vector<2x32xf32>
    %54 = arith.divf %52, %53 : vector<2x32xf32>
    %55 = vector.extract_strided_slice %48 {offsets = [0, 32], sizes = [2, 32], strides = [1, 1]} : vector<2x128xf32> to vector<2x32xf32>
    %56 = arith.negf %55 : vector<2x32xf32>
    %57 = math.exp %56 : vector<2x32xf32>
    %cst_22 = arith.constant 1.000000e+00 : f32
    %58 = vector.broadcast %cst_22 : f32 to vector<2x32xf32>
    %59 = arith.addf %58, %57 : vector<2x32xf32>
    %60 = arith.divf %58, %59 : vector<2x32xf32>
    %61 = vector.extract_strided_slice %48 {offsets = [0, 64], sizes = [2, 32], strides = [1, 1]} : vector<2x128xf32> to vector<2x32xf32>
    %62 = math.tanh %61 : vector<2x32xf32>
    %63 = vector.extract_strided_slice %48 {offsets = [0, 96], sizes = [2, 32], strides = [1, 1]} : vector<2x128xf32> to vector<2x32xf32>
    %64 = arith.negf %63 : vector<2x32xf32>
    %65 = math.exp %64 : vector<2x32xf32>
    %cst_23 = arith.constant 1.000000e+00 : f32
    %66 = vector.broadcast %cst_23 : f32 to vector<2x32xf32>
    %67 = arith.addf %66, %65 : vector<2x32xf32>
    %68 = arith.divf %66, %67 : vector<2x32xf32>
    %69 = arith.mulf %60, %16 : vector<2x32xf32>
    %70 = arith.mulf %54, %62 : vector<2x32xf32>
    %71 = arith.addf %69, %70 : vector<2x32xf32>
    %72 = math.tanh %71 : vector<2x32xf32>
    %73 = arith.mulf %68, %72 : vector<2x32xf32>
    %74 = vector.extract_strided_slice %7 {offsets = [0, 1, 0], sizes = [2, 1, 128], strides = [1, 1, 1]} : vector<2x8x128xf32> to vector<2x1x128xf32>
    %75 = vector.shape_cast %74 : vector<2x1x128xf32> to vector<2x128xf32>
    %cst_24 = arith.constant dense<0.000000e+00> : vector<2x128xf32>
    %76 = tpu.matmul %45, %8, %cst_24 {dimension_numbers = #tpu.dot_dimension_numbers<[1], [0], [0], [1], [0, 0, 1, 1], [], []>} : vector<2x32xf32>, vector<32x128xf32>, vector<2x128xf32> -> vector<2x128xf32>
    %77 = arith.addf %75, %76 : vector<2x128xf32>
    %78 = vector.extract_strided_slice %77 {offsets = [0, 0], sizes = [2, 32], strides = [1, 1]} : vector<2x128xf32> to vector<2x32xf32>
    %79 = arith.negf %78 : vector<2x32xf32>
    %80 = math.exp %79 : vector<2x32xf32>
    %cst_25 = arith.constant 1.000000e+00 : f32
    %81 = vector.broadcast %cst_25 : f32 to vector<2x32xf32>
    %82 = arith.addf %81, %80 : vector<2x32xf32>
    %83 = arith.divf %81, %82 : vector<2x32xf32>
    %84 = vector.extract_strided_slice %77 {offsets = [0, 32], sizes = [2, 32], strides = [1, 1]} : vector<2x128xf32> to vector<2x32xf32>
    %85 = arith.negf %84 : vector<2x32xf32>
    %86 = math.exp %85 : vector<2x32xf32>
    %cst_26 = arith.constant 1.000000e+00 : f32
    %87 = vector.broadcast %cst_26 : f32 to vector<2x32xf32>
    %88 = arith.addf %87, %86 : vector<2x32xf32>
    %89 = arith.divf %87, %88 : vector<2x32xf32>
    %90 = vector.extract_strided_slice %77 {offsets = [0, 64], sizes = [2, 32], strides = [1, 1]} : vector<2x128xf32> to vector<2x32xf32>
    %91 = math.tanh %90 : vector<2x32xf32>
    %92 = vector.extract_strided_slice %77 {offsets = [0, 96], sizes = [2, 32], strides = [1, 1]} : vector<2x128xf32> to vector<2x32xf32>
    %93 = arith.negf %92 : vector<2x32xf32>
    %94 = math.exp %93 : vector<2x32xf32>
    %cst_27 = arith.constant 1.000000e+00 : f32
    %95 = vector.broadcast %cst_27 : f32 to vector<2x32xf32>
    %96 = arith.addf %95, %94 : vector<2x32xf32>
    %97 = arith.divf %95, %96 : vector<2x32xf32>
    %98 = arith.mulf %89, %43 : vector<2x32xf32>
    %99 = arith.mulf %83, %91 : vector<2x32xf32>
    %100 = arith.addf %98, %99 : vector<2x32xf32>
    %101 = math.tanh %100 : vector<2x32xf32>
    %102 = arith.mulf %97, %101 : vector<2x32xf32>
    %103 = tpu.concatenate %102, %73 in 1 : vector<2x32xf32>, vector<2x32xf32> -> vector<2x64xf32>
    %cst_28 = arith.constant dense<0.000000e+00> : vector<2x128xf32>
    %104 = tpu.matmul %103, %9, %cst_28 {dimension_numbers = #tpu.dot_dimension_numbers<[1], [0], [0], [1], [0, 0, 1, 1], [], []>} : vector<2x64xf32>, vector<64x128xf32>, vector<2x128xf32> -> vector<2x128xf32>
    %105 = arith.addf %104, %12 : vector<2x128xf32>
    %106 = vector.extract_strided_slice %105 {offsets = [0, 0], sizes = [2, 32], strides = [1, 1]} : vector<2x128xf32> to vector<2x32xf32>
    %107 = arith.negf %106 : vector<2x32xf32>
    %108 = math.exp %107 : vector<2x32xf32>
    %cst_29 = arith.constant 1.000000e+00 : f32
    %109 = vector.broadcast %cst_29 : f32 to vector<2x32xf32>
    %110 = arith.addf %109, %108 : vector<2x32xf32>
    %111 = arith.divf %109, %110 : vector<2x32xf32>
    %112 = vector.extract_strided_slice %105 {offsets = [0, 32], sizes = [2, 32], strides = [1, 1]} : vector<2x128xf32> to vector<2x32xf32>
    %113 = arith.negf %112 : vector<2x32xf32>
    %114 = math.exp %113 : vector<2x32xf32>
    %cst_30 = arith.constant 1.000000e+00 : f32
    %115 = vector.broadcast %cst_30 : f32 to vector<2x32xf32>
    %116 = arith.addf %115, %114 : vector<2x32xf32>
    %117 = arith.divf %115, %116 : vector<2x32xf32>
    %118 = vector.extract_strided_slice %105 {offsets = [0, 64], sizes = [2, 32], strides = [1, 1]} : vector<2x128xf32> to vector<2x32xf32>
    %119 = math.tanh %118 : vector<2x32xf32>
    %120 = vector.extract_strided_slice %105 {offsets = [0, 96], sizes = [2, 32], strides = [1, 1]} : vector<2x128xf32> to vector<2x32xf32>
    %121 = arith.negf %120 : vector<2x32xf32>
    %122 = math.exp %121 : vector<2x32xf32>
    %cst_31 = arith.constant 1.000000e+00 : f32
    %123 = vector.broadcast %cst_31 : f32 to vector<2x32xf32>
    %124 = arith.addf %123, %122 : vector<2x32xf32>
    %125 = arith.divf %123, %124 : vector<2x32xf32>
    %126 = arith.mulf %117, %71 : vector<2x32xf32>
    %127 = arith.mulf %111, %119 : vector<2x32xf32>
    %128 = arith.addf %126, %127 : vector<2x32xf32>
    %129 = math.tanh %128 : vector<2x32xf32>
    %130 = arith.mulf %125, %129 : vector<2x32xf32>
    %131 = vector.extract_strided_slice %7 {offsets = [0, 2, 0], sizes = [2, 1, 128], strides = [1, 1, 1]} : vector<2x8x128xf32> to vector<2x1x128xf32>
    %132 = vector.shape_cast %131 : vector<2x1x128xf32> to vector<2x128xf32>
    %cst_32 = arith.constant dense<0.000000e+00> : vector<2x128xf32>
    %133 = tpu.matmul %102, %8, %cst_32 {dimension_numbers = #tpu.dot_dimension_numbers<[1], [0], [0], [1], [0, 0, 1, 1], [], []>} : vector<2x32xf32>, vector<32x128xf32>, vector<2x128xf32> -> vector<2x128xf32>
    %134 = arith.addf %132, %133 : vector<2x128xf32>
    %135 = vector.extract_strided_slice %134 {offsets = [0, 0], sizes = [2, 32], strides = [1, 1]} : vector<2x128xf32> to vector<2x32xf32>
    %136 = arith.negf %135 : vector<2x32xf32>
    %137 = math.exp %136 : vector<2x32xf32>
    %cst_33 = arith.constant 1.000000e+00 : f32
    %138 = vector.broadcast %cst_33 : f32 to vector<2x32xf32>
    %139 = arith.addf %138, %137 : vector<2x32xf32>
    %140 = arith.divf %138, %139 : vector<2x32xf32>
    %141 = vector.extract_strided_slice %134 {offsets = [0, 32], sizes = [2, 32], strides = [1, 1]} : vector<2x128xf32> to vector<2x32xf32>
    %142 = arith.negf %141 : vector<2x32xf32>
    %143 = math.exp %142 : vector<2x32xf32>
    %cst_34 = arith.constant 1.000000e+00 : f32
    %144 = vector.broadcast %cst_34 : f32 to vector<2x32xf32>
    %145 = arith.addf %144, %143 : vector<2x32xf32>
    %146 = arith.divf %144, %145 : vector<2x32xf32>
    %147 = vector.extract_strided_slice %134 {offsets = [0, 64], sizes = [2, 32], strides = [1, 1]} : vector<2x128xf32> to vector<2x32xf32>
    %148 = math.tanh %147 : vector<2x32xf32>
    %149 = vector.extract_strided_slice %134 {offsets = [0, 96], sizes = [2, 32], strides = [1, 1]} : vector<2x128xf32> to vector<2x32xf32>
    %150 = arith.negf %149 : vector<2x32xf32>
    %151 = math.exp %150 : vector<2x32xf32>
    %cst_35 = arith.constant 1.000000e+00 : f32
    %152 = vector.broadcast %cst_35 : f32 to vector<2x32xf32>
    %153 = arith.addf %152, %151 : vector<2x32xf32>
    %154 = arith.divf %152, %153 : vector<2x32xf32>
    %155 = arith.mulf %146, %100 : vector<2x32xf32>
    %156 = arith.mulf %140, %148 : vector<2x32xf32>
    %157 = arith.addf %155, %156 : vector<2x32xf32>
    %158 = math.tanh %157 : vector<2x32xf32>
    %159 = arith.mulf %154, %158 : vector<2x32xf32>
    %160 = tpu.concatenate %159, %130 in 1 : vector<2x32xf32>, vector<2x32xf32> -> vector<2x64xf32>
    %cst_36 = arith.constant dense<0.000000e+00> : vector<2x128xf32>
    %161 = tpu.matmul %160, %9, %cst_36 {dimension_numbers = #tpu.dot_dimension_numbers<[1], [0], [0], [1], [0, 0, 1, 1], [], []>} : vector<2x64xf32>, vector<64x128xf32>, vector<2x128xf32> -> vector<2x128xf32>
    %162 = arith.addf %161, %12 : vector<2x128xf32>
    %163 = vector.extract_strided_slice %162 {offsets = [0, 0], sizes = [2, 32], strides = [1, 1]} : vector<2x128xf32> to vector<2x32xf32>
    %164 = arith.negf %163 : vector<2x32xf32>
    %165 = math.exp %164 : vector<2x32xf32>
    %cst_37 = arith.constant 1.000000e+00 : f32
    %166 = vector.broadcast %cst_37 : f32 to vector<2x32xf32>
    %167 = arith.addf %166, %165 : vector<2x32xf32>
    %168 = arith.divf %166, %167 : vector<2x32xf32>
    %169 = vector.extract_strided_slice %162 {offsets = [0, 32], sizes = [2, 32], strides = [1, 1]} : vector<2x128xf32> to vector<2x32xf32>
    %170 = arith.negf %169 : vector<2x32xf32>
    %171 = math.exp %170 : vector<2x32xf32>
    %cst_38 = arith.constant 1.000000e+00 : f32
    %172 = vector.broadcast %cst_38 : f32 to vector<2x32xf32>
    %173 = arith.addf %172, %171 : vector<2x32xf32>
    %174 = arith.divf %172, %173 : vector<2x32xf32>
    %175 = vector.extract_strided_slice %162 {offsets = [0, 64], sizes = [2, 32], strides = [1, 1]} : vector<2x128xf32> to vector<2x32xf32>
    %176 = math.tanh %175 : vector<2x32xf32>
    %177 = vector.extract_strided_slice %162 {offsets = [0, 96], sizes = [2, 32], strides = [1, 1]} : vector<2x128xf32> to vector<2x32xf32>
    %178 = arith.negf %177 : vector<2x32xf32>
    %179 = math.exp %178 : vector<2x32xf32>
    %cst_39 = arith.constant 1.000000e+00 : f32
    %180 = vector.broadcast %cst_39 : f32 to vector<2x32xf32>
    %181 = arith.addf %180, %179 : vector<2x32xf32>
    %182 = arith.divf %180, %181 : vector<2x32xf32>
    %183 = arith.mulf %174, %128 : vector<2x32xf32>
    %184 = arith.mulf %168, %176 : vector<2x32xf32>
    %185 = arith.addf %183, %184 : vector<2x32xf32>
    %186 = math.tanh %185 : vector<2x32xf32>
    %187 = arith.mulf %182, %186 : vector<2x32xf32>
    %188 = vector.extract_strided_slice %7 {offsets = [0, 3, 0], sizes = [2, 1, 128], strides = [1, 1, 1]} : vector<2x8x128xf32> to vector<2x1x128xf32>
    %189 = vector.shape_cast %188 : vector<2x1x128xf32> to vector<2x128xf32>
    %cst_40 = arith.constant dense<0.000000e+00> : vector<2x128xf32>
    %190 = tpu.matmul %159, %8, %cst_40 {dimension_numbers = #tpu.dot_dimension_numbers<[1], [0], [0], [1], [0, 0, 1, 1], [], []>} : vector<2x32xf32>, vector<32x128xf32>, vector<2x128xf32> -> vector<2x128xf32>
    %191 = arith.addf %189, %190 : vector<2x128xf32>
    %192 = vector.extract_strided_slice %191 {offsets = [0, 0], sizes = [2, 32], strides = [1, 1]} : vector<2x128xf32> to vector<2x32xf32>
    %193 = arith.negf %192 : vector<2x32xf32>
    %194 = math.exp %193 : vector<2x32xf32>
    %cst_41 = arith.constant 1.000000e+00 : f32
    %195 = vector.broadcast %cst_41 : f32 to vector<2x32xf32>
    %196 = arith.addf %195, %194 : vector<2x32xf32>
    %197 = arith.divf %195, %196 : vector<2x32xf32>
    %198 = vector.extract_strided_slice %191 {offsets = [0, 32], sizes = [2, 32], strides = [1, 1]} : vector<2x128xf32> to vector<2x32xf32>
    %199 = arith.negf %198 : vector<2x32xf32>
    %200 = math.exp %199 : vector<2x32xf32>
    %cst_42 = arith.constant 1.000000e+00 : f32
    %201 = vector.broadcast %cst_42 : f32 to vector<2x32xf32>
    %202 = arith.addf %201, %200 : vector<2x32xf32>
    %203 = arith.divf %201, %202 : vector<2x32xf32>
    %204 = vector.extract_strided_slice %191 {offsets = [0, 64], sizes = [2, 32], strides = [1, 1]} : vector<2x128xf32> to vector<2x32xf32>
    %205 = math.tanh %204 : vector<2x32xf32>
    %206 = vector.extract_strided_slice %191 {offsets = [0, 96], sizes = [2, 32], strides = [1, 1]} : vector<2x128xf32> to vector<2x32xf32>
    %207 = arith.negf %206 : vector<2x32xf32>
    %208 = math.exp %207 : vector<2x32xf32>
    %cst_43 = arith.constant 1.000000e+00 : f32
    %209 = vector.broadcast %cst_43 : f32 to vector<2x32xf32>
    %210 = arith.addf %209, %208 : vector<2x32xf32>
    %211 = arith.divf %209, %210 : vector<2x32xf32>
    %212 = arith.mulf %203, %157 : vector<2x32xf32>
    %213 = arith.mulf %197, %205 : vector<2x32xf32>
    %214 = arith.addf %212, %213 : vector<2x32xf32>
    %215 = math.tanh %214 : vector<2x32xf32>
    %216 = arith.mulf %211, %215 : vector<2x32xf32>
    %217 = tpu.concatenate %216, %187 in 1 : vector<2x32xf32>, vector<2x32xf32> -> vector<2x64xf32>
    %cst_44 = arith.constant dense<0.000000e+00> : vector<2x128xf32>
    %218 = tpu.matmul %217, %9, %cst_44 {dimension_numbers = #tpu.dot_dimension_numbers<[1], [0], [0], [1], [0, 0, 1, 1], [], []>} : vector<2x64xf32>, vector<64x128xf32>, vector<2x128xf32> -> vector<2x128xf32>
    %219 = arith.addf %218, %12 : vector<2x128xf32>
    %220 = vector.extract_strided_slice %219 {offsets = [0, 0], sizes = [2, 32], strides = [1, 1]} : vector<2x128xf32> to vector<2x32xf32>
    %221 = arith.negf %220 : vector<2x32xf32>
    %222 = math.exp %221 : vector<2x32xf32>
    %cst_45 = arith.constant 1.000000e+00 : f32
    %223 = vector.broadcast %cst_45 : f32 to vector<2x32xf32>
    %224 = arith.addf %223, %222 : vector<2x32xf32>
    %225 = arith.divf %223, %224 : vector<2x32xf32>
    %226 = vector.extract_strided_slice %219 {offsets = [0, 32], sizes = [2, 32], strides = [1, 1]} : vector<2x128xf32> to vector<2x32xf32>
    %227 = arith.negf %226 : vector<2x32xf32>
    %228 = math.exp %227 : vector<2x32xf32>
    %cst_46 = arith.constant 1.000000e+00 : f32
    %229 = vector.broadcast %cst_46 : f32 to vector<2x32xf32>
    %230 = arith.addf %229, %228 : vector<2x32xf32>
    %231 = arith.divf %229, %230 : vector<2x32xf32>
    %232 = vector.extract_strided_slice %219 {offsets = [0, 64], sizes = [2, 32], strides = [1, 1]} : vector<2x128xf32> to vector<2x32xf32>
    %233 = math.tanh %232 : vector<2x32xf32>
    %234 = vector.extract_strided_slice %219 {offsets = [0, 96], sizes = [2, 32], strides = [1, 1]} : vector<2x128xf32> to vector<2x32xf32>
    %235 = arith.negf %234 : vector<2x32xf32>
    %236 = math.exp %235 : vector<2x32xf32>
    %cst_47 = arith.constant 1.000000e+00 : f32
    %237 = vector.broadcast %cst_47 : f32 to vector<2x32xf32>
    %238 = arith.addf %237, %236 : vector<2x32xf32>
    %239 = arith.divf %237, %238 : vector<2x32xf32>
    %240 = arith.mulf %231, %185 : vector<2x32xf32>
    %241 = arith.mulf %225, %233 : vector<2x32xf32>
    %242 = arith.addf %240, %241 : vector<2x32xf32>
    %243 = math.tanh %242 : vector<2x32xf32>
    %244 = arith.mulf %239, %243 : vector<2x32xf32>
    %245 = vector.extract_strided_slice %7 {offsets = [0, 4, 0], sizes = [2, 1, 128], strides = [1, 1, 1]} : vector<2x8x128xf32> to vector<2x1x128xf32>
    %246 = vector.shape_cast %245 : vector<2x1x128xf32> to vector<2x128xf32>
    %cst_48 = arith.constant dense<0.000000e+00> : vector<2x128xf32>
    %247 = tpu.matmul %216, %8, %cst_48 {dimension_numbers = #tpu.dot_dimension_numbers<[1], [0], [0], [1], [0, 0, 1, 1], [], []>} : vector<2x32xf32>, vector<32x128xf32>, vector<2x128xf32> -> vector<2x128xf32>
    %248 = arith.addf %246, %247 : vector<2x128xf32>
    %249 = vector.extract_strided_slice %248 {offsets = [0, 0], sizes = [2, 32], strides = [1, 1]} : vector<2x128xf32> to vector<2x32xf32>
    %250 = arith.negf %249 : vector<2x32xf32>
    %251 = math.exp %250 : vector<2x32xf32>
    %cst_49 = arith.constant 1.000000e+00 : f32
    %252 = vector.broadcast %cst_49 : f32 to vector<2x32xf32>
    %253 = arith.addf %252, %251 : vector<2x32xf32>
    %254 = arith.divf %252, %253 : vector<2x32xf32>
    %255 = vector.extract_strided_slice %248 {offsets = [0, 32], sizes = [2, 32], strides = [1, 1]} : vector<2x128xf32> to vector<2x32xf32>
    %256 = arith.negf %255 : vector<2x32xf32>
    %257 = math.exp %256 : vector<2x32xf32>
    %cst_50 = arith.constant 1.000000e+00 : f32
    %258 = vector.broadcast %cst_50 : f32 to vector<2x32xf32>
    %259 = arith.addf %258, %257 : vector<2x32xf32>
    %260 = arith.divf %258, %259 : vector<2x32xf32>
    %261 = vector.extract_strided_slice %248 {offsets = [0, 64], sizes = [2, 32], strides = [1, 1]} : vector<2x128xf32> to vector<2x32xf32>
    %262 = math.tanh %261 : vector<2x32xf32>
    %263 = vector.extract_strided_slice %248 {offsets = [0, 96], sizes = [2, 32], strides = [1, 1]} : vector<2x128xf32> to vector<2x32xf32>
    %264 = arith.negf %263 : vector<2x32xf32>
    %265 = math.exp %264 : vector<2x32xf32>
    %cst_51 = arith.constant 1.000000e+00 : f32
    %266 = vector.broadcast %cst_51 : f32 to vector<2x32xf32>
    %267 = arith.addf %266, %265 : vector<2x32xf32>
    %268 = arith.divf %266, %267 : vector<2x32xf32>
    %269 = arith.mulf %260, %214 : vector<2x32xf32>
    %270 = arith.mulf %254, %262 : vector<2x32xf32>
    %271 = arith.addf %269, %270 : vector<2x32xf32>
    %272 = math.tanh %271 : vector<2x32xf32>
    %273 = arith.mulf %268, %272 : vector<2x32xf32>
    %274 = tpu.concatenate %273, %244 in 1 : vector<2x32xf32>, vector<2x32xf32> -> vector<2x64xf32>
    %cst_52 = arith.constant dense<0.000000e+00> : vector<2x128xf32>
    %275 = tpu.matmul %274, %9, %cst_52 {dimension_numbers = #tpu.dot_dimension_numbers<[1], [0], [0], [1], [0, 0, 1, 1], [], []>} : vector<2x64xf32>, vector<64x128xf32>, vector<2x128xf32> -> vector<2x128xf32>
    %276 = arith.addf %275, %12 : vector<2x128xf32>
    %277 = vector.extract_strided_slice %276 {offsets = [0, 0], sizes = [2, 32], strides = [1, 1]} : vector<2x128xf32> to vector<2x32xf32>
    %278 = arith.negf %277 : vector<2x32xf32>
    %279 = math.exp %278 : vector<2x32xf32>
    %cst_53 = arith.constant 1.000000e+00 : f32
    %280 = vector.broadcast %cst_53 : f32 to vector<2x32xf32>
    %281 = arith.addf %280, %279 : vector<2x32xf32>
    %282 = arith.divf %280, %281 : vector<2x32xf32>
    %283 = vector.extract_strided_slice %276 {offsets = [0, 32], sizes = [2, 32], strides = [1, 1]} : vector<2x128xf32> to vector<2x32xf32>
    %284 = arith.negf %283 : vector<2x32xf32>
    %285 = math.exp %284 : vector<2x32xf32>
    %cst_54 = arith.constant 1.000000e+00 : f32
    %286 = vector.broadcast %cst_54 : f32 to vector<2x32xf32>
    %287 = arith.addf %286, %285 : vector<2x32xf32>
    %288 = arith.divf %286, %287 : vector<2x32xf32>
    %289 = vector.extract_strided_slice %276 {offsets = [0, 64], sizes = [2, 32], strides = [1, 1]} : vector<2x128xf32> to vector<2x32xf32>
    %290 = math.tanh %289 : vector<2x32xf32>
    %291 = vector.extract_strided_slice %276 {offsets = [0, 96], sizes = [2, 32], strides = [1, 1]} : vector<2x128xf32> to vector<2x32xf32>
    %292 = arith.negf %291 : vector<2x32xf32>
    %293 = math.exp %292 : vector<2x32xf32>
    %cst_55 = arith.constant 1.000000e+00 : f32
    %294 = vector.broadcast %cst_55 : f32 to vector<2x32xf32>
    %295 = arith.addf %294, %293 : vector<2x32xf32>
    %296 = arith.divf %294, %295 : vector<2x32xf32>
    %297 = arith.mulf %288, %242 : vector<2x32xf32>
    %298 = arith.mulf %282, %290 : vector<2x32xf32>
    %299 = arith.addf %297, %298 : vector<2x32xf32>
    %300 = math.tanh %299 : vector<2x32xf32>
    %301 = arith.mulf %296, %300 : vector<2x32xf32>
    %302 = vector.extract_strided_slice %7 {offsets = [0, 5, 0], sizes = [2, 1, 128], strides = [1, 1, 1]} : vector<2x8x128xf32> to vector<2x1x128xf32>
    %303 = vector.shape_cast %302 : vector<2x1x128xf32> to vector<2x128xf32>
    %cst_56 = arith.constant dense<0.000000e+00> : vector<2x128xf32>
    %304 = tpu.matmul %273, %8, %cst_56 {dimension_numbers = #tpu.dot_dimension_numbers<[1], [0], [0], [1], [0, 0, 1, 1], [], []>} : vector<2x32xf32>, vector<32x128xf32>, vector<2x128xf32> -> vector<2x128xf32>
    %305 = arith.addf %303, %304 : vector<2x128xf32>
    %306 = vector.extract_strided_slice %305 {offsets = [0, 0], sizes = [2, 32], strides = [1, 1]} : vector<2x128xf32> to vector<2x32xf32>
    %307 = arith.negf %306 : vector<2x32xf32>
    %308 = math.exp %307 : vector<2x32xf32>
    %cst_57 = arith.constant 1.000000e+00 : f32
    %309 = vector.broadcast %cst_57 : f32 to vector<2x32xf32>
    %310 = arith.addf %309, %308 : vector<2x32xf32>
    %311 = arith.divf %309, %310 : vector<2x32xf32>
    %312 = vector.extract_strided_slice %305 {offsets = [0, 32], sizes = [2, 32], strides = [1, 1]} : vector<2x128xf32> to vector<2x32xf32>
    %313 = arith.negf %312 : vector<2x32xf32>
    %314 = math.exp %313 : vector<2x32xf32>
    %cst_58 = arith.constant 1.000000e+00 : f32
    %315 = vector.broadcast %cst_58 : f32 to vector<2x32xf32>
    %316 = arith.addf %315, %314 : vector<2x32xf32>
    %317 = arith.divf %315, %316 : vector<2x32xf32>
    %318 = vector.extract_strided_slice %305 {offsets = [0, 64], sizes = [2, 32], strides = [1, 1]} : vector<2x128xf32> to vector<2x32xf32>
    %319 = math.tanh %318 : vector<2x32xf32>
    %320 = vector.extract_strided_slice %305 {offsets = [0, 96], sizes = [2, 32], strides = [1, 1]} : vector<2x128xf32> to vector<2x32xf32>
    %321 = arith.negf %320 : vector<2x32xf32>
    %322 = math.exp %321 : vector<2x32xf32>
    %cst_59 = arith.constant 1.000000e+00 : f32
    %323 = vector.broadcast %cst_59 : f32 to vector<2x32xf32>
    %324 = arith.addf %323, %322 : vector<2x32xf32>
    %325 = arith.divf %323, %324 : vector<2x32xf32>
    %326 = arith.mulf %317, %271 : vector<2x32xf32>
    %327 = arith.mulf %311, %319 : vector<2x32xf32>
    %328 = arith.addf %326, %327 : vector<2x32xf32>
    %329 = math.tanh %328 : vector<2x32xf32>
    %330 = arith.mulf %325, %329 : vector<2x32xf32>
    %331 = tpu.concatenate %330, %301 in 1 : vector<2x32xf32>, vector<2x32xf32> -> vector<2x64xf32>
    %cst_60 = arith.constant dense<0.000000e+00> : vector<2x128xf32>
    %332 = tpu.matmul %331, %9, %cst_60 {dimension_numbers = #tpu.dot_dimension_numbers<[1], [0], [0], [1], [0, 0, 1, 1], [], []>} : vector<2x64xf32>, vector<64x128xf32>, vector<2x128xf32> -> vector<2x128xf32>
    %333 = arith.addf %332, %12 : vector<2x128xf32>
    %334 = vector.extract_strided_slice %333 {offsets = [0, 0], sizes = [2, 32], strides = [1, 1]} : vector<2x128xf32> to vector<2x32xf32>
    %335 = arith.negf %334 : vector<2x32xf32>
    %336 = math.exp %335 : vector<2x32xf32>
    %cst_61 = arith.constant 1.000000e+00 : f32
    %337 = vector.broadcast %cst_61 : f32 to vector<2x32xf32>
    %338 = arith.addf %337, %336 : vector<2x32xf32>
    %339 = arith.divf %337, %338 : vector<2x32xf32>
    %340 = vector.extract_strided_slice %333 {offsets = [0, 32], sizes = [2, 32], strides = [1, 1]} : vector<2x128xf32> to vector<2x32xf32>
    %341 = arith.negf %340 : vector<2x32xf32>
    %342 = math.exp %341 : vector<2x32xf32>
    %cst_62 = arith.constant 1.000000e+00 : f32
    %343 = vector.broadcast %cst_62 : f32 to vector<2x32xf32>
    %344 = arith.addf %343, %342 : vector<2x32xf32>
    %345 = arith.divf %343, %344 : vector<2x32xf32>
    %346 = vector.extract_strided_slice %333 {offsets = [0, 64], sizes = [2, 32], strides = [1, 1]} : vector<2x128xf32> to vector<2x32xf32>
    %347 = math.tanh %346 : vector<2x32xf32>
    %348 = vector.extract_strided_slice %333 {offsets = [0, 96], sizes = [2, 32], strides = [1, 1]} : vector<2x128xf32> to vector<2x32xf32>
    %349 = arith.negf %348 : vector<2x32xf32>
    %350 = math.exp %349 : vector<2x32xf32>
    %cst_63 = arith.constant 1.000000e+00 : f32
    %351 = vector.broadcast %cst_63 : f32 to vector<2x32xf32>
    %352 = arith.addf %351, %350 : vector<2x32xf32>
    %353 = arith.divf %351, %352 : vector<2x32xf32>
    %354 = arith.mulf %345, %299 : vector<2x32xf32>
    %355 = arith.mulf %339, %347 : vector<2x32xf32>
    %356 = arith.addf %354, %355 : vector<2x32xf32>
    %357 = math.tanh %356 : vector<2x32xf32>
    %358 = arith.mulf %353, %357 : vector<2x32xf32>
    %359 = vector.extract_strided_slice %7 {offsets = [0, 6, 0], sizes = [2, 1, 128], strides = [1, 1, 1]} : vector<2x8x128xf32> to vector<2x1x128xf32>
    %360 = vector.shape_cast %359 : vector<2x1x128xf32> to vector<2x128xf32>
    %cst_64 = arith.constant dense<0.000000e+00> : vector<2x128xf32>
    %361 = tpu.matmul %330, %8, %cst_64 {dimension_numbers = #tpu.dot_dimension_numbers<[1], [0], [0], [1], [0, 0, 1, 1], [], []>} : vector<2x32xf32>, vector<32x128xf32>, vector<2x128xf32> -> vector<2x128xf32>
    %362 = arith.addf %360, %361 : vector<2x128xf32>
    %363 = vector.extract_strided_slice %362 {offsets = [0, 0], sizes = [2, 32], strides = [1, 1]} : vector<2x128xf32> to vector<2x32xf32>
    %364 = arith.negf %363 : vector<2x32xf32>
    %365 = math.exp %364 : vector<2x32xf32>
    %cst_65 = arith.constant 1.000000e+00 : f32
    %366 = vector.broadcast %cst_65 : f32 to vector<2x32xf32>
    %367 = arith.addf %366, %365 : vector<2x32xf32>
    %368 = arith.divf %366, %367 : vector<2x32xf32>
    %369 = vector.extract_strided_slice %362 {offsets = [0, 32], sizes = [2, 32], strides = [1, 1]} : vector<2x128xf32> to vector<2x32xf32>
    %370 = arith.negf %369 : vector<2x32xf32>
    %371 = math.exp %370 : vector<2x32xf32>
    %cst_66 = arith.constant 1.000000e+00 : f32
    %372 = vector.broadcast %cst_66 : f32 to vector<2x32xf32>
    %373 = arith.addf %372, %371 : vector<2x32xf32>
    %374 = arith.divf %372, %373 : vector<2x32xf32>
    %375 = vector.extract_strided_slice %362 {offsets = [0, 64], sizes = [2, 32], strides = [1, 1]} : vector<2x128xf32> to vector<2x32xf32>
    %376 = math.tanh %375 : vector<2x32xf32>
    %377 = vector.extract_strided_slice %362 {offsets = [0, 96], sizes = [2, 32], strides = [1, 1]} : vector<2x128xf32> to vector<2x32xf32>
    %378 = arith.negf %377 : vector<2x32xf32>
    %379 = math.exp %378 : vector<2x32xf32>
    %cst_67 = arith.constant 1.000000e+00 : f32
    %380 = vector.broadcast %cst_67 : f32 to vector<2x32xf32>
    %381 = arith.addf %380, %379 : vector<2x32xf32>
    %382 = arith.divf %380, %381 : vector<2x32xf32>
    %383 = arith.mulf %374, %328 : vector<2x32xf32>
    %384 = arith.mulf %368, %376 : vector<2x32xf32>
    %385 = arith.addf %383, %384 : vector<2x32xf32>
    %386 = math.tanh %385 : vector<2x32xf32>
    %387 = arith.mulf %382, %386 : vector<2x32xf32>
    %388 = tpu.concatenate %387, %358 in 1 : vector<2x32xf32>, vector<2x32xf32> -> vector<2x64xf32>
    %cst_68 = arith.constant dense<0.000000e+00> : vector<2x128xf32>
    %389 = tpu.matmul %388, %9, %cst_68 {dimension_numbers = #tpu.dot_dimension_numbers<[1], [0], [0], [1], [0, 0, 1, 1], [], []>} : vector<2x64xf32>, vector<64x128xf32>, vector<2x128xf32> -> vector<2x128xf32>
    %390 = arith.addf %389, %12 : vector<2x128xf32>
    %391 = vector.extract_strided_slice %390 {offsets = [0, 0], sizes = [2, 32], strides = [1, 1]} : vector<2x128xf32> to vector<2x32xf32>
    %392 = arith.negf %391 : vector<2x32xf32>
    %393 = math.exp %392 : vector<2x32xf32>
    %cst_69 = arith.constant 1.000000e+00 : f32
    %394 = vector.broadcast %cst_69 : f32 to vector<2x32xf32>
    %395 = arith.addf %394, %393 : vector<2x32xf32>
    %396 = arith.divf %394, %395 : vector<2x32xf32>
    %397 = vector.extract_strided_slice %390 {offsets = [0, 32], sizes = [2, 32], strides = [1, 1]} : vector<2x128xf32> to vector<2x32xf32>
    %398 = arith.negf %397 : vector<2x32xf32>
    %399 = math.exp %398 : vector<2x32xf32>
    %cst_70 = arith.constant 1.000000e+00 : f32
    %400 = vector.broadcast %cst_70 : f32 to vector<2x32xf32>
    %401 = arith.addf %400, %399 : vector<2x32xf32>
    %402 = arith.divf %400, %401 : vector<2x32xf32>
    %403 = vector.extract_strided_slice %390 {offsets = [0, 64], sizes = [2, 32], strides = [1, 1]} : vector<2x128xf32> to vector<2x32xf32>
    %404 = math.tanh %403 : vector<2x32xf32>
    %405 = vector.extract_strided_slice %390 {offsets = [0, 96], sizes = [2, 32], strides = [1, 1]} : vector<2x128xf32> to vector<2x32xf32>
    %406 = arith.negf %405 : vector<2x32xf32>
    %407 = math.exp %406 : vector<2x32xf32>
    %cst_71 = arith.constant 1.000000e+00 : f32
    %408 = vector.broadcast %cst_71 : f32 to vector<2x32xf32>
    %409 = arith.addf %408, %407 : vector<2x32xf32>
    %410 = arith.divf %408, %409 : vector<2x32xf32>
    %411 = arith.mulf %402, %356 : vector<2x32xf32>
    %412 = arith.mulf %396, %404 : vector<2x32xf32>
    %413 = arith.addf %411, %412 : vector<2x32xf32>
    %414 = math.tanh %413 : vector<2x32xf32>
    %415 = arith.mulf %410, %414 : vector<2x32xf32>
    %416 = vector.extract_strided_slice %7 {offsets = [0, 7, 0], sizes = [2, 1, 128], strides = [1, 1, 1]} : vector<2x8x128xf32> to vector<2x1x128xf32>
    %417 = vector.shape_cast %416 : vector<2x1x128xf32> to vector<2x128xf32>
    %cst_72 = arith.constant dense<0.000000e+00> : vector<2x128xf32>
    %418 = tpu.matmul %387, %8, %cst_72 {dimension_numbers = #tpu.dot_dimension_numbers<[1], [0], [0], [1], [0, 0, 1, 1], [], []>} : vector<2x32xf32>, vector<32x128xf32>, vector<2x128xf32> -> vector<2x128xf32>
    %419 = arith.addf %417, %418 : vector<2x128xf32>
    %420 = vector.extract_strided_slice %419 {offsets = [0, 0], sizes = [2, 32], strides = [1, 1]} : vector<2x128xf32> to vector<2x32xf32>
    %421 = arith.negf %420 : vector<2x32xf32>
    %422 = math.exp %421 : vector<2x32xf32>
    %cst_73 = arith.constant 1.000000e+00 : f32
    %423 = vector.broadcast %cst_73 : f32 to vector<2x32xf32>
    %424 = arith.addf %423, %422 : vector<2x32xf32>
    %425 = arith.divf %423, %424 : vector<2x32xf32>
    %426 = vector.extract_strided_slice %419 {offsets = [0, 32], sizes = [2, 32], strides = [1, 1]} : vector<2x128xf32> to vector<2x32xf32>
    %427 = arith.negf %426 : vector<2x32xf32>
    %428 = math.exp %427 : vector<2x32xf32>
    %cst_74 = arith.constant 1.000000e+00 : f32
    %429 = vector.broadcast %cst_74 : f32 to vector<2x32xf32>
    %430 = arith.addf %429, %428 : vector<2x32xf32>
    %431 = arith.divf %429, %430 : vector<2x32xf32>
    %432 = vector.extract_strided_slice %419 {offsets = [0, 64], sizes = [2, 32], strides = [1, 1]} : vector<2x128xf32> to vector<2x32xf32>
    %433 = math.tanh %432 : vector<2x32xf32>
    %434 = vector.extract_strided_slice %419 {offsets = [0, 96], sizes = [2, 32], strides = [1, 1]} : vector<2x128xf32> to vector<2x32xf32>
    %435 = arith.negf %434 : vector<2x32xf32>
    %436 = math.exp %435 : vector<2x32xf32>
    %cst_75 = arith.constant 1.000000e+00 : f32
    %437 = vector.broadcast %cst_75 : f32 to vector<2x32xf32>
    %438 = arith.addf %437, %436 : vector<2x32xf32>
    %439 = arith.divf %437, %438 : vector<2x32xf32>
    %440 = arith.mulf %431, %385 : vector<2x32xf32>
    %441 = arith.mulf %425, %433 : vector<2x32xf32>
    %442 = arith.addf %440, %441 : vector<2x32xf32>
    %443 = math.tanh %442 : vector<2x32xf32>
    %444 = arith.mulf %439, %443 : vector<2x32xf32>
    %445 = tpu.concatenate %444, %415 in 1 : vector<2x32xf32>, vector<2x32xf32> -> vector<2x64xf32>
    %cst_76 = arith.constant dense<0.000000e+00> : vector<2x128xf32>
    %446 = tpu.matmul %445, %9, %cst_76 {dimension_numbers = #tpu.dot_dimension_numbers<[1], [0], [0], [1], [0, 0, 1, 1], [], []>} : vector<2x64xf32>, vector<64x128xf32>, vector<2x128xf32> -> vector<2x128xf32>
    %447 = arith.addf %446, %12 : vector<2x128xf32>
    %448 = vector.extract_strided_slice %447 {offsets = [0, 0], sizes = [2, 32], strides = [1, 1]} : vector<2x128xf32> to vector<2x32xf32>
    %449 = arith.negf %448 : vector<2x32xf32>
    %450 = math.exp %449 : vector<2x32xf32>
    %cst_77 = arith.constant 1.000000e+00 : f32
    %451 = vector.broadcast %cst_77 : f32 to vector<2x32xf32>
    %452 = arith.addf %451, %450 : vector<2x32xf32>
    %453 = arith.divf %451, %452 : vector<2x32xf32>
    %454 = vector.extract_strided_slice %447 {offsets = [0, 32], sizes = [2, 32], strides = [1, 1]} : vector<2x128xf32> to vector<2x32xf32>
    %455 = arith.negf %454 : vector<2x32xf32>
    %456 = math.exp %455 : vector<2x32xf32>
    %cst_78 = arith.constant 1.000000e+00 : f32
    %457 = vector.broadcast %cst_78 : f32 to vector<2x32xf32>
    %458 = arith.addf %457, %456 : vector<2x32xf32>
    %459 = arith.divf %457, %458 : vector<2x32xf32>
    %460 = vector.extract_strided_slice %447 {offsets = [0, 64], sizes = [2, 32], strides = [1, 1]} : vector<2x128xf32> to vector<2x32xf32>
    %461 = math.tanh %460 : vector<2x32xf32>
    %462 = vector.extract_strided_slice %447 {offsets = [0, 96], sizes = [2, 32], strides = [1, 1]} : vector<2x128xf32> to vector<2x32xf32>
    %463 = arith.negf %462 : vector<2x32xf32>
    %464 = math.exp %463 : vector<2x32xf32>
    %cst_79 = arith.constant 1.000000e+00 : f32
    %465 = vector.broadcast %cst_79 : f32 to vector<2x32xf32>
    %466 = arith.addf %465, %464 : vector<2x32xf32>
    %467 = arith.divf %465, %466 : vector<2x32xf32>
    %468 = arith.mulf %459, %413 : vector<2x32xf32>
    %469 = arith.mulf %453, %461 : vector<2x32xf32>
    %470 = arith.addf %468, %469 : vector<2x32xf32>
    %471 = math.tanh %470 : vector<2x32xf32>
    %472 = arith.mulf %467, %471 : vector<2x32xf32>
    %c0_80 = arith.constant 0 : index
    %c0_81 = arith.constant 0 : index
    %473 = vector.load %arg6[%c0_80, %c0_81] : memref<32x128xf32, #tpu.memory_space<vmem>>, vector<32x128xf32>
    %c0_82 = arith.constant 0 : index
    %c0_83 = arith.constant 0 : index
    %474 = vector.load %arg7[%c0_82, %c0_83] : memref<32x128xf32, #tpu.memory_space<vmem>>, vector<32x128xf32>
    %c0_84 = arith.constant 0 : index
    %c0_85 = arith.constant 0 : index
    %475 = vector.load %arg8[%c0_84, %c0_85] : memref<1x128xf32, #tpu.memory_space<vmem>>, vector<1x128xf32>
    %476 = vector.shape_cast %475 : vector<1x128xf32> to vector<1x128xf32>
    %477 = vector.broadcast %476 : vector<1x128xf32> to vector<2x128xf32>
    %c0_86 = arith.constant 0 : index
    %c0_87 = arith.constant 0 : index
    %478 = vector.load %arg9[%c0_86, %c0_87] : memref<1x128xf32, #tpu.memory_space<vmem>>, vector<1x128xf32>
    %479 = vector.shape_cast %478 : vector<1x128xf32> to vector<1x128xf32>
    %480 = vector.broadcast %479 : vector<1x128xf32> to vector<2x128xf32>
    %c0_88 = arith.constant 0 : index
    %c0_89 = arith.constant 0 : index
    %481 = vector.load %arg10[%c0_88, %c0_89] : memref<32x34xf32, #tpu.memory_space<vmem>>, vector<32x34xf32>
    %c0_90 = arith.constant 0 : index
    %c0_91 = arith.constant 0 : index
    %482 = vector.load %arg11[%c0_90, %c0_91] : memref<1x34xf32, #tpu.memory_space<vmem>>, vector<1x34xf32>
    %483 = vector.shape_cast %482 : vector<1x34xf32> to vector<1x34xf32>
    %484 = vector.broadcast %483 : vector<1x34xf32> to vector<2x34xf32>
    %cst_92 = arith.constant dense<0.000000e+00> : vector<2x128xf32>
    %485 = tpu.matmul %472, %473, %cst_92 {dimension_numbers = #tpu.dot_dimension_numbers<[1], [0], [0], [1], [0, 0, 1, 1], [], []>} : vector<2x32xf32>, vector<32x128xf32>, vector<2x128xf32> -> vector<2x128xf32>
    %486 = arith.addf %485, %480 : vector<2x128xf32>
    %487 = vector.extract_strided_slice %486 {offsets = [0, 0], sizes = [2, 32], strides = [1, 1]} : vector<2x128xf32> to vector<2x32xf32>
    %488 = arith.negf %487 : vector<2x32xf32>
    %489 = math.exp %488 : vector<2x32xf32>
    %cst_93 = arith.constant 1.000000e+00 : f32
    %490 = vector.broadcast %cst_93 : f32 to vector<2x32xf32>
    %491 = arith.addf %490, %489 : vector<2x32xf32>
    %492 = arith.divf %490, %491 : vector<2x32xf32>
    %493 = vector.extract_strided_slice %486 {offsets = [0, 32], sizes = [2, 32], strides = [1, 1]} : vector<2x128xf32> to vector<2x32xf32>
    %494 = arith.negf %493 : vector<2x32xf32>
    %495 = math.exp %494 : vector<2x32xf32>
    %cst_94 = arith.constant 1.000000e+00 : f32
    %496 = vector.broadcast %cst_94 : f32 to vector<2x32xf32>
    %497 = arith.addf %496, %495 : vector<2x32xf32>
    %498 = arith.divf %496, %497 : vector<2x32xf32>
    %499 = vector.extract_strided_slice %486 {offsets = [0, 64], sizes = [2, 32], strides = [1, 1]} : vector<2x128xf32> to vector<2x32xf32>
    %500 = math.tanh %499 : vector<2x32xf32>
    %501 = vector.extract_strided_slice %486 {offsets = [0, 96], sizes = [2, 32], strides = [1, 1]} : vector<2x128xf32> to vector<2x32xf32>
    %502 = arith.negf %501 : vector<2x32xf32>
    %503 = math.exp %502 : vector<2x32xf32>
    %cst_95 = arith.constant 1.000000e+00 : f32
    %504 = vector.broadcast %cst_95 : f32 to vector<2x32xf32>
    %505 = arith.addf %504, %503 : vector<2x32xf32>
    %506 = arith.divf %504, %505 : vector<2x32xf32>
    %507 = arith.mulf %498, %470 : vector<2x32xf32>
    %508 = arith.mulf %492, %500 : vector<2x32xf32>
    %509 = arith.addf %507, %508 : vector<2x32xf32>
    %510 = math.tanh %509 : vector<2x32xf32>
    %511 = arith.mulf %506, %510 : vector<2x32xf32>
    %cst_96 = arith.constant dense<0.000000e+00> : vector<2x34xf32>
    %512 = tpu.matmul %511, %481, %cst_96 {dimension_numbers = #tpu.dot_dimension_numbers<[1], [0], [0], [1], [0, 0, 1, 1], [], []>} : vector<2x32xf32>, vector<32x34xf32>, vector<2x34xf32> -> vector<2x34xf32>
    %513 = arith.addf %512, %484 : vector<2x34xf32>
    %c0_97 = arith.constant 0 : index
    %c0_98 = arith.constant 0 : index
    %c0_99 = arith.constant 0 : index
    %514 = vector.load %arg12[%c0_97, %c0_98, %c0_99] : memref<2x10x34xf32, #tpu.memory_space<vmem>>, vector<2x1x34xf32>
    %515 = vector.shape_cast %514 : vector<2x1x34xf32> to vector<2x34xf32>
    %516 = vector.shape_cast %513 : vector<2x34xf32> to vector<2x1x34xf32>
    tpu.vector_store %arg12[%c0_97, %c0_98, %c0_99], %516 {strides = array<i32>} : memref<2x10x34xf32, #tpu.memory_space<vmem>>, vector<2x1x34xf32>,
    %cst_100 = arith.constant dense<0.000000e+00> : vector<2x128xf32>
    %517 = tpu.matmul %511, %474, %cst_100 {dimension_numbers = #tpu.dot_dimension_numbers<[1], [0], [0], [1], [0, 0, 1, 1], [], []>} : vector<2x32xf32>, vector<32x128xf32>, vector<2x128xf32> -> vector<2x128xf32>
    %518 = arith.addf %517, %477 : vector<2x128xf32>
    %519 = vector.extract_strided_slice %518 {offsets = [0, 0], sizes = [2, 32], strides = [1, 1]} : vector<2x128xf32> to vector<2x32xf32>
    %520 = arith.negf %519 : vector<2x32xf32>
    %521 = math.exp %520 : vector<2x32xf32>
    %cst_101 = arith.constant 1.000000e+00 : f32
    %522 = vector.broadcast %cst_101 : f32 to vector<2x32xf32>
    %523 = arith.addf %522, %521 : vector<2x32xf32>
    %524 = arith.divf %522, %523 : vector<2x32xf32>
    %525 = vector.extract_strided_slice %518 {offsets = [0, 32], sizes = [2, 32], strides = [1, 1]} : vector<2x128xf32> to vector<2x32xf32>
    %526 = arith.negf %525 : vector<2x32xf32>
    %527 = math.exp %526 : vector<2x32xf32>
    %cst_102 = arith.constant 1.000000e+00 : f32
    %528 = vector.broadcast %cst_102 : f32 to vector<2x32xf32>
    %529 = arith.addf %528, %527 : vector<2x32xf32>
    %530 = arith.divf %528, %529 : vector<2x32xf32>
    %531 = vector.extract_strided_slice %518 {offsets = [0, 64], sizes = [2, 32], strides = [1, 1]} : vector<2x128xf32> to vector<2x32xf32>
    %532 = math.tanh %531 : vector<2x32xf32>
    %533 = vector.extract_strided_slice %518 {offsets = [0, 96], sizes = [2, 32], strides = [1, 1]} : vector<2x128xf32> to vector<2x32xf32>
    %534 = arith.negf %533 : vector<2x32xf32>
    %535 = math.exp %534 : vector<2x32xf32>
    %cst_103 = arith.constant 1.000000e+00 : f32
    %536 = vector.broadcast %cst_103 : f32 to vector<2x32xf32>
    %537 = arith.addf %536, %535 : vector<2x32xf32>
    %538 = arith.divf %536, %537 : vector<2x32xf32>
    %539 = arith.mulf %530, %509 : vector<2x32xf32>
    %540 = arith.mulf %524, %532 : vector<2x32xf32>
    %541 = arith.addf %539, %540 : vector<2x32xf32>
    %542 = math.tanh %541 : vector<2x32xf32>
    %543 = arith.mulf %538, %542 : vector<2x32xf32>
    %cst_104 = arith.constant dense<0.000000e+00> : vector<2x34xf32>
    %544 = tpu.matmul %543, %481, %cst_104 {dimension_numbers = #tpu.dot_dimension_numbers<[1], [0], [0], [1], [0, 0, 1, 1], [], []>} : vector<2x32xf32>, vector<32x34xf32>, vector<2x34xf32> -> vector<2x34xf32>
    %545 = arith.addf %544, %484 : vector<2x34xf32>
    %c0_105 = arith.constant 0 : index
    %c1 = arith.constant 1 : index
    %c0_106 = arith.constant 0 : index
    %546 = vector.load %arg12[%c0_105, %c1, %c0_106] : memref<2x10x34xf32, #tpu.memory_space<vmem>>, vector<2x1x34xf32>
    %547 = vector.shape_cast %546 : vector<2x1x34xf32> to vector<2x34xf32>
    %548 = vector.shape_cast %545 : vector<2x34xf32> to vector<2x1x34xf32>
    tpu.vector_store %arg12[%c0_105, %c1, %c0_106], %548 {strides = array<i32>} : memref<2x10x34xf32, #tpu.memory_space<vmem>>, vector<2x1x34xf32>,
    %cst_107 = arith.constant dense<0.000000e+00> : vector<2x128xf32>
    %549 = tpu.matmul %543, %474, %cst_107 {dimension_numbers = #tpu.dot_dimension_numbers<[1], [0], [0], [1], [0, 0, 1, 1], [], []>} : vector<2x32xf32>, vector<32x128xf32>, vector<2x128xf32> -> vector<2x128xf32>
    %550 = arith.addf %549, %477 : vector<2x128xf32>
    %551 = vector.extract_strided_slice %550 {offsets = [0, 0], sizes = [2, 32], strides = [1, 1]} : vector<2x128xf32> to vector<2x32xf32>
    %552 = arith.negf %551 : vector<2x32xf32>
    %553 = math.exp %552 : vector<2x32xf32>
    %cst_108 = arith.constant 1.000000e+00 : f32
    %554 = vector.broadcast %cst_108 : f32 to vector<2x32xf32>
    %555 = arith.addf %554, %553 : vector<2x32xf32>
    %556 = arith.divf %554, %555 : vector<2x32xf32>
    %557 = vector.extract_strided_slice %550 {offsets = [0, 32], sizes = [2, 32], strides = [1, 1]} : vector<2x128xf32> to vector<2x32xf32>
    %558 = arith.negf %557 : vector<2x32xf32>
    %559 = math.exp %558 : vector<2x32xf32>
    %cst_109 = arith.constant 1.000000e+00 : f32
    %560 = vector.broadcast %cst_109 : f32 to vector<2x32xf32>
    %561 = arith.addf %560, %559 : vector<2x32xf32>
    %562 = arith.divf %560, %561 : vector<2x32xf32>
    %563 = vector.extract_strided_slice %550 {offsets = [0, 64], sizes = [2, 32], strides = [1, 1]} : vector<2x128xf32> to vector<2x32xf32>
    %564 = math.tanh %563 : vector<2x32xf32>
    %565 = vector.extract_strided_slice %550 {offsets = [0, 96], sizes = [2, 32], strides = [1, 1]} : vector<2x128xf32> to vector<2x32xf32>
    %566 = arith.negf %565 : vector<2x32xf32>
    %567 = math.exp %566 : vector<2x32xf32>
    %cst_110 = arith.constant 1.000000e+00 : f32
    %568 = vector.broadcast %cst_110 : f32 to vector<2x32xf32>
    %569 = arith.addf %568, %567 : vector<2x32xf32>
    %570 = arith.divf %568, %569 : vector<2x32xf32>
    %571 = arith.mulf %562, %541 : vector<2x32xf32>
    %572 = arith.mulf %556, %564 : vector<2x32xf32>
    %573 = arith.addf %571, %572 : vector<2x32xf32>
    %574 = math.tanh %573 : vector<2x32xf32>
    %575 = arith.mulf %570, %574 : vector<2x32xf32>
    %cst_111 = arith.constant dense<0.000000e+00> : vector<2x34xf32>
    %576 = tpu.matmul %575, %481, %cst_111 {dimension_numbers = #tpu.dot_dimension_numbers<[1], [0], [0], [1], [0, 0, 1, 1], [], []>} : vector<2x32xf32>, vector<32x34xf32>, vector<2x34xf32> -> vector<2x34xf32>
    %577 = arith.addf %576, %484 : vector<2x34xf32>
    %c0_112 = arith.constant 0 : index
    %c2 = arith.constant 2 : index
    %c0_113 = arith.constant 0 : index
    %578 = vector.load %arg12[%c0_112, %c2, %c0_113] : memref<2x10x34xf32, #tpu.memory_space<vmem>>, vector<2x1x34xf32>
    %579 = vector.shape_cast %578 : vector<2x1x34xf32> to vector<2x34xf32>
    %580 = vector.shape_cast %577 : vector<2x34xf32> to vector<2x1x34xf32>
    tpu.vector_store %arg12[%c0_112, %c2, %c0_113], %580 {strides = array<i32>} : memref<2x10x34xf32, #tpu.memory_space<vmem>>, vector<2x1x34xf32>,
    %cst_114 = arith.constant dense<0.000000e+00> : vector<2x128xf32>
    %581 = tpu.matmul %575, %474, %cst_114 {dimension_numbers = #tpu.dot_dimension_numbers<[1], [0], [0], [1], [0, 0, 1, 1], [], []>} : vector<2x32xf32>, vector<32x128xf32>, vector<2x128xf32> -> vector<2x128xf32>
    %582 = arith.addf %581, %477 : vector<2x128xf32>
    %583 = vector.extract_strided_slice %582 {offsets = [0, 0], sizes = [2, 32], strides = [1, 1]} : vector<2x128xf32> to vector<2x32xf32>
    %584 = arith.negf %583 : vector<2x32xf32>
    %585 = math.exp %584 : vector<2x32xf32>
    %cst_115 = arith.constant 1.000000e+00 : f32
    %586 = vector.broadcast %cst_115 : f32 to vector<2x32xf32>
    %587 = arith.addf %586, %585 : vector<2x32xf32>
    %588 = arith.divf %586, %587 : vector<2x32xf32>
    %589 = vector.extract_strided_slice %582 {offsets = [0, 32], sizes = [2, 32], strides = [1, 1]} : vector<2x128xf32> to vector<2x32xf32>
    %590 = arith.negf %589 : vector<2x32xf32>
    %591 = math.exp %590 : vector<2x32xf32>
    %cst_116 = arith.constant 1.000000e+00 : f32
    %592 = vector.broadcast %cst_116 : f32 to vector<2x32xf32>
    %593 = arith.addf %592, %591 : vector<2x32xf32>
    %594 = arith.divf %592, %593 : vector<2x32xf32>
    %595 = vector.extract_strided_slice %582 {offsets = [0, 64], sizes = [2, 32], strides = [1, 1]} : vector<2x128xf32> to vector<2x32xf32>
    %596 = math.tanh %595 : vector<2x32xf32>
    %597 = vector.extract_strided_slice %582 {offsets = [0, 96], sizes = [2, 32], strides = [1, 1]} : vector<2x128xf32> to vector<2x32xf32>
    %598 = arith.negf %597 : vector<2x32xf32>
    %599 = math.exp %598 : vector<2x32xf32>
    %cst_117 = arith.constant 1.000000e+00 : f32
    %600 = vector.broadcast %cst_117 : f32 to vector<2x32xf32>
    %601 = arith.addf %600, %599 : vector<2x32xf32>
    %602 = arith.divf %600, %601 : vector<2x32xf32>
    %603 = arith.mulf %594, %573 : vector<2x32xf32>
    %604 = arith.mulf %588, %596 : vector<2x32xf32>
    %605 = arith.addf %603, %604 : vector<2x32xf32>
    %606 = math.tanh %605 : vector<2x32xf32>
    %607 = arith.mulf %602, %606 : vector<2x32xf32>
    %cst_118 = arith.constant dense<0.000000e+00> : vector<2x34xf32>
    %608 = tpu.matmul %607, %481, %cst_118 {dimension_numbers = #tpu.dot_dimension_numbers<[1], [0], [0], [1], [0, 0, 1, 1], [], []>} : vector<2x32xf32>, vector<32x34xf32>, vector<2x34xf32> -> vector<2x34xf32>
    %609 = arith.addf %608, %484 : vector<2x34xf32>
    %c0_119 = arith.constant 0 : index
    %c3 = arith.constant 3 : index
    %c0_120 = arith.constant 0 : index
    %610 = vector.load %arg12[%c0_119, %c3, %c0_120] : memref<2x10x34xf32, #tpu.memory_space<vmem>>, vector<2x1x34xf32>
    %611 = vector.shape_cast %610 : vector<2x1x34xf32> to vector<2x34xf32>
    %612 = vector.shape_cast %609 : vector<2x34xf32> to vector<2x1x34xf32>
    tpu.vector_store %arg12[%c0_119, %c3, %c0_120], %612 {strides = array<i32>} : memref<2x10x34xf32, #tpu.memory_space<vmem>>, vector<2x1x34xf32>,
    %cst_121 = arith.constant dense<0.000000e+00> : vector<2x128xf32>
    %613 = tpu.matmul %607, %474, %cst_121 {dimension_numbers = #tpu.dot_dimension_numbers<[1], [0], [0], [1], [0, 0, 1, 1], [], []>} : vector<2x32xf32>, vector<32x128xf32>, vector<2x128xf32> -> vector<2x128xf32>
    %614 = arith.addf %613, %477 : vector<2x128xf32>
    %615 = vector.extract_strided_slice %614 {offsets = [0, 0], sizes = [2, 32], strides = [1, 1]} : vector<2x128xf32> to vector<2x32xf32>
    %616 = arith.negf %615 : vector<2x32xf32>
    %617 = math.exp %616 : vector<2x32xf32>
    %cst_122 = arith.constant 1.000000e+00 : f32
    %618 = vector.broadcast %cst_122 : f32 to vector<2x32xf32>
    %619 = arith.addf %618, %617 : vector<2x32xf32>
    %620 = arith.divf %618, %619 : vector<2x32xf32>
    %621 = vector.extract_strided_slice %614 {offsets = [0, 32], sizes = [2, 32], strides = [1, 1]} : vector<2x128xf32> to vector<2x32xf32>
    %622 = arith.negf %621 : vector<2x32xf32>
    %623 = math.exp %622 : vector<2x32xf32>
    %cst_123 = arith.constant 1.000000e+00 : f32
    %624 = vector.broadcast %cst_123 : f32 to vector<2x32xf32>
    %625 = arith.addf %624, %623 : vector<2x32xf32>
    %626 = arith.divf %624, %625 : vector<2x32xf32>
    %627 = vector.extract_strided_slice %614 {offsets = [0, 64], sizes = [2, 32], strides = [1, 1]} : vector<2x128xf32> to vector<2x32xf32>
    %628 = math.tanh %627 : vector<2x32xf32>
    %629 = vector.extract_strided_slice %614 {offsets = [0, 96], sizes = [2, 32], strides = [1, 1]} : vector<2x128xf32> to vector<2x32xf32>
    %630 = arith.negf %629 : vector<2x32xf32>
    %631 = math.exp %630 : vector<2x32xf32>
    %cst_124 = arith.constant 1.000000e+00 : f32
    %632 = vector.broadcast %cst_124 : f32 to vector<2x32xf32>
    %633 = arith.addf %632, %631 : vector<2x32xf32>
    %634 = arith.divf %632, %633 : vector<2x32xf32>
    %635 = arith.mulf %626, %605 : vector<2x32xf32>
    %636 = arith.mulf %620, %628 : vector<2x32xf32>
    %637 = arith.addf %635, %636 : vector<2x32xf32>
    %638 = math.tanh %637 : vector<2x32xf32>
    %639 = arith.mulf %634, %638 : vector<2x32xf32>
    %cst_125 = arith.constant dense<0.000000e+00> : vector<2x34xf32>
    %640 = tpu.matmul %639, %481, %cst_125 {dimension_numbers = #tpu.dot_dimension_numbers<[1], [0], [0], [1], [0, 0, 1, 1], [], []>} : vector<2x32xf32>, vector<32x34xf32>, vector<2x34xf32> -> vector<2x34xf32>
    %641 = arith.addf %640, %484 : vector<2x34xf32>
    %c0_126 = arith.constant 0 : index
    %c4 = arith.constant 4 : index
    %c0_127 = arith.constant 0 : index
    %642 = vector.load %arg12[%c0_126, %c4, %c0_127] : memref<2x10x34xf32, #tpu.memory_space<vmem>>, vector<2x1x34xf32>
    %643 = vector.shape_cast %642 : vector<2x1x34xf32> to vector<2x34xf32>
    %644 = vector.shape_cast %641 : vector<2x34xf32> to vector<2x1x34xf32>
    tpu.vector_store %arg12[%c0_126, %c4, %c0_127], %644 {strides = array<i32>} : memref<2x10x34xf32, #tpu.memory_space<vmem>>, vector<2x1x34xf32>,
    %cst_128 = arith.constant dense<0.000000e+00> : vector<2x128xf32>
    %645 = tpu.matmul %639, %474, %cst_128 {dimension_numbers = #tpu.dot_dimension_numbers<[1], [0], [0], [1], [0, 0, 1, 1], [], []>} : vector<2x32xf32>, vector<32x128xf32>, vector<2x128xf32> -> vector<2x128xf32>
    %646 = arith.addf %645, %477 : vector<2x128xf32>
    %647 = vector.extract_strided_slice %646 {offsets = [0, 0], sizes = [2, 32], strides = [1, 1]} : vector<2x128xf32> to vector<2x32xf32>
    %648 = arith.negf %647 : vector<2x32xf32>
    %649 = math.exp %648 : vector<2x32xf32>
    %cst_129 = arith.constant 1.000000e+00 : f32
    %650 = vector.broadcast %cst_129 : f32 to vector<2x32xf32>
    %651 = arith.addf %650, %649 : vector<2x32xf32>
    %652 = arith.divf %650, %651 : vector<2x32xf32>
    %653 = vector.extract_strided_slice %646 {offsets = [0, 32], sizes = [2, 32], strides = [1, 1]} : vector<2x128xf32> to vector<2x32xf32>
    %654 = arith.negf %653 : vector<2x32xf32>
    %655 = math.exp %654 : vector<2x32xf32>
    %cst_130 = arith.constant 1.000000e+00 : f32
    %656 = vector.broadcast %cst_130 : f32 to vector<2x32xf32>
    %657 = arith.addf %656, %655 : vector<2x32xf32>
    %658 = arith.divf %656, %657 : vector<2x32xf32>
    %659 = vector.extract_strided_slice %646 {offsets = [0, 64], sizes = [2, 32], strides = [1, 1]} : vector<2x128xf32> to vector<2x32xf32>
    %660 = math.tanh %659 : vector<2x32xf32>
    %661 = vector.extract_strided_slice %646 {offsets = [0, 96], sizes = [2, 32], strides = [1, 1]} : vector<2x128xf32> to vector<2x32xf32>
    %662 = arith.negf %661 : vector<2x32xf32>
    %663 = math.exp %662 : vector<2x32xf32>
    %cst_131 = arith.constant 1.000000e+00 : f32
    %664 = vector.broadcast %cst_131 : f32 to vector<2x32xf32>
    %665 = arith.addf %664, %663 : vector<2x32xf32>
    %666 = arith.divf %664, %665 : vector<2x32xf32>
    %667 = arith.mulf %658, %637 : vector<2x32xf32>
    %668 = arith.mulf %652, %660 : vector<2x32xf32>
    %669 = arith.addf %667, %668 : vector<2x32xf32>
    %670 = math.tanh %669 : vector<2x32xf32>
    %671 = arith.mulf %666, %670 : vector<2x32xf32>
    %cst_132 = arith.constant dense<0.000000e+00> : vector<2x34xf32>
    %672 = tpu.matmul %671, %481, %cst_132 {dimension_numbers = #tpu.dot_dimension_numbers<[1], [0], [0], [1], [0, 0, 1, 1], [], []>} : vector<2x32xf32>, vector<32x34xf32>, vector<2x34xf32> -> vector<2x34xf32>
    %673 = arith.addf %672, %484 : vector<2x34xf32>
    %c0_133 = arith.constant 0 : index
    %c5 = arith.constant 5 : index
    %c0_134 = arith.constant 0 : index
    %674 = vector.load %arg12[%c0_133, %c5, %c0_134] : memref<2x10x34xf32, #tpu.memory_space<vmem>>, vector<2x1x34xf32>
    %675 = vector.shape_cast %674 : vector<2x1x34xf32> to vector<2x34xf32>
    %676 = vector.shape_cast %673 : vector<2x34xf32> to vector<2x1x34xf32>
    tpu.vector_store %arg12[%c0_133, %c5, %c0_134], %676 {strides = array<i32>} : memref<2x10x34xf32, #tpu.memory_space<vmem>>, vector<2x1x34xf32>,
    %cst_135 = arith.constant dense<0.000000e+00> : vector<2x128xf32>
    %677 = tpu.matmul %671, %474, %cst_135 {dimension_numbers = #tpu.dot_dimension_numbers<[1], [0], [0], [1], [0, 0, 1, 1], [], []>} : vector<2x32xf32>, vector<32x128xf32>, vector<2x128xf32> -> vector<2x128xf32>
    %678 = arith.addf %677, %477 : vector<2x128xf32>
    %679 = vector.extract_strided_slice %678 {offsets = [0, 0], sizes = [2, 32], strides = [1, 1]} : vector<2x128xf32> to vector<2x32xf32>
    %680 = arith.negf %679 : vector<2x32xf32>
    %681 = math.exp %680 : vector<2x32xf32>
    %cst_136 = arith.constant 1.000000e+00 : f32
    %682 = vector.broadcast %cst_136 : f32 to vector<2x32xf32>
    %683 = arith.addf %682, %681 : vector<2x32xf32>
    %684 = arith.divf %682, %683 : vector<2x32xf32>
    %685 = vector.extract_strided_slice %678 {offsets = [0, 32], sizes = [2, 32], strides = [1, 1]} : vector<2x128xf32> to vector<2x32xf32>
    %686 = arith.negf %685 : vector<2x32xf32>
    %687 = math.exp %686 : vector<2x32xf32>
    %cst_137 = arith.constant 1.000000e+00 : f32
    %688 = vector.broadcast %cst_137 : f32 to vector<2x32xf32>
    %689 = arith.addf %688, %687 : vector<2x32xf32>
    %690 = arith.divf %688, %689 : vector<2x32xf32>
    %691 = vector.extract_strided_slice %678 {offsets = [0, 64], sizes = [2, 32], strides = [1, 1]} : vector<2x128xf32> to vector<2x32xf32>
    %692 = math.tanh %691 : vector<2x32xf32>
    %693 = vector.extract_strided_slice %678 {offsets = [0, 96], sizes = [2, 32], strides = [1, 1]} : vector<2x128xf32> to vector<2x32xf32>
    %694 = arith.negf %693 : vector<2x32xf32>
    %695 = math.exp %694 : vector<2x32xf32>
    %cst_138 = arith.constant 1.000000e+00 : f32
    %696 = vector.broadcast %cst_138 : f32 to vector<2x32xf32>
    %697 = arith.addf %696, %695 : vector<2x32xf32>
    %698 = arith.divf %696, %697 : vector<2x32xf32>
    %699 = arith.mulf %690, %669 : vector<2x32xf32>
    %700 = arith.mulf %684, %692 : vector<2x32xf32>
    %701 = arith.addf %699, %700 : vector<2x32xf32>
    %702 = math.tanh %701 : vector<2x32xf32>
    %703 = arith.mulf %698, %702 : vector<2x32xf32>
    %cst_139 = arith.constant dense<0.000000e+00> : vector<2x34xf32>
    %704 = tpu.matmul %703, %481, %cst_139 {dimension_numbers = #tpu.dot_dimension_numbers<[1], [0], [0], [1], [0, 0, 1, 1], [], []>} : vector<2x32xf32>, vector<32x34xf32>, vector<2x34xf32> -> vector<2x34xf32>
    %705 = arith.addf %704, %484 : vector<2x34xf32>
    %c0_140 = arith.constant 0 : index
    %c6 = arith.constant 6 : index
    %c0_141 = arith.constant 0 : index
    %706 = vector.load %arg12[%c0_140, %c6, %c0_141] : memref<2x10x34xf32, #tpu.memory_space<vmem>>, vector<2x1x34xf32>
    %707 = vector.shape_cast %706 : vector<2x1x34xf32> to vector<2x34xf32>
    %708 = vector.shape_cast %705 : vector<2x34xf32> to vector<2x1x34xf32>
    tpu.vector_store %arg12[%c0_140, %c6, %c0_141], %708 {strides = array<i32>} : memref<2x10x34xf32, #tpu.memory_space<vmem>>, vector<2x1x34xf32>,
    %cst_142 = arith.constant dense<0.000000e+00> : vector<2x128xf32>
    %709 = tpu.matmul %703, %474, %cst_142 {dimension_numbers = #tpu.dot_dimension_numbers<[1], [0], [0], [1], [0, 0, 1, 1], [], []>} : vector<2x32xf32>, vector<32x128xf32>, vector<2x128xf32> -> vector<2x128xf32>
    %710 = arith.addf %709, %477 : vector<2x128xf32>
    %711 = vector.extract_strided_slice %710 {offsets = [0, 0], sizes = [2, 32], strides = [1, 1]} : vector<2x128xf32> to vector<2x32xf32>
    %712 = arith.negf %711 : vector<2x32xf32>
    %713 = math.exp %712 : vector<2x32xf32>
    %cst_143 = arith.constant 1.000000e+00 : f32
    %714 = vector.broadcast %cst_143 : f32 to vector<2x32xf32>
    %715 = arith.addf %714, %713 : vector<2x32xf32>
    %716 = arith.divf %714, %715 : vector<2x32xf32>
    %717 = vector.extract_strided_slice %710 {offsets = [0, 32], sizes = [2, 32], strides = [1, 1]} : vector<2x128xf32> to vector<2x32xf32>
    %718 = arith.negf %717 : vector<2x32xf32>
    %719 = math.exp %718 : vector<2x32xf32>
    %cst_144 = arith.constant 1.000000e+00 : f32
    %720 = vector.broadcast %cst_144 : f32 to vector<2x32xf32>
    %721 = arith.addf %720, %719 : vector<2x32xf32>
    %722 = arith.divf %720, %721 : vector<2x32xf32>
    %723 = vector.extract_strided_slice %710 {offsets = [0, 64], sizes = [2, 32], strides = [1, 1]} : vector<2x128xf32> to vector<2x32xf32>
    %724 = math.tanh %723 : vector<2x32xf32>
    %725 = vector.extract_strided_slice %710 {offsets = [0, 96], sizes = [2, 32], strides = [1, 1]} : vector<2x128xf32> to vector<2x32xf32>
    %726 = arith.negf %725 : vector<2x32xf32>
    %727 = math.exp %726 : vector<2x32xf32>
    %cst_145 = arith.constant 1.000000e+00 : f32
    %728 = vector.broadcast %cst_145 : f32 to vector<2x32xf32>
    %729 = arith.addf %728, %727 : vector<2x32xf32>
    %730 = arith.divf %728, %729 : vector<2x32xf32>
    %731 = arith.mulf %722, %701 : vector<2x32xf32>
    %732 = arith.mulf %716, %724 : vector<2x32xf32>
    %733 = arith.addf %731, %732 : vector<2x32xf32>
    %734 = math.tanh %733 : vector<2x32xf32>
    %735 = arith.mulf %730, %734 : vector<2x32xf32>
    %cst_146 = arith.constant dense<0.000000e+00> : vector<2x34xf32>
    %736 = tpu.matmul %735, %481, %cst_146 {dimension_numbers = #tpu.dot_dimension_numbers<[1], [0], [0], [1], [0, 0, 1, 1], [], []>} : vector<2x32xf32>, vector<32x34xf32>, vector<2x34xf32> -> vector<2x34xf32>
    %737 = arith.addf %736, %484 : vector<2x34xf32>
    %c0_147 = arith.constant 0 : index
    %c7 = arith.constant 7 : index
    %c0_148 = arith.constant 0 : index
    %738 = vector.load %arg12[%c0_147, %c7, %c0_148] : memref<2x10x34xf32, #tpu.memory_space<vmem>>, vector<2x1x34xf32>
    %739 = vector.shape_cast %738 : vector<2x1x34xf32> to vector<2x34xf32>
    %740 = vector.shape_cast %737 : vector<2x34xf32> to vector<2x1x34xf32>
    tpu.vector_store %arg12[%c0_147, %c7, %c0_148], %740 {strides = array<i32>} : memref<2x10x34xf32, #tpu.memory_space<vmem>>, vector<2x1x34xf32>,
    %cst_149 = arith.constant dense<0.000000e+00> : vector<2x128xf32>
    %741 = tpu.matmul %735, %474, %cst_149 {dimension_numbers = #tpu.dot_dimension_numbers<[1], [0], [0], [1], [0, 0, 1, 1], [], []>} : vector<2x32xf32>, vector<32x128xf32>, vector<2x128xf32> -> vector<2x128xf32>
    %742 = arith.addf %741, %477 : vector<2x128xf32>
    %743 = vector.extract_strided_slice %742 {offsets = [0, 0], sizes = [2, 32], strides = [1, 1]} : vector<2x128xf32> to vector<2x32xf32>
    %744 = arith.negf %743 : vector<2x32xf32>
    %745 = math.exp %744 : vector<2x32xf32>
    %cst_150 = arith.constant 1.000000e+00 : f32
    %746 = vector.broadcast %cst_150 : f32 to vector<2x32xf32>
    %747 = arith.addf %746, %745 : vector<2x32xf32>
    %748 = arith.divf %746, %747 : vector<2x32xf32>
    %749 = vector.extract_strided_slice %742 {offsets = [0, 32], sizes = [2, 32], strides = [1, 1]} : vector<2x128xf32> to vector<2x32xf32>
    %750 = arith.negf %749 : vector<2x32xf32>
    %751 = math.exp %750 : vector<2x32xf32>
    %cst_151 = arith.constant 1.000000e+00 : f32
    %752 = vector.broadcast %cst_151 : f32 to vector<2x32xf32>
    %753 = arith.addf %752, %751 : vector<2x32xf32>
    %754 = arith.divf %752, %753 : vector<2x32xf32>
    %755 = vector.extract_strided_slice %742 {offsets = [0, 64], sizes = [2, 32], strides = [1, 1]} : vector<2x128xf32> to vector<2x32xf32>
    %756 = math.tanh %755 : vector<2x32xf32>
    %757 = vector.extract_strided_slice %742 {offsets = [0, 96], sizes = [2, 32], strides = [1, 1]} : vector<2x128xf32> to vector<2x32xf32>
    %758 = arith.negf %757 : vector<2x32xf32>
    %759 = math.exp %758 : vector<2x32xf32>
    %cst_152 = arith.constant 1.000000e+00 : f32
    %760 = vector.broadcast %cst_152 : f32 to vector<2x32xf32>
    %761 = arith.addf %760, %759 : vector<2x32xf32>
    %762 = arith.divf %760, %761 : vector<2x32xf32>
    %763 = arith.mulf %754, %733 : vector<2x32xf32>
    %764 = arith.mulf %748, %756 : vector<2x32xf32>
    %765 = arith.addf %763, %764 : vector<2x32xf32>
    %766 = math.tanh %765 : vector<2x32xf32>
    %767 = arith.mulf %762, %766 : vector<2x32xf32>
    %cst_153 = arith.constant dense<0.000000e+00> : vector<2x34xf32>
    %768 = tpu.matmul %767, %481, %cst_153 {dimension_numbers = #tpu.dot_dimension_numbers<[1], [0], [0], [1], [0, 0, 1, 1], [], []>} : vector<2x32xf32>, vector<32x34xf32>, vector<2x34xf32> -> vector<2x34xf32>
    %769 = arith.addf %768, %484 : vector<2x34xf32>
    %c0_154 = arith.constant 0 : index
    %c8 = arith.constant 8 : index
    %c0_155 = arith.constant 0 : index
    %770 = vector.load %arg12[%c0_154, %c8, %c0_155] : memref<2x10x34xf32, #tpu.memory_space<vmem>>, vector<2x1x34xf32>
    %771 = vector.shape_cast %770 : vector<2x1x34xf32> to vector<2x34xf32>
    %772 = vector.shape_cast %769 : vector<2x34xf32> to vector<2x1x34xf32>
    tpu.vector_store %arg12[%c0_154, %c8, %c0_155], %772 {strides = array<i32>} : memref<2x10x34xf32, #tpu.memory_space<vmem>>, vector<2x1x34xf32>,
    %cst_156 = arith.constant dense<0.000000e+00> : vector<2x128xf32>
    %773 = tpu.matmul %767, %474, %cst_156 {dimension_numbers = #tpu.dot_dimension_numbers<[1], [0], [0], [1], [0, 0, 1, 1], [], []>} : vector<2x32xf32>, vector<32x128xf32>, vector<2x128xf32> -> vector<2x128xf32>
    %774 = arith.addf %773, %477 : vector<2x128xf32>
    %775 = vector.extract_strided_slice %774 {offsets = [0, 0], sizes = [2, 32], strides = [1, 1]} : vector<2x128xf32> to vector<2x32xf32>
    %776 = arith.negf %775 : vector<2x32xf32>
    %777 = math.exp %776 : vector<2x32xf32>
    %cst_157 = arith.constant 1.000000e+00 : f32
    %778 = vector.broadcast %cst_157 : f32 to vector<2x32xf32>
    %779 = arith.addf %778, %777 : vector<2x32xf32>
    %780 = arith.divf %778, %779 : vector<2x32xf32>
    %781 = vector.extract_strided_slice %774 {offsets = [0, 32], sizes = [2, 32], strides = [1, 1]} : vector<2x128xf32> to vector<2x32xf32>
    %782 = arith.negf %781 : vector<2x32xf32>
    %783 = math.exp %782 : vector<2x32xf32>
    %cst_158 = arith.constant 1.000000e+00 : f32
    %784 = vector.broadcast %cst_158 : f32 to vector<2x32xf32>
    %785 = arith.addf %784, %783 : vector<2x32xf32>
    %786 = arith.divf %784, %785 : vector<2x32xf32>
    %787 = vector.extract_strided_slice %774 {offsets = [0, 64], sizes = [2, 32], strides = [1, 1]} : vector<2x128xf32> to vector<2x32xf32>
    %788 = math.tanh %787 : vector<2x32xf32>
    %789 = vector.extract_strided_slice %774 {offsets = [0, 96], sizes = [2, 32], strides = [1, 1]} : vector<2x128xf32> to vector<2x32xf32>
    %790 = arith.negf %789 : vector<2x32xf32>
    %791 = math.exp %790 : vector<2x32xf32>
    %cst_159 = arith.constant 1.000000e+00 : f32
    %792 = vector.broadcast %cst_159 : f32 to vector<2x32xf32>
    %793 = arith.addf %792, %791 : vector<2x32xf32>
    %794 = arith.divf %792, %793 : vector<2x32xf32>
    %795 = arith.mulf %786, %765 : vector<2x32xf32>
    %796 = arith.mulf %780, %788 : vector<2x32xf32>
    %797 = arith.addf %795, %796 : vector<2x32xf32>
    %798 = math.tanh %797 : vector<2x32xf32>
    %799 = arith.mulf %794, %798 : vector<2x32xf32>
    %cst_160 = arith.constant dense<0.000000e+00> : vector<2x34xf32>
    %800 = tpu.matmul %799, %481, %cst_160 {dimension_numbers = #tpu.dot_dimension_numbers<[1], [0], [0], [1], [0, 0, 1, 1], [], []>} : vector<2x32xf32>, vector<32x34xf32>, vector<2x34xf32> -> vector<2x34xf32>
    %801 = arith.addf %800, %484 : vector<2x34xf32>
    %c0_161 = arith.constant 0 : index
    %c9 = arith.constant 9 : index
    %c0_162 = arith.constant 0 : index
    %802 = vector.load %arg12[%c0_161, %c9, %c0_162] : memref<2x10x34xf32, #tpu.memory_space<vmem>>, vector<2x1x34xf32>
    %803 = vector.shape_cast %802 : vector<2x1x34xf32> to vector<2x34xf32>
    %804 = vector.shape_cast %801 : vector<2x34xf32> to vector<2x1x34xf32>
    tpu.vector_store %arg12[%c0_161, %c9, %c0_162], %804 {strides = array<i32>} : memref<2x10x34xf32, #tpu.memory_space<vmem>>, vector<2x1x34xf32>,
    return
  }
}

</mosaic_0001>

<bundles_post_ra>
// kernel: tpu_custom_call.1
= control target key start
LH: loop header
LB: loop body
LE: loop exit
PB: predicated region body
PF: predicated region fallthrough
CT: control target
= control target key end

     0   :  { %17 = vsyncpa [#allocation3], 0  ;;  %s6523_s0 = inlined_call_operand.hbm [shape: f32[2,8,34], index: 0, kind: input, shape index: {}]   ;;  %s6524_s1 = inlined_call_operand.hbm [shape: f32[34,128], index: 1, kind: input, shape index: {}]   ;;  %s6525_s2 = inlined_call_operand.vmem [shape: f32[1,128], index: 2, kind: input, shape index: {}]   ;;  %s6526_s3 = inlined_call_operand.hbm [shape: f32[32,128], index: 3, kind: input, shape index: {}]   ;;  %s6527_s4 = inlined_call_operand.hbm [shape: f32[64,128], index: 4, kind: input, shape index: {}]   ;;  %s6528_s5 = inlined_call_operand.vmem [shape: f32[1,128], index: 5, kind: input, shape index: {}]   ;;  %s6529_s6 = inlined_call_operand.hbm [shape: f32[32,128], index: 6, kind: input, shape index: {}]   ;;  %s6530_s7 = inlined_call_operand.hbm [shape: f32[32,128], index: 7, kind: input, shape index: {}]   ;;  %s6531_s8 = inlined_call_operand.vmem [shape: f32[1,128], index: 8, kind: input, shape index: {}]   ;;  %s6532_s9 = inlined_call_operand.vmem [shape: f32[1,128], index: 9, kind: input, shape index: {}]   ;;  %s6533_s10 = inlined_call_operand.hbm [shape: f32[32,34], index: 10, kind: input, shape index: {}]   ;;  %s6534_s11 = inlined_call_operand.vmem [shape: f32[1,34], index: 11, kind: input, shape index: {}]   ;;  %s6535_s12 = inlined_call_operand.vmem [shape: f32[2,10,34], index: 12, kind: output, shape index: {}]  }
   0x1   :  { %18 = vsyncpa [#allocation5], 0 }
   0x2   :  { %19 = vsyncpa [#allocation8], 0 }
   0x3   :  { %20 = vsyncpa [#allocation11], 0  ;;  %s5462_s21 = smov [#allocation4]   ;;  %s5463_s23 = smov [#allocation7]  }
   0x4   :  { %s38_s22 = sshll.u32 %s5462_s21, 4  ;;  %s64_s24 = sshll.u32 %s5463_s23, 4  ;;  %s39_s22 = int_to_ptr.vmem [resolvable:$true] %s38_s22  ;;  %s65_s24 = int_to_ptr.vmem [resolvable:$true] %s64_s24 }
   0x5   :  { %s5322_s25 = scalar_lea.vmem %s39_s22, 640  ;;  %p5327_p1 = scmp.lt.s32.totalorder %s39_s22, %s39_s22 }
   0x6   :  { %p5323_p0 = scmp.ne.s32.totalorder %s39_s22, %s5322_s25  ;;  %p5328_p2 = scmp.lt.s32.totalorder %s5322_s25, %s5322_s25 }
   0x8   :  { %p5329_p3 = por %p5328_p2, %p5327_p1 }
   0xa   :  { %p5330_p4 = pnand %p5329_p3, %p5323_p0 }
   0xc   :  { %5333 = shalt.err (!%p5330_p4)
}
   0xd   :  { %s5464_s26 = smov 128   ;;  %s5465_s27 = smov 8  }
   0xe   :  { %44 = dma.hbm_to_vmem [thread:$0]  %s6524_s1, 640, %s39_s22, [#allocation5], %s5464_s26, %s5464_s26, %s5465_s27  }
   0xf   :  { %s5342_s30 = scalar_lea.vmem %s65_s24, 1024  ;;  %p5347_p6 = scmp.lt.s32.totalorder %s65_s24, %s65_s24 }
  0x10   :  { %p5343_p5 = scmp.ne.s32.totalorder %s65_s24, %s5342_s30  ;;  %p5348_p7 = scmp.lt.s32.totalorder %s5342_s30, %s5342_s30 }
  0x12   :  { %p5349_p8 = por %p5348_p7, %p5347_p6 }
  0x14   :  { %p5350_p9 = pnand %p5349_p8, %p5343_p5 }
  0x16   :  { %5353 = shalt.err (!%p5350_p9)
}
  0x17   :  { %70 = dma.hbm_to_vmem [thread:$0]  %s6527_s4, 1024, %s65_s24, [#allocation8], %s5464_s26, %s5464_s26, %s5465_s27  }
  0x18   :  { %s5466_s15 = smov [#allocation10]   ;;  %s5467_s17 = smov [#allocation2]  }
  0x19   :  { %s90_s16 = sshll.u32 %s5466_s15, 4  ;;  %s26_s18 = sshll.u32 %s5467_s17, 4  ;;  %s91_s16 = int_to_ptr.vmem [resolvable:$true] %s90_s16  ;;  %s27_s18 = int_to_ptr.vmem [resolvable:$true] %s26_s18 }
  0x1a   :  { %s5362_s1 = scalar_lea.vmem %s91_s16, 512  ;;  %p5367_p11 = scmp.lt.s32.totalorder %s91_s16, %s91_s16 }
  0x1b   :  { %p5363_p10 = scmp.ne.s32.totalorder %s91_s16, %s5362_s1  ;;  %p5368_p12 = scmp.lt.s32.totalorder %s5362_s1, %s5362_s1 }
  0x1d   :  { %p5369_p13 = por %p5368_p12, %p5367_p11 }
  0x1f   :  { %p5370_p0 = pnand %p5369_p13, %p5363_p10 }
  0x21   :  { %5373 = shalt.err (!%p5370_p0)
}
  0x22   :  { %96 = dma.hbm_to_vmem [thread:$0]  %s6530_s7, 512, %s91_s16, [#allocation11], %s5464_s26, %s5464_s26, %s5465_s27  }
  0x23   :  { %s5382_s4 = scalar_lea.vmem %s27_s18, 256  ;;  %p5387_p2 = scmp.lt.s32.totalorder %s27_s18, %s27_s18 }
  0x24   :  { %p5383_p1 = scmp.ne.s32.totalorder %s27_s18, %s5382_s4  ;;  %p5388_p3 = scmp.lt.s32.totalorder %s5382_s4, %s5382_s4 }
  0x26   :  { %p5389_p4 = por %p5388_p3, %p5387_p2 }
  0x28   :  { %p5390_p5 = pnand %p5389_p4, %p5383_p1 }
  0x2a   :  { %5393 = shalt.err (!%p5390_p5)
}
  0x2b   :  { %32 = dma.hbm_to_vmem [thread:$0]  %s6523_s0, 256, %s27_s18, [#allocation3], %s5464_s26, %s5464_s26, %s5465_s27  }
  0x2c   :  { %s5468_s23 = smov [#allocation6]   ;;  %s5469_s25 = smov [#allocation9]  }
  0x2d   :  { %s52_s24 = sshll.u32 %s5468_s23, 4  ;;  %s78_s28 = sshll.u32 %s5469_s25, 4  ;;  %s53_s24 = int_to_ptr.vmem [resolvable:$true] %s52_s24  ;;  %s79_s28 = int_to_ptr.vmem [resolvable:$true] %s78_s28 }
  0x2e   :  { %s5402_s7 = scalar_lea.vmem %s53_s24, 512  ;;  %p5407_p7 = scmp.lt.s32.totalorder %s53_s24, %s53_s24 }
  0x2f   :  { %p5403_p6 = scmp.ne.s32.totalorder %s53_s24, %s5402_s7  ;;  %p5408_p8 = scmp.lt.s32.totalorder %s5402_s7, %s5402_s7 }
  0x31   :  { %p5409_p9 = por %p5408_p8, %p5407_p7 }
  0x33   :  { %p5410_p10 = pnand %p5409_p9, %p5403_p6 }
  0x35   :  { %5413 = shalt.err (!%p5410_p10)
}
  0x36   :  { %58 = dma.hbm_to_vmem [thread:$0]  %s6526_s3, 512, %s53_s24, [#allocation5], %s5464_s26, %s5464_s26, %s5465_s27  }
  0x37   :  { %s5422_s0 = scalar_lea.vmem %s79_s28, 512  ;;  %p5427_p12 = scmp.lt.s32.totalorder %s79_s28, %s79_s28 }
  0x38   :  { %p5423_p11 = scmp.ne.s32.totalorder %s79_s28, %s5422_s0  ;;  %p5428_p13 = scmp.lt.s32.totalorder %s5422_s0, %s5422_s0 }
  0x3a   :  { %p5429_p0 = por %p5428_p13, %p5427_p12 }
  0x3c   :  { %p5430_p1 = pnand %p5429_p0, %p5423_p11 }
  0x3e   :  { %5433 = shalt.err (!%p5430_p1)
}
  0x3f   :  { %84 = dma.hbm_to_vmem [thread:$0]  %s6529_s6, 512, %s79_s28, [#allocation8], %s5464_s26, %s5464_s26, %s5465_s27  }
  0x40   :  { %s5470_s15 = smov [#allocation12]  }
  0x41   :  { %s106_s16 = sshll.u32 %s5470_s15, 4  ;;  %s107_s16 = int_to_ptr.vmem [resolvable:$true] %s106_s16 }
  0x42   :  { %s5442_s17 = scalar_lea.vmem %s107_s16, 512  ;;  %p5447_p3 = scmp.lt.s32.totalorder %s107_s16, %s107_s16 }
  0x43   :  { %p5443_p2 = scmp.ne.s32.totalorder %s107_s16, %s5442_s17  ;;  %p5448_p4 = scmp.lt.s32.totalorder %s5442_s17, %s5442_s17 }
  0x45   :  { %p5449_p5 = por %p5448_p4, %p5447_p3 }
  0x47   :  { %p5450_p6 = pnand %p5449_p5, %p5443_p2 }
  0x49   :  { %5453 = shalt.err (!%p5450_p6)
}
  0x4a   :  { %112 = dma.hbm_to_vmem [thread:$0]  %s6533_s10, 512, %s107_s16, [#allocation11], %s5464_s26, %s5464_s26, %s5465_s27  }
  0x4b   :  { %5454 = dma.done.wait [#allocation3], 256  }
  0x4c   :  { %5455 = vsyncadd [#allocation3], 4294967040 }
  0x4d   :  { %5456 = dma.done.wait [#allocation5], 1152  }
  0x4e   :  { %5457 = vsyncadd [#allocation5], 4294966144 }
  0x4f   :  { %5458 = dma.done.wait [#allocation8], 1536  }
  0x50   :  { %5459 = vsyncadd [#allocation8], 4294965760 }
  0x51   :  { %5460 = dma.done.wait [#allocation11], 1024  }
  0x52   :  { %5461 = vsyncadd [#allocation11], 4294966272  ;;  %v5471_v0 = vmov 0.0   ;;  %vm5472_vm0 = vmmov 0   ;;  %vm157_vm1 = vcmask 1041408   ;;  %v5586_v2 = vld [vmem:[#allocation6 + $0x18] sm:$0xff] }
  0x53   :  { %4555 = vmatprep.subr.mxu1 %v5471_v0  ;;  %4563 = vmatprep.mubr.msk.f32.mxu1 %vm5472_vm0, %v5471_v0  ;;  %v142_v1 = vld [vmem:[#allocation4 + $0x20] sm:$0x3]  ;;  %v141_v3 = vld [vmem:[#allocation4 + $0x18] sm:$0xff]  ;;  %v140_v5 = vld [vmem:[#allocation4 + $0x10] sm:$0xff]  ;;  %vm150_vm2 = vcmask 277504   ;;  %s5473_s26 = smov 64  }
  0x54   :  { %4542 = vmatprep.subr.msk.mxu0 %vm157_vm1, %v142_v1  ;;  %4556 = vmatpush3.msra.mxu1 %v5586_v2  ;;  %v5589_v4 = vld [vmem:[#allocation6 + $0x10] sm:$0xff]  ;;  %v5592_v6 = vld [vmem:[#allocation6 + $0x8] sm:$0xff]  ;;  %v139_v7 = vld [vmem:[#allocation4 + $0x8] sm:$0xff]  ;;  %vm386_vm3 = vcmask 1041409   ;;  %vm255_vm4 = vcmask 261120   ;;  %vm392_vm5 = vcmask 523264  }
  0x55   :  { %4543 = vmatpush3.msk.msra.mxu0 %vm157_vm1, %v142_v1  ;;  %4557 = vmatprep.subr.mxu1 %v5471_v0  ;;  %v5596_v8 = vld [vmem:[#allocation6] sm:$0xff]  ;;  %v138_v9 = vld [vmem:[#allocation4] sm:$0xff]  ;;  %v136_v10 = vld [vmem:[#allocation2] sm:$0xff]  ;;  %vm625_vm6 = vcmask 1042434   ;;  %vm874_vm7 = vcmask 1043459   ;;  %vm1124_vm8 = vcmask 1044484  }
  0x56   :  { %4544 = vmatprep.subr.mxu0 %v141_v3  ;;  %4558 = vmatpush3.msra.mxu1 %v5589_v4  ;;  %v137_v11 = vld [vmem:[#allocation2 + $0x8] sm:$0xff]  ;;  %v4246_v13 = vld [vmem:[%s6525_s2] ss:$0 sm:$0xff]  ;;  %s5474_s2 = smov 32   ;;  %v5635_v42 = vld [vmem:[#allocation7 + $0x38] sm:$0xff]  ;;  %vm1374_vm9 = vcmask 1045509  }
  0x57   :  { %4545 = vmatpush3.msra.mxu0 %v141_v3  ;;  %4559 = vmatprep.subr.mxu1 %v5471_v0  ;;  %v5637_v43 = vld [vmem:[#allocation7 + $0x30] sm:$0xff]  ;;  %v5641_v44 = vld [vmem:[#allocation7 + $0x28] sm:$0xff]  ;;  %v5645_v45 = vld [vmem:[#allocation7 + $0x20] sm:$0xff]  ;;  %vm1624_vm10 = vcmask 1046534   ;;  %vm1874_vm11 = vcmask 1047559   ;;  %vm2139_vm12 = vcmask 1040384  }
  0x58   :  { %4546 = vmatprep.subr.mxu0 %v140_v5  ;;  %4560 = vmatpush3.msra.mxu1 %v5592_v6  ;;  %v5650_v47 = vld [vmem:[#allocation7 + $0x18] sm:$0xff]  ;;  %v5654_v48 = vld [vmem:[#allocation7 + $0x10] sm:$0xff]  ;;  %v5659_v50 = vld [vmem:[#allocation7 + $0x8] sm:$0xff]  ;;  %vm2471_vm13 = vcmask 270336  }
  0x59   :  { %4547 = vmatpush3.msra.mxu0 %v140_v5  ;;  %4561 = vmatprep.subr.mxu1 %v5471_v0  ;;  %v5665_v51 = vld [vmem:[#allocation7] sm:$0xff]  ;;  %v5707_v5 = vld [vmem:[%s6528_s5] ss:$0 sm:$0xff] }
  0x5a   :  { %4548 = vmatprep.subr.mxu0 %v139_v7  ;;  %4562 = vmatpush3.msra.mxu1 %v5596_v8 }
  0x5b   :  { %4549 = vmatpush3.msra.mxu0 %v139_v7  ;;  %4564 = vmatmul.mubr.f32.vlgmr.msra.gmra.mxu1 %v5471_v0 }
  0x5c   :  { %4550 = vmatprep.subr.mxu0 %v138_v9  ;;  %4552 = vmatprep.mubr.msk.f32.mxu0 %vm150_vm2, %v136_v10 }
  0x5d   :  { %4551 = vmatpush3.msra.mxu0 %v138_v9  ;;  %4566 = vmatprep.subr.mxu1 %v5471_v0 }
  0x5e   :  { %4553 = vmatmul.mubr.msk.f32.vlgmr.msra.gmra.mxu0 %vm150_vm2, %v137_v11  ;;  %4585 = vmatprep.subr.mxu0 %v5471_v0 }
  0x5f   :  { %4586 = vmatpush3.msra.mxu0 %v5586_v2  ;;  %4593 = vmatprep.mubr.msk.f32.mxu0 %vm5472_vm0, %v5471_v0 }
  0x60   :  { %4587 = vmatprep.subr.mxu0 %v5471_v0  ;;  %4582 = vmatprep.mubr.msk.f32.mxu1 %vm5472_vm0, %v5471_v0 }
  0x61   :  { %4588 = vmatpush3.msra.mxu0 %v5589_v4  ;;  %4567 = vmatpush3.msra.mxu1 %v5635_v42 }
  0x62   :  { %4589 = vmatprep.subr.mxu0 %v5471_v0  ;;  %4568 = vmatprep.subr.mxu1 %v5471_v0 }
  0x63   :  { %4590 = vmatpush3.msra.mxu0 %v5592_v6  ;;  %4569 = vmatpush3.msra.mxu1 %v5637_v43 }
  0x64   :  { %4591 = vmatprep.subr.mxu0 %v5471_v0  ;;  %4570 = vmatprep.subr.mxu1 %v5471_v0 }
  0x65   :  { %4592 = vmatpush3.msra.mxu0 %v5596_v8  ;;  %4571 = vmatpush3.msra.mxu1 %v5641_v44 }
  0x66   :  { %4596 = vmatprep.subr.mxu0 %v5471_v0  ;;  %4572 = vmatprep.subr.mxu1 %v5471_v0 }
  0x67   :  { %4573 = vmatpush3.msra.mxu1 %v5645_v45 }
  0x68   :  { %4574 = vmatprep.subr.mxu1 %v5471_v0 }
  0x69   :  { %4575 = vmatpush3.msra.mxu1 %v5650_v47 }
  0x6a   :  { %4576 = vmatprep.subr.mxu1 %v5471_v0 }
  0x6b   :  { %4577 = vmatpush3.msra.mxu1 %v5654_v48 }
  0x6c   :  { %4578 = vmatprep.subr.mxu1 %v5471_v0 }
  0x6d   :  { %4579 = vmatpush3.msra.mxu1 %v5659_v50 }
  0x6e   :  { %4580 = vmatprep.subr.mxu1 %v5471_v0 }
  0x6f   :  { %4581 = vmatpush3.msra.mxu1 %v5665_v51 }
  0x70   :  { %4615 = vmatprep.subr.mxu1 %v5471_v0 }
 0x11b   :  { %v325_v12 = vpop.f32.mrf.mxu1 }
 0x11c   :  { %v330_v14 = vrot.slane %v325_v12, 1 }
 0x11d   :  { %v4565_v15 = vpop.f32.mrf.mxu1 }
 0x11e   :  { %v4554_v16 = vpop.f32.mrf.mxu0 }
 0x11f   :  { %v5619_v17 = vadd.f32 %v4554_v16, %v4246_v13 }
 0x120   :  { %v227_v18 = vpop.f32.mrf.mxu0 }
 0x121   :  { %v5621_v19 = vadd.f32 %v4246_v13, %v227_v18  ;;  %v334_v20 = vadd.f32 %v330_v14, %v5619_v17 }
 0x123   :  { %v333_v21 = vadd.f32 %v325_v12, %v5621_v19  ;;  %5029 = vtanh.f32 %v334_v20  ;;  %v4252_v24 = vmul.f32 -1.442695, %v334_v20 }
 0x125   :  { %5031 = vtanh.f32 %v333_v21  ;;  %v4251_v25 = vmul.f32 -1.442695, %v333_v21 }
 0x126   :  { %5033 = vpow2.f32 %v4252_v24 }
 0x127   :  { %5035 = vpow2.f32 %v4251_v25 }
 0x130   :  { %v5030_v22 = vpop.eup %5029 }
 0x131   :  { %355 = vrot.lane.b32.xlu0 %v5030_v22, %s5473_s26 }
 0x132   :  { %v5032_v23 = vpop.eup %5031 }
 0x133   :  { %v5034_v26 = vpop.eup %5033 }
 0x134   :  { %v342_v27 = vadd.f32 1.0, %v5034_v26  ;;  %v5036_v28 = vpop.eup %5035 }
 0x135   :  { %353 = vrot.lane.b32.xlu0 %v5032_v23, %s5473_s26  ;;  %v341_v29 = vadd.f32 1.0, %v5036_v28 }
 0x136   :  { %5037 = vrcp.f32 %v342_v27 }
 0x137   :  { %5039 = vrcp.f32 %v341_v29 }
 0x143   :  { %v5038_v30 = vpop.eup %5037 }
 0x144   :  { %v5040_v33 = vpop.eup %5039  ;;  %v350_v36 = vmul.f32 0.0, %v5038_v30 }
 0x145   :  { %v349_v39 = vmul.f32 0.0, %v5040_v33 }
 0x1a3   :  { %v356_v31 = vpop.permute.xlu0 %355 }
 0x1a4   :  { %v360_v32 = vmul.f32 %v5038_v30, %v356_v31 }
 0x1a6   :  { %365 = vrot.lane.b32.xlu1 %v360_v32, %s5474_s2 }
 0x1a7   :  { %v354_v34 = vpop.permute.xlu0 %353 }
 0x1a8   :  { %v359_v35 = vmul.f32 %v5040_v33, %v354_v34 }
 0x1aa   :  { %363 = vrot.lane.b32.xlu1 %v359_v35, %s5474_s2 }
 0x218   :  { %v366_v37 = vpop.permute.xlu1 %365 }
 0x219   :  { %v5629_v38 = vadd.f32 %v366_v37, %v350_v36 }
 0x21b   :  { %5041 = vtanh.f32 %v5629_v38 }
 0x21c   :  { %v364_v40 = vpop.permute.xlu1 %363 }
 0x21d   :  { %v5632_v41 = vadd.f32 %v364_v40, %v349_v39 }
 0x21f   :  { %5043 = vtanh.f32 %v5632_v41  ;;  %v584_v35 = vrot.slane %v5632_v41, 7 }
 0x228   :  { %v5042_v46 = vpop.eup %5041 }
 0x229   :  { %377 = vrot.lane.b32.xlu0 %v5042_v46, %s5473_s26 }
 0x22c   :  { %v5044_v49 = vpop.eup %5043 }
 0x22d   :  { %375 = vrot.lane.b32.xlu1 %v5044_v49, %s5473_s26 }
 0x29b   :  { %v378_v52 = vpop.permute.xlu0 %377 }
 0x29c   :  { %v382_v53 = vmul.f32 %v5038_v30, %v378_v52 }
 0x29e   :  { %v385_v55 = vrot.slane %v382_v53, 7 }
 0x29f   :  { %v376_v54 = vpop.permute.xlu1 %375 }
 0x2a0   :  { %v381_v56 = vmul.f32 %v5040_v33, %v376_v54  ;;  %v585_v33 = vrot.slane %v5629_v38, 7 }
 0x2a2   :  { %v387_v57 = vsel %vm386_vm3, %v385_v55, %v381_v56 }
 0x2a3   :  { %388 = vrot.lane.b32.xlu0 %v387_v57, %s5474_s2 }
 0x315   :  { %v389_v58 = vpop.permute.xlu0 %388 }
 0x316   :  { %v391_v59 = vsel %vm255_vm4, %v389_v58, 0.0  ;;  %4594 = vmatmul.mubr.msk.f32.vlgmr.msra.gmra.mxu0 %vm255_vm4, %v389_v58 }
 0x317   :  { %4583 = vmatmul.mubr.msk.f32.vlgmr.msra.gmra.mxu1 %vm392_vm5, %v391_v59  ;;  %4597 = vmatpush3.msra.mxu0 %v5635_v42 }
 0x318   :  { %4598 = vmatprep.subr.mxu0 %v5471_v0  ;;  %4616 = vmatpush3.msra.mxu1 %v5586_v2 }
 0x319   :  { %4599 = vmatpush3.msra.mxu0 %v5637_v43  ;;  %4617 = vmatprep.subr.mxu1 %v5471_v0 }
 0x31a   :  { %4600 = vmatprep.subr.mxu0 %v5471_v0  ;;  %4618 = vmatpush3.msra.mxu1 %v5589_v4 }
 0x31b   :  { %4601 = vmatpush3.msra.mxu0 %v5641_v44  ;;  %4619 = vmatprep.subr.mxu1 %v5471_v0 }
 0x31c   :  { %4602 = vmatprep.subr.mxu0 %v5471_v0  ;;  %4620 = vmatpush3.msra.mxu1 %v5592_v6 }
 0x31d   :  { %4603 = vmatpush3.msra.mxu0 %v5645_v45  ;;  %4621 = vmatprep.subr.mxu1 %v5471_v0 }
 0x31e   :  { %4604 = vmatprep.subr.mxu0 %v5471_v0  ;;  %4622 = vmatpush3.msra.mxu1 %v5596_v8 }
 0x31f   :  { %4605 = vmatpush3.msra.mxu0 %v5650_v47  ;;  %4623 = vmatprep.mubr.msk.f32.mxu1 %vm5472_vm0, %v5471_v0 }
 0x320   :  { %4606 = vmatprep.subr.mxu0 %v5471_v0  ;;  %4612 = vmatprep.mubr.msk.f32.mxu0 %vm5472_vm0, %v5471_v0 }
 0x321   :  { %4607 = vmatpush3.msra.mxu0 %v5654_v48  ;;  %4626 = vmatprep.subr.mxu1 %v5471_v0 }
 0x322   :  { %4608 = vmatprep.subr.mxu0 %v5471_v0 }
 0x323   :  { %4609 = vmatpush3.msra.mxu0 %v5659_v50 }
 0x324   :  { %4610 = vmatprep.subr.mxu0 %v5471_v0 }
 0x325   :  { %4611 = vmatpush3.msra.mxu0 %v5665_v51 }
 0x326   :  { %4645 = vmatprep.subr.mxu0 %v5471_v0 }
 0x3d6   :  { %v558_v60 = vpop.f32.mrf.mxu0 }
 0x3d7   :  { %v563_v61 = vrot.slane %v558_v60, 7  ;;  %v567_v62 = vadd.f32 %v558_v60, %v5619_v17  ;;  %v462_v63 = vpop.f32.mrf.mxu1 }
 0x3d8   :  { %v4595_v1 = vpop.f32.mrf.mxu0  ;;  %v463_v9 = vadd.f32 %v5707_v5, %v462_v63 }
 0x3d9   :  { %v566_v3 = vadd.f32 %v563_v61, %v5621_v19  ;;  %5045 = vtanh.f32 %v567_v62  ;;  %v4584_v7 = vpop.f32.mrf.mxu1  ;;  %v4257_v13 = vmul.f32 -1.442695, %v567_v62 }
 0x3da   :  { %v4254_v15 = vmul.f32 -1.442695, %v463_v9 }
 0x3db   :  { %5047 = vtanh.f32 %v566_v3  ;;  %v4256_v14 = vmul.f32 -1.442695, %v566_v3 }
 0x3dc   :  { %5049 = vtanh.f32 %v463_v9 }
 0x3dd   :  { %5051 = vpow2.f32 %v4257_v13 }
 0x3de   :  { %5053 = vpow2.f32 %v4256_v14 }
 0x3df   :  { %5055 = vpow2.f32 %v4254_v15 }
 0x3e6   :  { %v5046_v10 = vpop.eup %5045 }
 0x3e7   :  { %594 = vrot.lane.b32.xlu0 %v5046_v10, %s5473_s26 }
 0x3e8   :  { %v5048_v11 = vpop.eup %5047 }
 0x3e9   :  { %592 = vrot.lane.b32.xlu1 %v5048_v11, %s5473_s26  ;;  %v5050_v12 = vpop.eup %5049 }
 0x3ea   :  { %v5052_v16 = vpop.eup %5051 }
 0x3eb   :  { %v5054_v18 = vpop.eup %5053  ;;  %v575_v20 = vadd.f32 1.0, %v5052_v16 }
 0x3ec   :  { %v574_v21 = vadd.f32 1.0, %v5054_v18  ;;  %v5056_v22 = vpop.eup %5055 }
 0x3ed   :  { %475 = vrot.lane.b32.xlu1 %v5050_v12, %s5473_s26  ;;  %5057 = vrcp.f32 %v575_v20  ;;  %v469_v23 = vadd.f32 1.0, %v5056_v22 }
 0x3ee   :  { %5059 = vrcp.f32 %v574_v21 }
 0x3ef   :  { %5061 = vrcp.f32 %v469_v23 }
 0x3fa   :  { %v5058_v24 = vpop.eup %5057 }
 0x3fb   :  { %v5060_v27 = vpop.eup %5059  ;;  %v589_v34 = vmul.f32 %v5058_v24, %v585_v33 }
 0x3fc   :  { %v5062_v30 = vpop.eup %5061  ;;  %v588_v39 = vmul.f32 %v5060_v27, %v584_v35 }
 0x3fd   :  { %v473_v49 = vmul.f32 0.0, %v5062_v30 }
 0x459   :  { %v595_v25 = vpop.permute.xlu0 %594 }
 0x45a   :  { %v599_v26 = vmul.f32 %v5058_v24, %v595_v25 }
 0x45b   :  { %v593_v28 = vpop.permute.xlu1 %592 }
 0x45c   :  { %604 = vrot.lane.b32.xlu1 %v599_v26, %s5474_s2  ;;  %v598_v29 = vmul.f32 %v5060_v27, %v593_v28 }
 0x45e   :  { %602 = vrot.lane.b32.xlu0 %v598_v29, %s5474_s2 }
 0x45f   :  { %v476_v31 = vpop.permute.xlu1 %475 }
 0x460   :  { %v478_v32 = vmul.f32 %v5062_v30, %v476_v31 }
 0x462   :  { %480 = vrot.lane.b32.xlu0 %v478_v32, %s5474_s2 }
 0x4ce   :  { %v605_v36 = vpop.permute.xlu1 %604 }
 0x4cf   :  { %v5718_v37 = vadd.f32 %v605_v36, %v589_v34 }
 0x4d0   :  { %v603_v40 = vpop.permute.xlu0 %602 }
 0x4d1   :  { %5063 = vtanh.f32 %v5718_v37  ;;  %v5721_v46 = vadd.f32 %v603_v40, %v588_v39 }
 0x4d3   :  { %5065 = vtanh.f32 %v5721_v46 }
 0x4d4   :  { %v481_v52 = vpop.permute.xlu0 %480 }
 0x4d5   :  { %v5724_v53 = vadd.f32 %v481_v52, %v473_v49 }
 0x4d7   :  { %5067 = vtanh.f32 %v5724_v53 }
 0x4de   :  { %v5064_v38 = vpop.eup %5063 }
 0x4df   :  { %616 = vrot.lane.b32.xlu0 %v5064_v38, %s5473_s26 }
 0x4e0   :  { %v5066_v41 = vpop.eup %5065 }
 0x4e1   :  { %614 = vrot.lane.b32.xlu1 %v5066_v41, %s5473_s26 }
 0x4e4   :  { %v5068_v54 = vpop.eup %5067 }
 0x4e5   :  { %486 = vrot.lane.b32.xlu1 %v5068_v54, %s5473_s26 }
 0x551   :  { %v617_v55 = vpop.permute.xlu0 %616 }
 0x552   :  { %v621_v56 = vmul.f32 %v5058_v24, %v617_v55 }
 0x553   :  { %v615_v58 = vpop.permute.xlu1 %614 }
 0x554   :  { %v624_v57 = vrot.slane %v621_v56, 7  ;;  %v620_v59 = vmul.f32 %v5060_v27, %v615_v58 }
 0x556   :  { %v734_v60 = vrot.slane %v620_v59, 1  ;;  %v626_v61 = vsel %vm625_vm6, %v624_v57, %v620_v59  ;;  %v834_v57 = vrot.slane %v5718_v37, 7 }
 0x557   :  { %627 = vrot.lane.b32.xlu0 %v626_v61, %s5474_s2  ;;  %v487_v62 = vpop.permute.xlu1 %486 }
 0x558   :  { %v489_v63 = vmul.f32 %v5062_v30, %v487_v62  ;;  %v735_v3 = vsel %vm386_vm3, %v621_v56, %v734_v60  ;;  %v833_v56 = vrot.slane %v5721_v46, 7 }
 0x55a   :  { %v631_v1 = vrot.slane %v489_v63, 7 }
 0x55b   :  { %736 = vrot.lane.b32.xlu0 %v735_v3, %s5474_s2 }
 0x55c   :  { %632 = vrot.lane.b32.xlu1 %v631_v1, %s5473_s26 }
 0x5c9   :  { %v628_v7 = vpop.permute.xlu0 %627 }
 0x5cd   :  { %v737_v9 = vpop.permute.xlu0 %736 }
 0x5ce   :  { %4624 = vmatmul.mubr.msk.f32.vlgmr.msra.gmra.mxu1 %vm255_vm4, %v737_v9  ;;  %v633_v10 = vpop.permute.xlu1 %632 }
 0x5cf   :  { %v635_v11 = vsel %vm255_vm4, %v628_v7, %v633_v10  ;;  %4627 = vmatpush3.msra.mxu1 %v5635_v42  ;;  %4642 = vmatprep.mubr.msk.f32.mxu1 %vm5472_vm0, %v5471_v0 }
 0x5d0   :  { %v637_v12 = vrot.slane %v635_v11, 1  ;;  %4628 = vmatprep.subr.mxu1 %v5471_v0 }
 0x5d1   :  { %4629 = vmatpush3.msra.mxu1 %v5637_v43 }
 0x5d2   :  { %4613 = vmatmul.mubr.msk.f32.vlgmr.msra.gmra.mxu0 %vm392_vm5, %v637_v12  ;;  %4630 = vmatprep.subr.mxu1 %v5471_v0 }
 0x5d3   :  { %4631 = vmatpush3.msra.mxu1 %v5641_v44  ;;  %4646 = vmatpush3.msra.mxu0 %v5586_v2 }
 0x5d4   :  { %4632 = vmatprep.subr.mxu1 %v5471_v0  ;;  %4647 = vmatprep.subr.mxu0 %v5471_v0 }
 0x5d5   :  { %4633 = vmatpush3.msra.mxu1 %v5645_v45  ;;  %4648 = vmatpush3.msra.mxu0 %v5589_v4 }
 0x5d6   :  { %4634 = vmatprep.subr.mxu1 %v5471_v0  ;;  %4649 = vmatprep.subr.mxu0 %v5471_v0 }
 0x5d7   :  { %4635 = vmatpush3.msra.mxu1 %v5650_v47  ;;  %4650 = vmatpush3.msra.mxu0 %v5592_v6 }
 0x5d8   :  { %4636 = vmatprep.subr.mxu1 %v5471_v0  ;;  %4651 = vmatprep.subr.mxu0 %v5471_v0 }
 0x5d9   :  { %4637 = vmatpush3.msra.mxu1 %v5654_v48  ;;  %4652 = vmatpush3.msra.mxu0 %v5596_v8 }
 0x5da   :  { %4638 = vmatprep.subr.mxu1 %v5471_v0  ;;  %4653 = vmatprep.mubr.msk.f32.mxu0 %vm5472_vm0, %v5471_v0 }
 0x5db   :  { %4639 = vmatpush3.msra.mxu1 %v5659_v50  ;;  %4656 = vmatprep.subr.mxu0 %v5471_v0 }
 0x5dc   :  { %4640 = vmatprep.subr.mxu1 %v5471_v0 }
 0x5dd   :  { %4641 = vmatpush3.msra.mxu1 %v5665_v51 }
 0x5de   :  { %4675 = vmatprep.subr.mxu1 %v5471_v0 }
 0x68e   :  { %v806_v13 = vpop.f32.mrf.mxu1 }
 0x68f   :  { %v811_v14 = vrot.slane %v806_v13, 6  ;;  %v812_v15 = vrot.slane %v806_v13, 7 }
 0x690   :  { %v4625_v16 = vpop.f32.mrf.mxu1 }
 0x691   :  { %v815_v18 = vadd.f32 %v811_v14, %v5621_v19  ;;  %v816_v20 = vadd.f32 %v812_v15, %v5619_v17 }
 0x692   :  { %v706_v21 = vpop.f32.mrf.mxu0 }
 0x693   :  { %5069 = vtanh.f32 %v815_v18  ;;  %v707_v22 = vadd.f32 %v5707_v5, %v706_v21  ;;  %v4261_v27 = vmul.f32 -1.442695, %v815_v18  ;;  %v4262_v28 = vmul.f32 -1.442695, %v816_v20 }
 0x694   :  { %5071 = vtanh.f32 %v816_v20  ;;  %v4614_v23 = vpop.f32.mrf.mxu0 }
 0x695   :  { %5073 = vtanh.f32 %v707_v22  ;;  %v4259_v29 = vmul.f32 -1.442695, %v707_v22 }
 0x696   :  { %5075 = vpow2.f32 %v4261_v27 }
 0x697   :  { %5077 = vpow2.f32 %v4262_v28 }
 0x698   :  { %5079 = vpow2.f32 %v4259_v29 }
 0x6a0   :  { %v5070_v24 = vpop.eup %5069 }
 0x6a1   :  { %v5072_v25 = vpop.eup %5071  ;;  %841 = vrot.lane.b32.xlu1 %v5070_v24, %s5473_s26 }
 0x6a2   :  { %843 = vrot.lane.b32.xlu0 %v5072_v25, %s5473_s26  ;;  %v5074_v26 = vpop.eup %5073 }
 0x6a3   :  { %v5076_v30 = vpop.eup %5075 }
 0x6a4   :  { %v5078_v31 = vpop.eup %5077  ;;  %v823_v32 = vadd.f32 1.0, %v5076_v30 }
 0x6a5   :  { %719 = vrot.lane.b32.xlu1 %v5074_v26, %s5473_s26  ;;  %v824_v33 = vadd.f32 1.0, %v5078_v31  ;;  %v5080_v34 = vpop.eup %5079 }
 0x6a6   :  { %5081 = vrcp.f32 %v823_v32  ;;  %v713_v35 = vadd.f32 1.0, %v5080_v34 }
 0x6a7   :  { %5083 = vrcp.f32 %v824_v33 }
 0x6a8   :  { %5085 = vrcp.f32 %v713_v35 }
 0x6b3   :  { %v5082_v36 = vpop.eup %5081 }
 0x6b4   :  { %v5084_v40 = vpop.eup %5083  ;;  %v837_v58 = vmul.f32 %v5082_v36, %v833_v56 }
 0x6b5   :  { %v5086_v41 = vpop.eup %5085  ;;  %v838_v59 = vmul.f32 %v5084_v40, %v834_v57 }
 0x6b6   :  { %v717_v1 = vmul.f32 %v5086_v41, %v5724_v53 }
 0x713   :  { %v842_v39 = vpop.permute.xlu1 %841 }
 0x714   :  { %v844_v49 = vpop.permute.xlu0 %843  ;;  %v847_v52 = vmul.f32 %v5082_v36, %v842_v39 }
 0x715   :  { %v848_v38 = vmul.f32 %v5084_v40, %v844_v49 }
 0x716   :  { %851 = vrot.lane.b32.xlu0 %v847_v52, %s5474_s2 }
 0x717   :  { %853 = vrot.lane.b32.xlu1 %v848_v38, %s5474_s2  ;;  %v720_v54 = vpop.permute.xlu1 %719 }
 0x718   :  { %v722_v55 = vmul.f32 %v5086_v41, %v720_v54 }
 0x71a   :  { %724 = vrot.lane.b32.xlu0 %v722_v55, %s5474_s2 }
 0x788   :  { %v852_v60 = vpop.permute.xlu0 %851 }
 0x789   :  { %v854_v61 = vpop.permute.xlu1 %853  ;;  %v5776_v62 = vadd.f32 %v852_v60, %v837_v58 }
 0x78a   :  { %v5778_v63 = vadd.f32 %v854_v61, %v838_v59 }
 0x78b   :  { %5087 = vtanh.f32 %v5776_v62 }
 0x78c   :  { %5089 = vtanh.f32 %v5778_v63  ;;  %v725_v3 = vpop.permute.xlu0 %724 }
 0x78d   :  { %v5783_v7 = vadd.f32 %v725_v3, %v717_v1 }
 0x78f   :  { %5091 = vtanh.f32 %v5783_v7 }
 0x798   :  { %v5088_v37 = vpop.eup %5087 }
 0x799   :  { %v5090_v46 = vpop.eup %5089  ;;  %863 = vrot.lane.b32.xlu1 %v5088_v37, %s5473_s26 }
 0x79a   :  { %865 = vrot.lane.b32.xlu0 %v5090_v46, %s5473_s26 }
 0x79c   :  { %v5092_v9 = vpop.eup %5091 }
 0x79d   :  { %730 = vrot.lane.b32.xlu1 %v5092_v9, %s5473_s26 }
 0x80b   :  { %v864_v10 = vpop.permute.xlu1 %863 }
 0x80c   :  { %v866_v11 = vpop.permute.xlu0 %865  ;;  %v869_v13 = vmul.f32 %v5082_v36, %v864_v10 }
 0x80d   :  { %v870_v12 = vmul.f32 %v5084_v40, %v866_v11 }
 0x80e   :  { %v983_v16 = vrot.slane %v869_v13, 2 }
 0x80f   :  { %v873_v53 = vrot.slane %v870_v12, 7  ;;  %v731_v14 = vpop.permute.xlu1 %730  ;;  %v984_v15 = vrot.slane %v870_v12, 1  ;;  %v1083_v12 = vrot.slane %v5776_v62, 7 }
 0x810   :  { %v733_v18 = vmul.f32 %v5086_v41, %v731_v14 }
 0x811   :  { %v875_v20 = vsel %vm874_vm7, %v873_v53, %v869_v13  ;;  %v985_v22 = vsel %vm386_vm3, %v984_v15, %v983_v16  ;;  %v1084_v13 = vrot.slane %v5778_v63, 7 }
 0x812   :  { %876 = vrot.lane.b32.xlu0 %v875_v20, %s5474_s2  ;;  %v880_v21 = vrot.slane %v733_v18, 6 }
 0x814   :  { %881 = vrot.lane.b32.xlu1 %v880_v21, %s5473_s26 }
 0x816   :  { %986 = vrot.lane.b32.xlu0 %v985_v22, %s5474_s2 }
 0x884   :  { %v877_v23 = vpop.permute.xlu0 %876 }
 0x886   :  { %v882_v24 = vpop.permute.xlu1 %881 }
 0x887   :  { %v884_v25 = vsel %vm255_vm4, %v877_v23, %v882_v24 }
 0x888   :  { %v987_v26 = vpop.permute.xlu0 %986  ;;  %v886_v27 = vrot.slane %v884_v25, 2 }
 0x889   :  { %4654 = vmatmul.mubr.msk.f32.vlgmr.msra.gmra.mxu0 %vm255_vm4, %v987_v26 }
 0x88a   :  { %4657 = vmatpush3.msra.mxu0 %v5635_v42  ;;  %4672 = vmatprep.mubr.msk.f32.mxu0 %vm5472_vm0, %v5471_v0 }
 0x88b   :  { %4643 = vmatmul.mubr.msk.f32.vlgmr.msra.gmra.mxu1 %vm392_vm5, %v886_v27  ;;  %4658 = vmatprep.subr.mxu0 %v5471_v0 }
 0x88c   :  { %4659 = vmatpush3.msra.mxu0 %v5637_v43  ;;  %4676 = vmatpush3.msra.mxu1 %v5586_v2 }
 0x88d   :  { %4660 = vmatprep.subr.mxu0 %v5471_v0  ;;  %4677 = vmatprep.subr.mxu1 %v5471_v0 }
 0x88e   :  { %4661 = vmatpush3.msra.mxu0 %v5641_v44  ;;  %4678 = vmatpush3.msra.mxu1 %v5589_v4 }
 0x88f   :  { %4662 = vmatprep.subr.mxu0 %v5471_v0  ;;  %4679 = vmatprep.subr.mxu1 %v5471_v0 }
 0x890   :  { %4663 = vmatpush3.msra.mxu0 %v5645_v45  ;;  %4680 = vmatpush3.msra.mxu1 %v5592_v6 }
 0x891   :  { %4664 = vmatprep.subr.mxu0 %v5471_v0  ;;  %4681 = vmatprep.subr.mxu1 %v5471_v0 }
 0x892   :  { %4665 = vmatpush3.msra.mxu0 %v5650_v47  ;;  %4682 = vmatpush3.msra.mxu1 %v5596_v8 }
 0x893   :  { %4666 = vmatprep.subr.mxu0 %v5471_v0  ;;  %4683 = vmatprep.mubr.msk.f32.mxu1 %vm5472_vm0, %v5471_v0 }
 0x894   :  { %4667 = vmatpush3.msra.mxu0 %v5654_v48  ;;  %4686 = vmatprep.subr.mxu1 %v5471_v0 }
 0x895   :  { %4668 = vmatprep.subr.mxu0 %v5471_v0 }
 0x896   :  { %4669 = vmatpush3.msra.mxu0 %v5659_v50 }
 0x897   :  { %4670 = vmatprep.subr.mxu0 %v5471_v0 }
 0x898   :  { %4671 = vmatpush3.msra.mxu0 %v5665_v51 }
 0x899   :  { %4705 = vmatprep.subr.mxu0 %v5471_v0 }
 0x949   :  { %v1056_v28 = vpop.f32.mrf.mxu0 }
 0x94a   :  { %v1061_v29 = vrot.slane %v1056_v28, 5  ;;  %v1062_v30 = vrot.slane %v1056_v28, 6 }
 0x94b   :  { %v955_v31 = vpop.f32.mrf.mxu1  ;;  %v4655_v32 = vpop.f32.mrf.mxu0 }
 0x94c   :  { %v1065_v33 = vadd.f32 %v1061_v29, %v5621_v19  ;;  %v1066_v34 = vadd.f32 %v1062_v30, %v5619_v17  ;;  %v956_v36 = vadd.f32 %v5707_v5, %v955_v31 }
 0x94d   :  { %v4644_v35 = vpop.f32.mrf.mxu1 }
 0x94e   :  { %5093 = vtanh.f32 %v1065_v33  ;;  %v4266_v52 = vmul.f32 -1.442695, %v1065_v33  ;;  %v4267_v38 = vmul.f32 -1.442695, %v1066_v34  ;;  %v4264_v41 = vmul.f32 -1.442695, %v956_v36 }
 0x94f   :  { %5095 = vtanh.f32 %v1066_v34 }
 0x950   :  { %5097 = vtanh.f32 %v956_v36 }
 0x951   :  { %5099 = vpow2.f32 %v4266_v52 }
 0x952   :  { %5101 = vpow2.f32 %v4267_v38 }
 0x953   :  { %5103 = vpow2.f32 %v4264_v41 }
 0x95b   :  { %v5094_v39 = vpop.eup %5093 }
 0x95c   :  { %v5096_v40 = vpop.eup %5095  ;;  %1091 = vrot.lane.b32.xlu1 %v5094_v39, %s5473_s26 }
 0x95d   :  { %1093 = vrot.lane.b32.xlu0 %v5096_v40, %s5473_s26  ;;  %v5098_v49 = vpop.eup %5097 }
 0x95e   :  { %v5100_v54 = vpop.eup %5099 }
 0x95f   :  { %v5102_v55 = vpop.eup %5101  ;;  %v1073_v56 = vadd.f32 1.0, %v5100_v54 }
 0x960   :  { %968 = vrot.lane.b32.xlu1 %v5098_v49, %s5473_s26  ;;  %v1074_v57 = vadd.f32 1.0, %v5102_v55  ;;  %v5104_v58 = vpop.eup %5103 }
 0x961   :  { %5105 = vrcp.f32 %v1073_v56  ;;  %v962_v59 = vadd.f32 1.0, %v5104_v58 }
 0x962   :  { %5107 = vrcp.f32 %v1074_v57 }
 0x963   :  { %5109 = vrcp.f32 %v962_v59 }
 0x96e   :  { %v5106_v60 = vpop.eup %5105 }
 0x96f   :  { %v5108_v1 = vpop.eup %5107  ;;  %v1087_v53 = vmul.f32 %v5106_v60, %v1083_v12 }
 0x970   :  { %v5110_v9 = vpop.eup %5109  ;;  %v1088_v15 = vmul.f32 %v5108_v1, %v1084_v13 }
 0x971   :  { %v966_v21 = vmul.f32 %v5110_v9, %v5783_v7 }
 0x9ce   :  { %v1092_v61 = vpop.permute.xlu1 %1091 }
 0x9cf   :  { %v1094_v3 = vpop.permute.xlu0 %1093  ;;  %v1097_v37 = vmul.f32 %v5106_v60, %v1092_v61 }
 0x9d0   :  { %v1098_v46 = vmul.f32 %v5108_v1, %v1094_v3 }
 0x9d1   :  { %1101 = vrot.lane.b32.xlu0 %v1097_v37, %s5474_s2 }
 0x9d2   :  { %1103 = vrot.lane.b32.xlu1 %v1098_v46, %s5474_s2  ;;  %v969_v10 = vpop.permute.xlu1 %968 }
 0x9d3   :  { %v971_v11 = vmul.f32 %v5110_v9, %v969_v10 }
 0x9d5   :  { %973 = vrot.lane.b32.xlu0 %v971_v11, %s5474_s2 }
 0xa43   :  { %v1102_v14 = vpop.permute.xlu0 %1101 }
 0xa44   :  { %v5835_v16 = vadd.f32 %v1102_v14, %v1087_v53  ;;  %v1104_v18 = vpop.permute.xlu1 %1103 }
 0xa45   :  { %v5837_v20 = vadd.f32 %v1104_v18, %v1088_v15 }
 0xa46   :  { %5111 = vtanh.f32 %v5835_v16 }
 0xa47   :  { %5113 = vtanh.f32 %v5837_v20  ;;  %v974_v22 = vpop.permute.xlu0 %973 }
 0xa48   :  { %v5842_v23 = vadd.f32 %v974_v22, %v966_v21 }
 0xa4a   :  { %5115 = vtanh.f32 %v5842_v23 }
 0xa53   :  { %v5112_v62 = vpop.eup %5111 }
 0xa54   :  { %v5114_v63 = vpop.eup %5113  ;;  %1113 = vrot.lane.b32.xlu1 %v5112_v62, %s5473_s26 }
 0xa55   :  { %1115 = vrot.lane.b32.xlu0 %v5114_v63, %s5473_s26  ;;  %v1333_v63 = vrot.slane %v5835_v16, 7 }
 0xa57   :  { %v5116_v24 = vpop.eup %5115 }
 0xa58   :  { %979 = vrot.lane.b32.xlu1 %v5116_v24, %s5473_s26  ;;  %v1334_v24 = vrot.slane %v5837_v20, 7 }
 0xac6   :  { %v1114_v25 = vpop.permute.xlu1 %1113 }
 0xac7   :  { %v1116_v26 = vpop.permute.xlu0 %1115  ;;  %v1119_v27 = vmul.f32 %v5106_v60, %v1114_v25 }
 0xac8   :  { %v1120_v28 = vmul.f32 %v5108_v1, %v1116_v26 }
 0xac9   :  { %v1233_v30 = vrot.slane %v1119_v27, 3 }
 0xaca   :  { %v1123_v7 = vrot.slane %v1120_v28, 7  ;;  %v980_v29 = vpop.permute.xlu1 %979  ;;  %v1234_v31 = vrot.slane %v1120_v28, 2 }
 0xacb   :  { %v982_v32 = vmul.f32 %v5110_v9, %v980_v29 }
 0xacc   :  { %v1125_v33 = vsel %vm1124_vm8, %v1123_v7, %v1119_v27  ;;  %v1235_v35 = vsel %vm386_vm3, %v1234_v31, %v1233_v30 }
 0xacd   :  { %1126 = vrot.lane.b32.xlu0 %v1125_v33, %s5474_s2  ;;  %v1130_v34 = vrot.slane %v982_v32, 5 }
 0xacf   :  { %1131 = vrot.lane.b32.xlu1 %v1130_v34, %s5473_s26 }
 0xad1   :  { %1236 = vrot.lane.b32.xlu0 %v1235_v35, %s5474_s2 }
 0xb3f   :  { %v1127_v36 = vpop.permute.xlu0 %1126 }
 0xb41   :  { %v1132_v39 = vpop.permute.xlu1 %1131 }
 0xb42   :  { %v1134_v40 = vsel %vm255_vm4, %v1127_v36, %v1132_v39 }
 0xb43   :  { %v1237_v49 = vpop.permute.xlu0 %1236  ;;  %v1136_v52 = vrot.slane %v1134_v40, 3 }
 0xb44   :  { %4684 = vmatmul.mubr.msk.f32.vlgmr.msra.gmra.mxu1 %vm255_vm4, %v1237_v49 }
 0xb45   :  { %4687 = vmatpush3.msra.mxu1 %v5635_v42  ;;  %4702 = vmatprep.mubr.msk.f32.mxu1 %vm5472_vm0, %v5471_v0 }
 0xb46   :  { %4673 = vmatmul.mubr.msk.f32.vlgmr.msra.gmra.mxu0 %vm392_vm5, %v1136_v52  ;;  %4688 = vmatprep.subr.mxu1 %v5471_v0 }
 0xb47   :  { %4689 = vmatpush3.msra.mxu1 %v5637_v43  ;;  %4706 = vmatpush3.msra.mxu0 %v5586_v2 }
 0xb48   :  { %4690 = vmatprep.subr.mxu1 %v5471_v0  ;;  %4707 = vmatprep.subr.mxu0 %v5471_v0 }
 0xb49   :  { %4691 = vmatpush3.msra.mxu1 %v5641_v44  ;;  %4708 = vmatpush3.msra.mxu0 %v5589_v4 }
 0xb4a   :  { %4692 = vmatprep.subr.mxu1 %v5471_v0  ;;  %4709 = vmatprep.subr.mxu0 %v5471_v0 }
 0xb4b   :  { %4693 = vmatpush3.msra.mxu1 %v5645_v45  ;;  %4710 = vmatpush3.msra.mxu0 %v5592_v6 }
 0xb4c   :  { %4694 = vmatprep.subr.mxu1 %v5471_v0  ;;  %4711 = vmatprep.subr.mxu0 %v5471_v0 }
 0xb4d   :  { %4695 = vmatpush3.msra.mxu1 %v5650_v47  ;;  %4712 = vmatpush3.msra.mxu0 %v5596_v8 }
 0xb4e   :  { %4696 = vmatprep.subr.mxu1 %v5471_v0  ;;  %4713 = vmatprep.mubr.msk.f32.mxu0 %vm5472_vm0, %v5471_v0 }
 0xb4f   :  { %4697 = vmatpush3.msra.mxu1 %v5654_v48  ;;  %4716 = vmatprep.subr.mxu0 %v5471_v0 }
 0xb50   :  { %4698 = vmatprep.subr.mxu1 %v5471_v0 }
 0xb51   :  { %4699 = vmatpush3.msra.mxu1 %v5659_v50 }
 0xb52   :  { %4700 = vmatprep.subr.mxu1 %v5471_v0 }
 0xb53   :  { %4701 = vmatpush3.msra.mxu1 %v5665_v51 }
 0xb54   :  { %4735 = vmatprep.subr.mxu1 %v5471_v0 }
 0xc04   :  { %v1306_v2 = vpop.f32.mrf.mxu1 }
 0xc05   :  { %v1311_v4 = vrot.slane %v1306_v2, 4  ;;  %v1312_v6 = vrot.slane %v1306_v2, 5 }
 0xc06   :  { %v1205_v8 = vpop.f32.mrf.mxu0  ;;  %v4685_v38 = vpop.f32.mrf.mxu1 }
 0xc07   :  { %v1315_v41 = vadd.f32 %v1311_v4, %v5621_v19  ;;  %v1316_v54 = vadd.f32 %v1312_v6, %v5619_v17  ;;  %v1206_v56 = vadd.f32 %v5707_v5, %v1205_v8 }
 0xc08   :  { %v4674_v55 = vpop.f32.mrf.mxu0 }
 0xc09   :  { %5117 = vtanh.f32 %v1315_v41  ;;  %v4271_v60 = vmul.f32 -1.442695, %v1315_v41  ;;  %v4272_v61 = vmul.f32 -1.442695, %v1316_v54  ;;  %v4269_v1 = vmul.f32 -1.442695, %v1206_v56 }
 0xc0a   :  { %5119 = vtanh.f32 %v1316_v54 }
 0xc0b   :  { %5121 = vtanh.f32 %v1206_v56 }
 0xc0c   :  { %5123 = vpow2.f32 %v4271_v60 }
 0xc0d   :  { %5125 = vpow2.f32 %v4272_v61 }
 0xc0e   :  { %5127 = vpow2.f32 %v4269_v1 }
 0xc16   :  { %v5118_v57 = vpop.eup %5117 }
 0xc17   :  { %v5120_v58 = vpop.eup %5119  ;;  %1341 = vrot.lane.b32.xlu1 %v5118_v57, %s5473_s26  ;;  %v5919_v57 = vld [vmem:[#allocation6 + $0x18] sm:$0xff] }
 0xc18   :  { %1343 = vrot.lane.b32.xlu0 %v5120_v58, %s5473_s26  ;;  %v5122_v59 = vpop.eup %5121 }
 0xc19   :  { %v5124_v3 = vpop.eup %5123 }
 0xc1a   :  { %v5126_v37 = vpop.eup %5125  ;;  %v1323_v46 = vadd.f32 1.0, %v5124_v3 }
 0xc1b   :  { %1218 = vrot.lane.b32.xlu1 %v5122_v59, %s5473_s26  ;;  %v1324_v9 = vadd.f32 1.0, %v5126_v37  ;;  %v5128_v10 = vpop.eup %5127 }
 0xc1c   :  { %5129 = vrcp.f32 %v1323_v46  ;;  %v1212_v11 = vadd.f32 1.0, %v5128_v10 }
 0xc1d   :  { %5131 = vrcp.f32 %v1324_v9 }
 0xc1e   :  { %5133 = vrcp.f32 %v1212_v11 }
 0xc29   :  { %v5130_v12 = vpop.eup %5129 }
 0xc2a   :  { %v5132_v53 = vpop.eup %5131  ;;  %v1337_v25 = vmul.f32 %v5130_v12, %v1333_v63 }
 0xc2b   :  { %v5134_v21 = vpop.eup %5133  ;;  %v1338_v26 = vmul.f32 %v5132_v53, %v1334_v24 }
 0xc2c   :  { %v1216_v30 = vmul.f32 %v5134_v21, %v5842_v23 }
 0xc89   :  { %v1342_v13 = vpop.permute.xlu1 %1341 }
 0xc8a   :  { %v1344_v14 = vpop.permute.xlu0 %1343  ;;  %v1347_v15 = vmul.f32 %v5130_v12, %v1342_v13 }
 0xc8b   :  { %v1348_v18 = vmul.f32 %v5132_v53, %v1344_v14 }
 0xc8c   :  { %1351 = vrot.lane.b32.xlu0 %v1347_v15, %s5474_s2 }
 0xc8d   :  { %1353 = vrot.lane.b32.xlu1 %v1348_v18, %s5474_s2  ;;  %v1219_v22 = vpop.permute.xlu1 %1218 }
 0xc8e   :  { %v1221_v62 = vmul.f32 %v5134_v21, %v1219_v22 }
 0xc90   :  { %1223 = vrot.lane.b32.xlu0 %v1221_v62, %s5474_s2 }
 0xcfe   :  { %v1352_v27 = vpop.permute.xlu0 %1351 }
 0xcff   :  { %v1354_v28 = vpop.permute.xlu1 %1353  ;;  %v5894_v7 = vadd.f32 %v1352_v27, %v1337_v25 }
 0xd00   :  { %v5896_v29 = vadd.f32 %v1354_v28, %v1338_v26 }
 0xd01   :  { %5135 = vtanh.f32 %v5894_v7  ;;  %v1583_v27 = vrot.slane %v5894_v7, 7 }
 0xd02   :  { %5137 = vtanh.f32 %v5896_v29  ;;  %v1224_v31 = vpop.permute.xlu0 %1223  ;;  %v1584_v28 = vrot.slane %v5896_v29, 7 }
 0xd03   :  { %v5901_v32 = vadd.f32 %v1224_v31, %v1216_v30 }
 0xd05   :  { %5139 = vtanh.f32 %v5901_v32 }
 0xd0e   :  { %v5136_v16 = vpop.eup %5135 }
 0xd0f   :  { %v5138_v20 = vpop.eup %5137  ;;  %1363 = vrot.lane.b32.xlu1 %v5136_v16, %s5473_s26 }
 0xd10   :  { %1365 = vrot.lane.b32.xlu0 %v5138_v20, %s5473_s26 }
 0xd12   :  { %v5140_v33 = vpop.eup %5139 }
 0xd13   :  { %1229 = vrot.lane.b32.xlu1 %v5140_v33, %s5473_s26 }
 0xd81   :  { %v1364_v34 = vpop.permute.xlu1 %1363 }
 0xd82   :  { %v1366_v35 = vpop.permute.xlu0 %1365  ;;  %v1369_v39 = vmul.f32 %v5130_v12, %v1364_v34 }
 0xd83   :  { %v1370_v36 = vmul.f32 %v5132_v53, %v1366_v35 }
 0xd84   :  { %v1483_v52 = vrot.slane %v1369_v39, 4 }
 0xd85   :  { %v1373_v23 = vrot.slane %v1370_v36, 7  ;;  %v1230_v40 = vpop.permute.xlu1 %1229  ;;  %v1484_v49 = vrot.slane %v1370_v36, 3 }
 0xd86   :  { %v1232_v2 = vmul.f32 %v5134_v21, %v1230_v40 }
 0xd87   :  { %v1375_v4 = vsel %vm1374_vm9, %v1373_v23, %v1369_v39  ;;  %v1485_v8 = vsel %vm386_vm3, %v1484_v49, %v1483_v52 }
 0xd88   :  { %1376 = vrot.lane.b32.xlu0 %v1375_v4, %s5474_s2  ;;  %v1380_v6 = vrot.slane %v1232_v2, 4 }
 0xd8a   :  { %1381 = vrot.lane.b32.xlu1 %v1380_v6, %s5473_s26 }
 0xd8c   :  { %1486 = vrot.lane.b32.xlu0 %v1485_v8, %s5474_s2 }
 0xdfa   :  { %v1377_v38 = vpop.permute.xlu0 %1376 }
 0xdfc   :  { %v1382_v41 = vpop.permute.xlu1 %1381 }
 0xdfd   :  { %v1384_v54 = vsel %vm255_vm4, %v1377_v38, %v1382_v41 }
 0xdfe   :  { %v1487_v55 = vpop.permute.xlu0 %1486  ;;  %v1386_v56 = vrot.slane %v1384_v54, 4 }
 0xdff   :  { %4714 = vmatmul.mubr.msk.f32.vlgmr.msra.gmra.mxu0 %vm255_vm4, %v1487_v55 }
 0xe00   :  { %4717 = vmatpush3.msra.mxu0 %v5635_v42  ;;  %4732 = vmatprep.mubr.msk.f32.mxu0 %vm5472_vm0, %v5471_v0  ;;  %v5925_v42 = vld [vmem:[#allocation6 + $0x10] sm:$0xff] }
 0xe01   :  { %4703 = vmatmul.mubr.msk.f32.vlgmr.msra.gmra.mxu1 %vm392_vm5, %v1386_v56  ;;  %4718 = vmatprep.subr.mxu0 %v5471_v0 }
 0xe02   :  { %4719 = vmatpush3.msra.mxu0 %v5637_v43  ;;  %4736 = vmatpush3.msra.mxu1 %v5919_v57  ;;  %v5931_v43 = vld [vmem:[#allocation6 + $0x8] sm:$0xff] }
 0xe03   :  { %4720 = vmatprep.subr.mxu0 %v5471_v0  ;;  %4737 = vmatprep.subr.mxu1 %v5471_v0 }
 0xe04   :  { %4721 = vmatpush3.msra.mxu0 %v5641_v44  ;;  %4738 = vmatpush3.msra.mxu1 %v5925_v42  ;;  %v5937_v44 = vld [vmem:[#allocation6] sm:$0xff] }
 0xe05   :  { %4722 = vmatprep.subr.mxu0 %v5471_v0  ;;  %4739 = vmatprep.subr.mxu1 %v5471_v0 }
 0xe06   :  { %4723 = vmatpush3.msra.mxu0 %v5645_v45  ;;  %4740 = vmatpush3.msra.mxu1 %v5931_v43 }
 0xe07   :  { %4724 = vmatprep.subr.mxu0 %v5471_v0  ;;  %4741 = vmatprep.subr.mxu1 %v5471_v0 }
 0xe08   :  { %4725 = vmatpush3.msra.mxu0 %v5650_v47  ;;  %4742 = vmatpush3.msra.mxu1 %v5937_v44 }
 0xe09   :  { %4726 = vmatprep.subr.mxu0 %v5471_v0  ;;  %4743 = vmatprep.mubr.msk.f32.mxu1 %vm5472_vm0, %v5471_v0 }
 0xe0a   :  { %4727 = vmatpush3.msra.mxu0 %v5654_v48  ;;  %4746 = vmatprep.subr.mxu1 %v5471_v0 }
 0xe0b   :  { %4728 = vmatprep.subr.mxu0 %v5471_v0 }
 0xe0c   :  { %4729 = vmatpush3.msra.mxu0 %v5659_v50 }
 0xe0d   :  { %4730 = vmatprep.subr.mxu0 %v5471_v0 }
 0xe0e   :  { %4731 = vmatpush3.msra.mxu0 %v5665_v51 }
 0xe0f   :  { %4765 = vmatprep.subr.mxu0 %v5471_v0 }
 0xebf   :  { %v1556_v45 = vpop.f32.mrf.mxu0 }
 0xec0   :  { %v1561_v47 = vrot.slane %v1556_v45, 3  ;;  %v1562_v58 = vrot.slane %v1556_v45, 4 }
 0xec1   :  { %v1455_v59 = vpop.f32.mrf.mxu1  ;;  %v4715_v60 = vpop.f32.mrf.mxu0 }
 0xec2   :  { %v1565_v61 = vadd.f32 %v1561_v47, %v5621_v19  ;;  %v1566_v48 = vadd.f32 %v1562_v58, %v5619_v17  ;;  %v1456_v50 = vadd.f32 %v5707_v5, %v1455_v59  ;;  %v5980_v60 = vld [vmem:[#allocation7 + $0x38] sm:$0xff] }
 0xec3   :  { %v4704_v1 = vpop.f32.mrf.mxu1 }
 0xec4   :  { %5141 = vtanh.f32 %v1565_v61  ;;  %v4276_v46 = vmul.f32 -1.442695, %v1565_v61  ;;  %v4277_v9 = vmul.f32 -1.442695, %v1566_v48  ;;  %v4274_v10 = vmul.f32 -1.442695, %v1456_v50 }
 0xec5   :  { %5143 = vtanh.f32 %v1566_v48  ;;  %v5987_v61 = vld [vmem:[#allocation7 + $0x30] sm:$0xff]  ;;  %v5993_v48 = vld [vmem:[#allocation7 + $0x28] sm:$0xff]  ;;  %v5999_v1 = vld [vmem:[#allocation7 + $0x20] sm:$0xff] }
 0xec6   :  { %5145 = vtanh.f32 %v1456_v50 }
 0xec7   :  { %5147 = vpow2.f32 %v4276_v46 }
 0xec8   :  { %5149 = vpow2.f32 %v4277_v9 }
 0xec9   :  { %5151 = vpow2.f32 %v4274_v10 }
 0xed1   :  { %v5142_v3 = vpop.eup %5141 }
 0xed2   :  { %v5144_v37 = vpop.eup %5143  ;;  %1591 = vrot.lane.b32.xlu1 %v5142_v3, %s5473_s26 }
 0xed3   :  { %1593 = vrot.lane.b32.xlu0 %v5144_v37, %s5473_s26  ;;  %v5146_v51 = vpop.eup %5145 }
 0xed4   :  { %v5148_v11 = vpop.eup %5147 }
 0xed5   :  { %v5150_v12 = vpop.eup %5149  ;;  %v1573_v13 = vadd.f32 1.0, %v5148_v11 }
 0xed6   :  { %1468 = vrot.lane.b32.xlu1 %v5146_v51, %s5473_s26  ;;  %v1574_v5 = vadd.f32 1.0, %v5150_v12  ;;  %v5152_v53 = vpop.eup %5151  ;;  %v6030_v12 = vld [vmem:[%s6528_s5] ss:$0 sm:$0xff] }
 0xed7   :  { %5153 = vrcp.f32 %v1573_v13  ;;  %v1462_v14 = vadd.f32 1.0, %v5152_v53 }
 0xed8   :  { %5155 = vrcp.f32 %v1574_v5 }
 0xed9   :  { %5157 = vrcp.f32 %v1462_v14 }
 0xee4   :  { %v5154_v15 = vpop.eup %5153 }
 0xee5   :  { %v5156_v21 = vpop.eup %5155  ;;  %v1587_v30 = vmul.f32 %v5154_v15, %v1583_v27 }
 0xee6   :  { %v5158_v24 = vpop.eup %5157  ;;  %v1588_v16 = vmul.f32 %v5156_v21, %v1584_v28 }
 0xee7   :  { %v1466_v35 = vmul.f32 %v5158_v24, %v5901_v32 }
 0xf44   :  { %v1592_v18 = vpop.permute.xlu1 %1591 }
 0xf45   :  { %v1594_v22 = vpop.permute.xlu0 %1593  ;;  %v1597_v62 = vmul.f32 %v5154_v15, %v1592_v18 }
 0xf46   :  { %v1598_v63 = vmul.f32 %v5156_v21, %v1594_v22 }
 0xf47   :  { %1601 = vrot.lane.b32.xlu0 %v1597_v62, %s5474_s2 }
 0xf48   :  { %1603 = vrot.lane.b32.xlu1 %v1598_v63, %s5474_s2  ;;  %v1469_v25 = vpop.permute.xlu1 %1468 }
 0xf49   :  { %v1471_v26 = vmul.f32 %v5158_v24, %v1469_v25 }
 0xf4b   :  { %1473 = vrot.lane.b32.xlu0 %v1471_v26, %s5474_s2 }
 0xfb9   :  { %v1602_v31 = vpop.permute.xlu0 %1601 }
 0xfba   :  { %v5961_v20 = vadd.f32 %v1602_v31, %v1587_v30  ;;  %v1604_v33 = vpop.permute.xlu1 %1603 }
 0xfbb   :  { %v5963_v34 = vadd.f32 %v1604_v33, %v1588_v16 }
 0xfbc   :  { %5159 = vtanh.f32 %v5961_v20 }
 0xfbd   :  { %5161 = vtanh.f32 %v5963_v34  ;;  %v1474_v36 = vpop.permute.xlu0 %1473 }
 0xfbe   :  { %v5968_v39 = vadd.f32 %v1474_v36, %v1466_v35 }
 0xfc0   :  { %5163 = vtanh.f32 %v5968_v39 }
 0xfc9   :  { %v5160_v7 = vpop.eup %5159 }
 0xfca   :  { %v5162_v29 = vpop.eup %5161  ;;  %1613 = vrot.lane.b32.xlu1 %v5160_v7, %s5473_s26 }
 0xfcb   :  { %1615 = vrot.lane.b32.xlu0 %v5162_v29, %s5473_s26  ;;  %v1834_v29 = vrot.slane %v5963_v34, 7 }
 0xfcd   :  { %v5164_v23 = vpop.eup %5163 }
 0xfce   :  { %1479 = vrot.lane.b32.xlu1 %v5164_v23, %s5473_s26 }
0x103c   :  { %v1614_v40 = vpop.permute.xlu1 %1613 }
0x103d   :  { %v1616_v49 = vpop.permute.xlu0 %1615  ;;  %v1619_v52 = vmul.f32 %v5154_v15, %v1614_v40 }
0x103e   :  { %v1620_v2 = vmul.f32 %v5156_v21, %v1616_v49  ;;  %v1833_v49 = vrot.slane %v5961_v20, 7 }
0x103f   :  { %v1733_v6 = vrot.slane %v1619_v52, 5 }
0x1040   :  { %v1623_v32 = vrot.slane %v1620_v2, 7  ;;  %v1480_v4 = vpop.permute.xlu1 %1479  ;;  %v1734_v8 = vrot.slane %v1620_v2, 4 }
0x1041   :  { %v1482_v38 = vmul.f32 %v5158_v24, %v1480_v4 }
0x1042   :  { %v1625_v41 = vsel %vm1624_vm10, %v1623_v32, %v1619_v52  ;;  %v1735_v55 = vsel %vm386_vm3, %v1734_v8, %v1733_v6 }
0x1043   :  { %1626 = vrot.lane.b32.xlu0 %v1625_v41, %s5474_s2  ;;  %v1630_v54 = vrot.slane %v1482_v38, 3 }
0x1045   :  { %1631 = vrot.lane.b32.xlu1 %v1630_v54, %s5473_s26 }
0x1047   :  { %1736 = vrot.lane.b32.xlu0 %v1735_v55, %s5474_s2 }
0x10b5   :  { %v1627_v56 = vpop.permute.xlu0 %1626 }
0x10b7   :  { %v1632_v45 = vpop.permute.xlu1 %1631 }
0x10b8   :  { %v1634_v47 = vsel %vm255_vm4, %v1627_v56, %v1632_v45 }
0x10b9   :  { %v1737_v58 = vpop.permute.xlu0 %1736  ;;  %v1636_v59 = vrot.slane %v1634_v47, 5 }
0x10ba   :  { %4744 = vmatmul.mubr.msk.f32.vlgmr.msra.gmra.mxu1 %vm255_vm4, %v1737_v58 }
0x10bb   :  { %4747 = vmatpush3.msra.mxu1 %v5980_v60  ;;  %4762 = vmatprep.mubr.msk.f32.mxu1 %vm5472_vm0, %v5471_v0 }
0x10bc   :  { %4733 = vmatmul.mubr.msk.f32.vlgmr.msra.gmra.mxu0 %vm392_vm5, %v1636_v59  ;;  %4748 = vmatprep.subr.mxu1 %v5471_v0 }
0x10bd   :  { %4749 = vmatpush3.msra.mxu1 %v5987_v61  ;;  %4766 = vmatpush3.msra.mxu0 %v5919_v57  ;;  %v6005_v57 = vld [vmem:[#allocation7 + $0x18] sm:$0xff] }
0x10be   :  { %4750 = vmatprep.subr.mxu1 %v5471_v0  ;;  %4767 = vmatprep.subr.mxu0 %v5471_v0 }
0x10bf   :  { %4751 = vmatpush3.msra.mxu1 %v5993_v48  ;;  %4768 = vmatpush3.msra.mxu0 %v5925_v42  ;;  %v6012_v42 = vld [vmem:[#allocation7 + $0x10] sm:$0xff] }
0x10c0   :  { %4752 = vmatprep.subr.mxu1 %v5471_v0  ;;  %4769 = vmatprep.subr.mxu0 %v5471_v0 }
0x10c1   :  { %4753 = vmatpush3.msra.mxu1 %v5999_v1  ;;  %4770 = vmatpush3.msra.mxu0 %v5931_v43  ;;  %v6017_v43 = vld [vmem:[#allocation7 + $0x8] sm:$0xff] }
0x10c2   :  { %4754 = vmatprep.subr.mxu1 %v5471_v0  ;;  %4771 = vmatprep.subr.mxu0 %v5471_v0 }
0x10c3   :  { %4755 = vmatpush3.msra.mxu1 %v6005_v57  ;;  %4772 = vmatpush3.msra.mxu0 %v5937_v44  ;;  %v6021_v44 = vld [vmem:[#allocation7] sm:$0xff] }
0x10c4   :  { %4756 = vmatprep.subr.mxu1 %v5471_v0  ;;  %4773 = vmatprep.mubr.msk.f32.mxu0 %vm5472_vm0, %v5471_v0 }
0x10c5   :  { %4757 = vmatpush3.msra.mxu1 %v6012_v42  ;;  %4776 = vmatprep.subr.mxu0 %v5471_v0 }
0x10c6   :  { %4758 = vmatprep.subr.mxu1 %v5471_v0 }
0x10c7   :  { %4759 = vmatpush3.msra.mxu1 %v6017_v43 }
0x10c8   :  { %4760 = vmatprep.subr.mxu1 %v5471_v0 }
0x10c9   :  { %4761 = vmatpush3.msra.mxu1 %v6021_v44 }
0x10ca   :  { %4795 = vmatprep.subr.mxu1 %v5471_v0 }
0x117a   :  { %v1806_v50 = vpop.f32.mrf.mxu1 }
0x117b   :  { %v1811_v3 = vrot.slane %v1806_v50, 2  ;;  %v1812_v37 = vrot.slane %v1806_v50, 3 }
0x117c   :  { %v1705_v51 = vpop.f32.mrf.mxu0  ;;  %v4745_v46 = vpop.f32.mrf.mxu1 }
0x117d   :  { %v1816_v9 = vadd.f32 %v1812_v37, %v5619_v17  ;;  %v1815_v11 = vadd.f32 %v1811_v3, %v5621_v19  ;;  %v1706_v13 = vadd.f32 %v6030_v12, %v1705_v51 }
0x117e   :  { %v4734_v10 = vpop.f32.mrf.mxu0 }
0x117f   :  { %5165 = vtanh.f32 %v1816_v9  ;;  %v4282_v15 = vmul.f32 -1.442695, %v1816_v9  ;;  %v4281_v18 = vmul.f32 -1.442695, %v1815_v11  ;;  %v4279_v21 = vmul.f32 -1.442695, %v1706_v13 }
0x1180   :  { %5167 = vtanh.f32 %v1815_v11 }
0x1181   :  { %5169 = vtanh.f32 %v1706_v13 }
0x1182   :  { %5171 = vpow2.f32 %v4282_v15 }
0x1183   :  { %5173 = vpow2.f32 %v4281_v18 }
0x1184   :  { %5175 = vpow2.f32 %v4279_v21 }
0x118c   :  { %v5166_v5 = vpop.eup %5165 }
0x118d   :  { %1843 = vrot.lane.b32.xlu1 %v5166_v5, %s5473_s26  ;;  %v5168_v53 = vpop.eup %5167 }
0x118e   :  { %v5170_v14 = vpop.eup %5169 }
0x118f   :  { %1718 = vrot.lane.b32.xlu0 %v5170_v14, %s5473_s26  ;;  %v5172_v22 = vpop.eup %5171 }
0x1190   :  { %v5174_v62 = vpop.eup %5173  ;;  %v1824_v63 = vadd.f32 1.0, %v5172_v22 }
0x1191   :  { %1841 = vrot.lane.b32.xlu1 %v5168_v53, %s5473_s26  ;;  %v5176_v24 = vpop.eup %5175  ;;  %v1823_v25 = vadd.f32 1.0, %v5174_v62 }
0x1192   :  { %5177 = vrcp.f32 %v1824_v63  ;;  %v1712_v26 = vadd.f32 1.0, %v5176_v24 }
0x1193   :  { %5179 = vrcp.f32 %v1823_v25 }
0x1194   :  { %5181 = vrcp.f32 %v1712_v26 }
0x119f   :  { %v5178_v27 = vpop.eup %5177 }
0x11a0   :  { %v5180_v31 = vpop.eup %5179  ;;  %v1838_v23 = vmul.f32 %v5178_v27, %v1834_v29 }
0x11a1   :  { %v5182_v16 = vpop.eup %5181  ;;  %v1837_v32 = vmul.f32 %v5180_v31, %v1833_v49 }
0x11a2   :  { %v1716_v2 = vmul.f32 %v5182_v16, %v5968_v39 }
0x11ff   :  { %v1844_v28 = vpop.permute.xlu1 %1843 }
0x1200   :  { %v1848_v30 = vmul.f32 %v5178_v27, %v1844_v28 }
0x1201   :  { %v1719_v33 = vpop.permute.xlu0 %1718 }
0x1202   :  { %1853 = vrot.lane.b32.xlu0 %v1848_v30, %s5474_s2  ;;  %v1721_v36 = vmul.f32 %v5182_v16, %v1719_v33 }
0x1203   :  { %v1842_v35 = vpop.permute.xlu1 %1841 }
0x1204   :  { %v1847_v7 = vmul.f32 %v5180_v31, %v1842_v35  ;;  %1723 = vrot.lane.b32.xlu1 %v1721_v36, %s5474_s2 }
0x1206   :  { %1851 = vrot.lane.b32.xlu0 %v1847_v7, %s5474_s2 }
0x1274   :  { %v1854_v40 = vpop.permute.xlu0 %1853 }
0x1275   :  { %v6041_v52 = vadd.f32 %v1854_v40, %v1838_v23 }
0x1276   :  { %v1724_v4 = vpop.permute.xlu1 %1723 }
0x1277   :  { %5183 = vtanh.f32 %v6041_v52  ;;  %v6045_v8 = vadd.f32 %v1724_v4, %v1716_v2  ;;  %v2084_v23 = vrot.slane %v6041_v52, 7 }
0x1278   :  { %v1852_v6 = vpop.permute.xlu0 %1851 }
0x1279   :  { %v6047_v38 = vadd.f32 %v1852_v6, %v1837_v32  ;;  %5185 = vtanh.f32 %v6045_v8 }
0x127b   :  { %5187 = vtanh.f32 %v6047_v38  ;;  %v2083_v40 = vrot.slane %v6047_v38, 7 }
0x1284   :  { %v5184_v34 = vpop.eup %5183 }
0x1285   :  { %1865 = vrot.lane.b32.xlu1 %v5184_v34, %s5473_s26 }
0x1286   :  { %v5186_v20 = vpop.eup %5185 }
0x1287   :  { %1729 = vrot.lane.b32.xlu0 %v5186_v20, %s5473_s26 }
0x1288   :  { %v5188_v41 = vpop.eup %5187 }
0x1289   :  { %1863 = vrot.lane.b32.xlu1 %v5188_v41, %s5473_s26 }
0x12f7   :  { %v1866_v39 = vpop.permute.xlu1 %1865 }
0x12f8   :  { %v1870_v54 = vmul.f32 %v5178_v27, %v1866_v39 }
0x12f9   :  { %v1730_v55 = vpop.permute.xlu0 %1729 }
0x12fa   :  { %v1732_v56 = vmul.f32 %v5182_v16, %v1730_v55  ;;  %v1873_v47 = vrot.slane %v1870_v54, 7  ;;  %v1984_v37 = vrot.slane %v1870_v54, 5 }
0x12fb   :  { %v1864_v45 = vpop.permute.xlu1 %1863 }
0x12fc   :  { %v1869_v58 = vmul.f32 %v5180_v31, %v1864_v45  ;;  %v1880_v59 = vrot.slane %v1732_v56, 2 }
0x12fe   :  { %v1983_v50 = vrot.slane %v1869_v58, 6  ;;  %v1875_v3 = vsel %vm1874_vm11, %v1873_v47, %v1869_v58  ;;  %1881 = vrot.lane.b32.xlu1 %v1880_v59, %s5473_s26 }
0x12ff   :  { %1876 = vrot.lane.b32.xlu0 %v1875_v3, %s5474_s2 }
0x1300   :  { %v1985_v51 = vsel %vm386_vm3, %v1984_v37, %v1983_v50 }
0x1303   :  { %1986 = vrot.lane.b32.xlu0 %v1985_v51, %s5474_s2 }
0x1370   :  { %v1882_v46 = vpop.permute.xlu1 %1881 }
0x1371   :  { %v1877_v9 = vpop.permute.xlu0 %1876 }
0x1372   :  { %v1884_v10 = vsel %vm255_vm4, %v1877_v9, %v1882_v46 }
0x1373   :  { %v1886_v11 = vrot.slane %v1884_v10, 6 }
0x1375   :  { %v1987_v13 = vpop.permute.xlu0 %1986  ;;  %4763 = vmatmul.mubr.msk.f32.vlgmr.msra.gmra.mxu1 %vm392_vm5, %v1886_v11 }
0x1376   :  { %4774 = vmatmul.mubr.msk.f32.vlgmr.msra.gmra.mxu0 %vm255_vm4, %v1987_v13  ;;  %4803 = vmatprep.mubr.msk.f32.mxu1 %vm5472_vm0, %v5471_v0 }
0x1377   :  { %4777 = vmatpush3.msra.mxu0 %v5980_v60  ;;  %4792 = vmatprep.mubr.msk.f32.mxu0 %vm5472_vm0, %v5471_v0 }
0x1378   :  { %4778 = vmatprep.subr.mxu0 %v5471_v0 }
0x1379   :  { %4779 = vmatpush3.msra.mxu0 %v5987_v61 }
0x137a   :  { %4780 = vmatprep.subr.mxu0 %v5471_v0 }
0x137b   :  { %4781 = vmatpush3.msra.mxu0 %v5993_v48 }
0x137c   :  { %4782 = vmatprep.subr.mxu0 %v5471_v0 }
0x137d   :  { %4783 = vmatpush3.msra.mxu0 %v5999_v1 }
0x137e   :  { %4784 = vmatprep.subr.mxu0 %v5471_v0 }
0x137f   :  { %4785 = vmatpush3.msra.mxu0 %v6005_v57 }
0x1380   :  { %4786 = vmatprep.subr.mxu0 %v5471_v0 }
0x1381   :  { %4787 = vmatpush3.msra.mxu0 %v6012_v42 }
0x1382   :  { %4788 = vmatprep.subr.mxu0 %v5471_v0 }
0x1383   :  { %4789 = vmatpush3.msra.mxu0 %v6017_v43 }
0x1384   :  { %4790 = vmatprep.subr.mxu0 %v5471_v0 }
0x1385   :  { %4791 = vmatpush3.msra.mxu0 %v6021_v44 }
0x1386   :  { %4817 = vmatprep.subr.mxu0 %v5471_v0 }
0x1435   :  { %v1955_v60 = vpop.f32.mrf.mxu1 }
0x1436   :  { %v1956_v61 = vadd.f32 %v6030_v12, %v1955_v60  ;;  %v2056_v48 = vpop.f32.mrf.mxu0 }
0x1437   :  { %v2061_v1 = vrot.slane %v2056_v48, 1  ;;  %v2062_v57 = vrot.slane %v2056_v48, 2  ;;  %v4764_v5 = vpop.f32.mrf.mxu1 }
0x1438   :  { %5189 = vtanh.f32 %v1956_v61  ;;  %v4775_v53 = vpop.f32.mrf.mxu0  ;;  %v4284_v18 = vmul.f32 -1.442695, %v1956_v61 }
0x1439   :  { %v2065_v42 = vadd.f32 %v2061_v1, %v5621_v19  ;;  %v2066_v14 = vadd.f32 %v2062_v57, %v5619_v17 }
0x143b   :  { %5191 = vtanh.f32 %v2065_v42  ;;  %v4286_v21 = vmul.f32 -1.442695, %v2065_v42  ;;  %v4287_v22 = vmul.f32 -1.442695, %v2066_v14 }
0x143c   :  { %5193 = vtanh.f32 %v2066_v14 }
0x143d   :  { %5195 = vpow2.f32 %v4284_v18  ;;  %v2240_v18 = vld [vmem:[#allocation9 + $0x8] sm:$0xff] }
0x143e   :  { %5197 = vpow2.f32 %v4286_v21  ;;  %v2239_v21 = vld [vmem:[#allocation9] sm:$0xff] }
0x143f   :  { %5199 = vpow2.f32 %v4287_v22 }
0x1445   :  { %v5190_v43 = vpop.eup %5189 }
0x1446   :  { %1968 = vrot.lane.b32.xlu1 %v5190_v43, %s5473_s26 }
0x1448   :  { %v5192_v44 = vpop.eup %5191 }
0x1449   :  { %v5194_v15 = vpop.eup %5193 }
0x144a   :  { %2093 = vrot.lane.b32.xlu0 %v5194_v15, %s5473_s26  ;;  %2091 = vrot.lane.b32.xlu1 %v5192_v44, %s5473_s26  ;;  %v5196_v19 = vpop.eup %5195  ;;  %v2241_v15 = vld [vmem:[#allocation9 + $0x10] sm:$0xff] }
0x144b   :  { %v5198_v62 = vpop.eup %5197  ;;  %v1962_v17 = vadd.f32 1.0, %v5196_v19 }
0x144c   :  { %v5200_v63 = vpop.eup %5199  ;;  %v2073_v24 = vadd.f32 1.0, %v5198_v62 }
0x144d   :  { %5201 = vrcp.f32 %v1962_v17  ;;  %v2074_v25 = vadd.f32 1.0, %v5200_v63  ;;  %v4291_v63 = vld [vmem:[%s6532_s9] ss:$0 sm:$0xff] }
0x144e   :  { %5203 = vrcp.f32 %v2073_v24 }
0x144f   :  { %5205 = vrcp.f32 %v2074_v25 }
0x145a   :  { %v5202_v26 = vpop.eup %5201 }
0x145b   :  { %v5204_v30 = vpop.eup %5203  ;;  %v1966_v7 = vmul.f32 %v5202_v26, %v6045_v8 }
0x145c   :  { %v5206_v31 = vpop.eup %5205  ;;  %v2087_v32 = vmul.f32 %v5204_v30, %v2083_v40  ;;  %v6126_v40 = vld [vmem:[#allocation10 + $0x18] sm:$0xff] }
0x145d   :  { %v2088_v2 = vmul.f32 %v5206_v31, %v2084_v23  ;;  %v6124_v23 = vld [vmem:[#allocation12 + $0x18] sm:$0xff] }
0x14b8   :  { %v1969_v27 = vpop.permute.xlu1 %1968 }
0x14b9   :  { %v1971_v28 = vmul.f32 %v5202_v26, %v1969_v27 }
0x14bb   :  { %1973 = vrot.lane.b32.xlu0 %v1971_v28, %s5474_s2 }
0x14bc   :  { %v2094_v16 = vpop.permute.xlu0 %2093  ;;  %v2092_v33 = vpop.permute.xlu1 %2091 }
0x14bd   :  { %v2098_v35 = vmul.f32 %v5206_v31, %v2094_v16  ;;  %v2097_v36 = vmul.f32 %v5204_v30, %v2092_v33 }
0x14bf   :  { %2103 = vrot.lane.b32.xlu1 %v2098_v35, %s5474_s2  ;;  %2101 = vrot.lane.b32.xlu0 %v2097_v36, %s5474_s2 }
0x152d   :  { %v1974_v29 = vpop.permute.xlu0 %1973 }
0x152e   :  { %v1976_v49 = vadd.f32 %v1974_v29, %v1966_v7 }
0x1530   :  { %5207 = vtanh.f32 %v1976_v49 }
0x1531   :  { %v2104_v4 = vpop.permute.xlu1 %2103  ;;  %v2102_v6 = vpop.permute.xlu0 %2101 }
0x1532   :  { %v2108_v34 = vadd.f32 %v2104_v4, %v2088_v2  ;;  %v2107_v20 = vadd.f32 %v2102_v6, %v2087_v32  ;;  %v6132_v2 = vld [vmem:[#allocation10 + $0x10] sm:$0xff]  ;;  %v6136_v32 = vld [vmem:[#allocation12 + $0x8] sm:$0xff]  ;;  %v6144_v6 = vld [vmem:[#allocation12] sm:$0xff] }
0x1533   :  { %v6138_v4 = vld [vmem:[#allocation10 + $0x8] sm:$0xff] }
0x1534   :  { %5209 = vtanh.f32 %v2108_v34  ;;  %v6146_v34 = vld [vmem:[#allocation10] sm:$0xff] }
0x1535   :  { %5211 = vtanh.f32 %v2107_v20 }
0x153d   :  { %v5208_v41 = vpop.eup %5207 }
0x153e   :  { %1979 = vrot.lane.b32.xlu1 %v5208_v41, %s5473_s26 }
0x1541   :  { %v5210_v39 = vpop.eup %5209 }
0x1542   :  { %v5212_v8 = vpop.eup %5211  ;;  %2115 = vrot.lane.b32.xlu0 %v5210_v39, %s5473_s26 }
0x1543   :  { %2113 = vrot.lane.b32.xlu1 %v5212_v8, %s5473_s26 }
0x15b0   :  { %v1980_v52 = vpop.permute.xlu1 %1979 }
0x15b1   :  { %v1982_v56 = vmul.f32 %v5202_v26, %v1980_v52  ;;  %v5475_v52 = vmov 1966171168  }
0x15b3   :  { %v2131_v58 = vrot.slane %v1982_v56, 1 }
0x15b4   :  { %v2116_v38 = vpop.permute.xlu0 %2115 }
0x15b5   :  { %v2120_v54 = vmul.f32 %v5206_v31, %v2116_v38  ;;  %v2114_v55 = vpop.permute.xlu1 %2113  ;;  %v2448_v38 = vunpack.c.l.s4 %v5475_v52 }
0x15b6   :  { %v2119_v45 = vmul.f32 %v5204_v30, %v2114_v55 }
0x15b7   :  { %v2123_v47 = vrot.slane %v2120_v54, 7  ;;  %v2450_v54 = vlaneseq  ;;  %v2449_v55 = vunpack.c.0.s8 %v2448_v38 }
0x15b8   :  { %2124 = vrot.lane.b32.xlu0 %v2119_v45, %s5474_s2  ;;  %v6183_v45 = vld [vmem:[%s6534_s11] ss:$0 sm:$0xff] }
0x15b9   :  { %2126 = vrot.lane.b32.xlu1 %v2123_v47, %s5474_s2  ;;  %v2451_v56 = vshrl.u32 %v2450_v54, 7  ;;  %v6188_v47 = vld [vmem:[%s6531_s8] ss:$0 sm:$0xff] }
0x15bc   :  { %2132 = vrot.lane.b32.xlu0 %v2131_v58, %s5473_s26  ;;  %v6190_v58 = vsub.s32 %v2449_v55, %v2451_v56 }
0x162a   :  { %v2125_v59 = vpop.permute.xlu0 %2124 }
0x162b   :  { %v2127_v50 = vpop.permute.xlu1 %2126 }
0x162e   :  { %v2133_v3 = vpop.permute.xlu0 %2132 }
0x162f   :  { %v2135_v37 = vsel %vm255_vm4, %v2125_v59, %v2133_v3  ;;  %v2136_v51 = vsel %vm255_vm4, %v2127_v50, %v2133_v3 }
0x1630   :  { %v2140_v46 = vrot.slane %v2135_v37, 7  ;;  %v2141_v9 = vrot.slane %v2136_v51, 7 }
0x1632   :  { %v2142_v10 = vsel %vm2139_vm12, %v2140_v46, %v2141_v9 }
0x1633   :  { %4793 = vmatmul.mubr.msk.f32.vlgmr.msra.gmra.mxu0 %vm392_vm5, %v2142_v10 }
0x1634   :  { %4825 = vmatprep.mubr.msk.f32.mxu0 %vm5472_vm0, %v5471_v0  ;;  %4818 = vmatpush3.msra.mxu0 %v6126_v40 }
0x1635   :  { %4819 = vmatprep.subr.mxu0 %v5471_v0 }
0x1636   :  { %4820 = vmatpush3.msra.mxu0 %v6132_v2 }
0x1637   :  { %4821 = vmatprep.subr.mxu0 %v5471_v0 }
0x1638   :  { %4822 = vmatpush3.msra.mxu0 %v6138_v4 }
0x1639   :  { %4823 = vmatprep.subr.mxu0 %v5471_v0 }
0x163a   :  { %4824 = vmatpush3.msra.mxu0 %v6146_v34 }
0x163b   :  { %4839 = vmatprep.subr.mxu0 %v5471_v0 }
0x16f3   :  { %v2211_v11 = vpop.f32.mrf.mxu0 }
0x16f4   :  { %v2212_v13 = vadd.f32 %v6030_v12, %v2211_v11  ;;  %v2242_v12 = vld [vmem:[#allocation9 + $0x18] sm:$0xff] }
0x16f5   :  { %v4794_v60 = vpop.f32.mrf.mxu0  ;;  %4796 = vmatpush3.msra.mxu1 %v2242_v12 }
0x16f6   :  { %5213 = vtanh.f32 %v2212_v13  ;;  %v4289_v48 = vmul.f32 -1.442695, %v2212_v13  ;;  %4797 = vmatprep.subr.mxu1 %v5471_v0 }
0x16f7   :  { %4798 = vmatpush3.msra.mxu1 %v2241_v15 }
0x16f8   :  { %5215 = vpow2.f32 %v4289_v48  ;;  %4799 = vmatprep.subr.mxu1 %v5471_v0 }
0x16f9   :  { %4800 = vmatpush3.msra.mxu1 %v2240_v18 }
0x16fa   :  { %4801 = vmatprep.subr.mxu1 %v5471_v0 }
0x16fb   :  { %4802 = vmatpush3.msra.mxu1 %v2239_v21 }
0x16fc   :  { %4806 = vmatprep.subr.mxu1 %v5471_v0 }
0x1703   :  { %v5214_v61 = vpop.eup %5213 }
0x1704   :  { %2224 = vrot.lane.b32.xlu1 %v5214_v61, %s5473_s26 }
0x1705   :  { %v5216_v1 = vpop.eup %5215 }
0x1706   :  { %v2218_v57 = vadd.f32 1.0, %v5216_v1 }
0x1708   :  { %5217 = vrcp.f32 %v2218_v57 }
0x1715   :  { %v5218_v5 = vpop.eup %5217 }
0x1716   :  { %v2222_v14 = vmul.f32 %v5218_v5, %v1976_v49  ;;  %v6128_v49 = vld [vmem:[#allocation12 + $0x10] sm:$0xff] }
0x1776   :  { %v2225_v53 = vpop.permute.xlu1 %2224 }
0x1777   :  { %v2227_v42 = vmul.f32 %v5218_v5, %v2225_v53 }
0x1779   :  { %2229 = vrot.lane.b32.xlu0 %v2227_v42, %s5474_s2 }
0x17eb   :  { %v2230_v43 = vpop.permute.xlu0 %2229 }
0x17ec   :  { %v2232_v44 = vadd.f32 %v2230_v43, %v2222_v14 }
0x17ee   :  { %5219 = vtanh.f32 %v2232_v44 }
0x17fb   :  { %v5220_v22 = vpop.eup %5219 }
0x17fc   :  { %2235 = vrot.lane.b32.xlu1 %v5220_v22, %s5473_s26 }
0x186e   :  { %v2236_v19 = vpop.permute.xlu1 %2235 }
0x186f   :  { %v2238_v62 = vmul.f32 %v5218_v5, %v2236_v19 }
0x1871   :  { %2273 = vrot.lane.b32.xlu0 %v2238_v62, %s5474_s2 }
0x18e3   :  { %v2274_v17 = vpop.permute.xlu0 %2273 }
0x18e4   :  { %4804 = vmatmul.mubr.msk.f32.vlgmr.msra.gmra.mxu1 %vm255_vm4, %v2274_v17 }
0x18e5   :  { %4814 = vmatprep.mubr.msk.f32.mxu1 %vm5472_vm0, %v5471_v0  ;;  %4807 = vmatpush3.msra.mxu1 %v6124_v23 }
0x18e6   :  { %4808 = vmatprep.subr.mxu1 %v5471_v0 }
0x18e7   :  { %4809 = vmatpush3.msra.mxu1 %v6128_v49 }
0x18e8   :  { %4810 = vmatprep.subr.mxu1 %v5471_v0 }
0x18e9   :  { %4811 = vmatpush3.msra.mxu1 %v6136_v32 }
0x18ea   :  { %4812 = vmatprep.subr.mxu1 %v5471_v0 }
0x18eb   :  { %4813 = vmatpush3.msra.mxu1 %v6144_v6 }
0x18ec   :  { %4828 = vmatprep.subr.mxu1 %v5471_v0 }
0x19a4   :  { %v2343_v24 = vpop.f32.mrf.mxu1 }
0x19a5   :  { %v2344_v25 = vadd.f32 %v4291_v63, %v2343_v24 }
0x19a6   :  { %v4805_v26 = vpop.f32.mrf.mxu1 }
0x19a7   :  { %5221 = vtanh.f32 %v2344_v25  ;;  %v4294_v28 = vmul.f32 -1.442695, %v2344_v25 }
0x19a9   :  { %5223 = vpow2.f32 %v4294_v28 }
0x19b4   :  { %v5222_v27 = vpop.eup %5221 }
0x19b5   :  { %2356 = vrot.lane.b32.xlu1 %v5222_v27, %s5473_s26 }
0x19b6   :  { %v5224_v30 = vpop.eup %5223 }
0x19b7   :  { %v2350_v31 = vadd.f32 1.0, %v5224_v30 }
0x19b9   :  { %5225 = vrcp.f32 %v2350_v31 }
0x19c6   :  { %v5226_v16 = vpop.eup %5225 }
0x19c7   :  { %v2354_v36 = vmul.f32 %v5226_v16, %v2232_v44 }
0x1a27   :  { %v2357_v33 = vpop.permute.xlu1 %2356 }
0x1a28   :  { %v2359_v35 = vmul.f32 %v5226_v16, %v2357_v33 }
0x1a2a   :  { %2361 = vrot.lane.b32.xlu0 %v2359_v35, %s5474_s2 }
0x1a9c   :  { %v2362_v7 = vpop.permute.xlu0 %2361 }
0x1a9d   :  { %v6121_v29 = vadd.f32 %v2362_v7, %v2354_v36 }
0x1a9f   :  { %5227 = vtanh.f32 %v6121_v29 }
0x1aac   :  { %v5228_v20 = vpop.eup %5227 }
0x1aad   :  { %2367 = vrot.lane.b32.xlu1 %v5228_v20, %s5473_s26 }
0x1b1f   :  { %v2368_v41 = vpop.permute.xlu1 %2367 }
0x1b20   :  { %v2370_v39 = vmul.f32 %v5226_v16, %v2368_v41 }
0x1b22   :  { %2372 = vrot.lane.b32.xlu0 %v2370_v39, %s5474_s2 }
0x1b94   :  { %v2373_v8 = vpop.permute.xlu0 %2372 }
0x1b95   :  { %4815 = vmatmul.mubr.msk.f32.vlgmr.msra.gmra.mxu1 %vm255_vm4, %v2373_v8  ;;  %4826 = vmatmul.mubr.msk.f32.vlgmr.msra.gmra.mxu0 %vm255_vm4, %v2373_v8 }
0x1b96   :  { %4829 = vmatpush3.msra.mxu1 %v6124_v23  ;;  %4840 = vmatpush3.msra.mxu0 %v6126_v40 }
0x1b97   :  { %4830 = vmatprep.subr.mxu1 %v5471_v0  ;;  %4841 = vmatprep.subr.mxu0 %v5471_v0 }
0x1b98   :  { %4831 = vmatpush3.msra.mxu1 %v6128_v49  ;;  %4842 = vmatpush3.msra.mxu0 %v6132_v2 }
0x1b99   :  { %4832 = vmatprep.subr.mxu1 %v5471_v0  ;;  %4843 = vmatprep.subr.mxu0 %v5471_v0 }
0x1b9a   :  { %4833 = vmatpush3.msra.mxu1 %v6136_v32  ;;  %4844 = vmatpush3.msra.mxu0 %v6138_v4 }
0x1b9b   :  { %4834 = vmatprep.subr.mxu1 %v5471_v0  ;;  %4845 = vmatprep.subr.mxu0 %v5471_v0 }
0x1b9c   :  { %4846 = vmatpush3.msra.mxu0 %v6146_v34  ;;  %4847 = vmatprep.mubr.msk.f32.mxu0 %vm5472_vm0, %v5471_v0 }
0x1b9d   :  { %4835 = vmatpush3.msra.mxu1 %v6144_v6  ;;  %4836 = vmatprep.mubr.msk.f32.mxu1 %vm5472_vm0, %v5471_v0 }
0x1b9e   :  { %4850 = vmatprep.subr.mxu1 %v5471_v0  ;;  %4861 = vmatprep.subr.mxu0 %v5471_v0 }
0x1c55   :  { %v2442_v59 = vpop.f32.mrf.mxu1  ;;  %v2540_v50 = vpop.f32.mrf.mxu0 }
0x1c56   :  { %v2443_v3 = vadd.f32 %v6183_v45, %v2442_v59  ;;  %v2541_v37 = vadd.f32 %v6188_v47, %v2540_v50 }
0x1c57   :  { %v4816_v51 = vpop.f32.mrf.mxu1  ;;  %v4827_v46 = vpop.f32.mrf.mxu0 }
0x1c58   :  { %v2453_v9 = vrot.slane %v2443_v3, %v6190_v58  ;;  %5229 = vtanh.f32 %v2541_v37  ;;  %v4297_v61 = vmul.f32 -1.442695, %v2541_v37 }
0x1c5a   :  { %v2454_v10 = vcombine.high %v2453_v9, %v2453_v9  ;;  %v2461_v11 = vrot.slane %v2453_v9, %v6190_v58  ;;  %5231 = vpow2.f32 %v4297_v61 }
0x1c5c   :  { %v2468_v13 = vrot.slane %v2454_v10, %v6190_v58  ;;  %2472 = vst.msk [vmem:[%s6535_s12] sm:$0x1] %vm2471_vm13, %v2461_v11 }
0x1c5e   :  { %2473 = vst.msk [vmem:[%s6535_s12 + $0x10] sm:$0x1] %vm2471_vm13, %v2468_v13 }
0x1c65   :  { %v5230_v60 = vpop.eup %5229 }
0x1c66   :  { %2553 = vrot.lane.b32.xlu1 %v5230_v60, %s5473_s26 }
0x1c67   :  { %v5232_v48 = vpop.eup %5231 }
0x1c68   :  { %v2547_v1 = vadd.f32 1.0, %v5232_v48 }
0x1c6a   :  { %5233 = vrcp.f32 %v2547_v1 }
0x1c77   :  { %v5234_v57 = vpop.eup %5233 }
0x1c78   :  { %v2551_v42 = vmul.f32 %v5234_v57, %v6121_v29 }
0x1cd8   :  { %v2554_v5 = vpop.permute.xlu1 %2553 }
0x1cd9   :  { %v2556_v53 = vmul.f32 %v5234_v57, %v2554_v5 }
0x1cdb   :  { %2558 = vrot.lane.b32.xlu0 %v2556_v53, %s5474_s2 }
0x1d4d   :  { %v2559_v14 = vpop.permute.xlu0 %2558 }
0x1d4e   :  { %v2561_v43 = vadd.f32 %v2559_v14, %v2551_v42 }
0x1d50   :  { %5235 = vtanh.f32 %v2561_v43 }
0x1d5d   :  { %v5236_v44 = vpop.eup %5235 }
0x1d5e   :  { %2564 = vrot.lane.b32.xlu1 %v5236_v44, %s5473_s26 }
0x1dd0   :  { %v2565_v12 = vpop.permute.xlu1 %2564 }
0x1dd1   :  { %v2567_v15 = vmul.f32 %v5234_v57, %v2565_v12 }
0x1dd3   :  { %2569 = vrot.lane.b32.xlu0 %v2567_v15, %s5474_s2 }
0x1e45   :  { %v2570_v18 = vpop.permute.xlu0 %2569 }
0x1e46   :  { %4837 = vmatmul.mubr.msk.f32.vlgmr.msra.gmra.mxu1 %vm255_vm4, %v2570_v18  ;;  %4848 = vmatmul.mubr.msk.f32.vlgmr.msra.gmra.mxu0 %vm255_vm4, %v2570_v18 }
0x1e47   :  { %4851 = vmatpush3.msra.mxu1 %v6124_v23  ;;  %4862 = vmatpush3.msra.mxu0 %v6126_v40 }
0x1e48   :  { %4852 = vmatprep.subr.mxu1 %v5471_v0  ;;  %4863 = vmatprep.subr.mxu0 %v5471_v0 }
0x1e49   :  { %4853 = vmatpush3.msra.mxu1 %v6128_v49  ;;  %4864 = vmatpush3.msra.mxu0 %v6132_v2 }
0x1e4a   :  { %4854 = vmatprep.subr.mxu1 %v5471_v0  ;;  %4865 = vmatprep.subr.mxu0 %v5471_v0 }
0x1e4b   :  { %4855 = vmatpush3.msra.mxu1 %v6136_v32  ;;  %4866 = vmatpush3.msra.mxu0 %v6138_v4 }
0x1e4c   :  { %4856 = vmatprep.subr.mxu1 %v5471_v0  ;;  %4867 = vmatprep.subr.mxu0 %v5471_v0 }
0x1e4d   :  { %4868 = vmatpush3.msra.mxu0 %v6146_v34  ;;  %4869 = vmatprep.mubr.msk.f32.mxu0 %vm5472_vm0, %v5471_v0 }
0x1e4e   :  { %4857 = vmatpush3.msra.mxu1 %v6144_v6  ;;  %4858 = vmatprep.mubr.msk.f32.mxu1 %vm5472_vm0, %v5471_v0 }
0x1e4f   :  { %4872 = vmatprep.subr.mxu1 %v5471_v0  ;;  %4883 = vmatprep.subr.mxu0 %v5471_v0 }
0x1f06   :  { %v2639_v21 = vpop.f32.mrf.mxu1  ;;  %v2736_v22 = vpop.f32.mrf.mxu0 }
0x1f07   :  { %v2640_v19 = vadd.f32 %v6183_v45, %v2639_v21  ;;  %v2737_v62 = vadd.f32 %v6188_v47, %v2736_v22 }
0x1f08   :  { %v4838_v17 = vpop.f32.mrf.mxu1  ;;  %v4849_v63 = vpop.f32.mrf.mxu0 }
0x1f09   :  { %v2650_v24 = vrot.slane %v2640_v19, %v6190_v58  ;;  %5237 = vtanh.f32 %v2737_v62  ;;  %v4300_v30 = vmul.f32 -1.442695, %v2737_v62 }
0x1f0b   :  { %v2651_v25 = vcombine.high %v2650_v24, %v2650_v24  ;;  %v2658_v26 = vrot.slane %v2650_v24, %v6190_v58  ;;  %5239 = vpow2.f32 %v4300_v30 }
0x1f0d   :  { %v2665_v27 = vrot.slane %v2651_v25, %v6190_v58  ;;  %2668 = vst.msk [vmem:[%s6535_s12 + $0x1] sm:$0x1] %vm2471_vm13, %v2658_v26 }
0x1f0f   :  { %2669 = vst.msk [vmem:[%s6535_s12 + $0x11] sm:$0x1] %vm2471_vm13, %v2665_v27 }
0x1f16   :  { %v5238_v28 = vpop.eup %5237 }
0x1f17   :  { %2749 = vrot.lane.b32.xlu1 %v5238_v28, %s5473_s26 }
0x1f18   :  { %v5240_v31 = vpop.eup %5239 }
0x1f19   :  { %v2743_v16 = vadd.f32 1.0, %v5240_v31 }
0x1f1b   :  { %5241 = vrcp.f32 %v2743_v16 }
0x1f28   :  { %v5242_v33 = vpop.eup %5241 }
0x1f29   :  { %v2747_v7 = vmul.f32 %v5242_v33, %v2561_v43 }
0x1f89   :  { %v2750_v35 = vpop.permute.xlu1 %2749 }
0x1f8a   :  { %v2752_v36 = vmul.f32 %v5242_v33, %v2750_v35 }
0x1f8c   :  { %2754 = vrot.lane.b32.xlu0 %v2752_v36, %s5474_s2 }
0x1ffe   :  { %v2755_v29 = vpop.permute.xlu0 %2754 }
0x1fff   :  { %v2757_v20 = vadd.f32 %v2755_v29, %v2747_v7 }
0x2001   :  { %5243 = vtanh.f32 %v2757_v20 }
0x200e   :  { %v5244_v41 = vpop.eup %5243 }
0x200f   :  { %2760 = vrot.lane.b32.xlu1 %v5244_v41, %s5473_s26 }
0x2081   :  { %v2761_v39 = vpop.permute.xlu1 %2760 }
0x2082   :  { %v2763_v8 = vmul.f32 %v5242_v33, %v2761_v39 }
0x2084   :  { %2765 = vrot.lane.b32.xlu0 %v2763_v8, %s5474_s2 }
0x20f6   :  { %v2766_v52 = vpop.permute.xlu0 %2765 }
0x20f7   :  { %4859 = vmatmul.mubr.msk.f32.vlgmr.msra.gmra.mxu1 %vm255_vm4, %v2766_v52  ;;  %4870 = vmatmul.mubr.msk.f32.vlgmr.msra.gmra.mxu0 %vm255_vm4, %v2766_v52 }
0x20f8   :  { %4873 = vmatpush3.msra.mxu1 %v6124_v23  ;;  %4884 = vmatpush3.msra.mxu0 %v6126_v40 }
0x20f9   :  { %4874 = vmatprep.subr.mxu1 %v5471_v0  ;;  %4885 = vmatprep.subr.mxu0 %v5471_v0 }
0x20fa   :  { %4875 = vmatpush3.msra.mxu1 %v6128_v49  ;;  %4886 = vmatpush3.msra.mxu0 %v6132_v2 }
0x20fb   :  { %4876 = vmatprep.subr.mxu1 %v5471_v0  ;;  %4887 = vmatprep.subr.mxu0 %v5471_v0 }
0x20fc   :  { %4877 = vmatpush3.msra.mxu1 %v6136_v32  ;;  %4888 = vmatpush3.msra.mxu0 %v6138_v4 }
0x20fd   :  { %4878 = vmatprep.subr.mxu1 %v5471_v0  ;;  %4889 = vmatprep.subr.mxu0 %v5471_v0 }
0x20fe   :  { %4890 = vmatpush3.msra.mxu0 %v6146_v34  ;;  %4891 = vmatprep.mubr.msk.f32.mxu0 %vm5472_vm0, %v5471_v0 }
0x20ff   :  { %4879 = vmatpush3.msra.mxu1 %v6144_v6  ;;  %4880 = vmatprep.mubr.msk.f32.mxu1 %vm5472_vm0, %v5471_v0 }
0x2100   :  { %4894 = vmatprep.subr.mxu1 %v5471_v0  ;;  %4905 = vmatprep.subr.mxu0 %v5471_v0 }
0x21b7   :  { %v2835_v38 = vpop.f32.mrf.mxu1  ;;  %v2932_v54 = vpop.f32.mrf.mxu0 }
0x21b8   :  { %v2836_v55 = vadd.f32 %v6183_v45, %v2835_v38  ;;  %v2933_v56 = vadd.f32 %v6188_v47, %v2932_v54 }
0x21b9   :  { %v4860_v59 = vpop.f32.mrf.mxu1  ;;  %v4871_v50 = vpop.f32.mrf.mxu0 }
0x21ba   :  { %v2846_v3 = vrot.slane %v2836_v55, %v6190_v58  ;;  %5245 = vtanh.f32 %v2933_v56  ;;  %v4303_v10 = vmul.f32 -1.442695, %v2933_v56 }
0x21bc   :  { %v2847_v37 = vcombine.high %v2846_v3, %v2846_v3  ;;  %v2854_v51 = vrot.slane %v2846_v3, %v6190_v58  ;;  %5247 = vpow2.f32 %v4303_v10 }
0x21be   :  { %v2861_v46 = vrot.slane %v2847_v37, %v6190_v58  ;;  %2864 = vst.msk [vmem:[%s6535_s12 + $0x2] sm:$0x1] %vm2471_vm13, %v2854_v51 }
0x21c0   :  { %2865 = vst.msk [vmem:[%s6535_s12 + $0x12] sm:$0x1] %vm2471_vm13, %v2861_v46 }
0x21c7   :  { %v5246_v9 = vpop.eup %5245 }
0x21c8   :  { %2945 = vrot.lane.b32.xlu1 %v5246_v9, %s5473_s26 }
0x21c9   :  { %v5248_v11 = vpop.eup %5247 }
0x21ca   :  { %v2939_v13 = vadd.f32 1.0, %v5248_v11 }
0x21cc   :  { %5249 = vrcp.f32 %v2939_v13 }
0x21d9   :  { %v5250_v60 = vpop.eup %5249 }
0x21da   :  { %v2943_v1 = vmul.f32 %v5250_v60, %v2757_v20 }
0x223a   :  { %v2946_v61 = vpop.permute.xlu1 %2945 }
0x223b   :  { %v2948_v48 = vmul.f32 %v5250_v60, %v2946_v61 }
0x223d   :  { %2950 = vrot.lane.b32.xlu0 %v2948_v48, %s5474_s2 }
0x22af   :  { %v2951_v57 = vpop.permute.xlu0 %2950 }
0x22b0   :  { %v2953_v5 = vadd.f32 %v2951_v57, %v2943_v1 }
0x22b2   :  { %5251 = vtanh.f32 %v2953_v5 }
0x22bf   :  { %v5252_v53 = vpop.eup %5251 }
0x22c0   :  { %2956 = vrot.lane.b32.xlu1 %v5252_v53, %s5473_s26 }
0x2332   :  { %v2957_v42 = vpop.permute.xlu1 %2956 }
0x2333   :  { %v2959_v14 = vmul.f32 %v5250_v60, %v2957_v42 }
0x2335   :  { %2961 = vrot.lane.b32.xlu0 %v2959_v14, %s5474_s2 }
0x23a7   :  { %v2962_v43 = vpop.permute.xlu0 %2961 }
0x23a8   :  { %4881 = vmatmul.mubr.msk.f32.vlgmr.msra.gmra.mxu1 %vm255_vm4, %v2962_v43  ;;  %4892 = vmatmul.mubr.msk.f32.vlgmr.msra.gmra.mxu0 %vm255_vm4, %v2962_v43 }
0x23a9   :  { %4895 = vmatpush3.msra.mxu1 %v6124_v23  ;;  %4906 = vmatpush3.msra.mxu0 %v6126_v40 }
0x23aa   :  { %4896 = vmatprep.subr.mxu1 %v5471_v0  ;;  %4907 = vmatprep.subr.mxu0 %v5471_v0 }
0x23ab   :  { %4897 = vmatpush3.msra.mxu1 %v6128_v49  ;;  %4908 = vmatpush3.msra.mxu0 %v6132_v2 }
0x23ac   :  { %4898 = vmatprep.subr.mxu1 %v5471_v0  ;;  %4909 = vmatprep.subr.mxu0 %v5471_v0 }
0x23ad   :  { %4899 = vmatpush3.msra.mxu1 %v6136_v32  ;;  %4910 = vmatpush3.msra.mxu0 %v6138_v4 }
0x23ae   :  { %4900 = vmatprep.subr.mxu1 %v5471_v0  ;;  %4911 = vmatprep.subr.mxu0 %v5471_v0 }
0x23af   :  { %4912 = vmatpush3.msra.mxu0 %v6146_v34  ;;  %4913 = vmatprep.mubr.msk.f32.mxu0 %vm5472_vm0, %v5471_v0 }
0x23b0   :  { %4901 = vmatpush3.msra.mxu1 %v6144_v6  ;;  %4902 = vmatprep.mubr.msk.f32.mxu1 %vm5472_vm0, %v5471_v0 }
0x23b1   :  { %4916 = vmatprep.subr.mxu1 %v5471_v0  ;;  %4927 = vmatprep.subr.mxu0 %v5471_v0 }
0x2468   :  { %v3031_v44 = vpop.f32.mrf.mxu1  ;;  %v3128_v12 = vpop.f32.mrf.mxu0 }
0x2469   :  { %v3032_v15 = vadd.f32 %v6183_v45, %v3031_v44  ;;  %v3129_v18 = vadd.f32 %v6188_v47, %v3128_v12 }
0x246a   :  { %v4882_v21 = vpop.f32.mrf.mxu1  ;;  %v4893_v22 = vpop.f32.mrf.mxu0 }
0x246b   :  { %v3042_v19 = vrot.slane %v3032_v15, %v6190_v58  ;;  %5253 = vtanh.f32 %v3129_v18  ;;  %v4306_v25 = vmul.f32 -1.442695, %v3129_v18 }
0x246d   :  { %v3043_v62 = vcombine.high %v3042_v19, %v3042_v19  ;;  %v3050_v17 = vrot.slane %v3042_v19, %v6190_v58  ;;  %5255 = vpow2.f32 %v4306_v25 }
0x246f   :  { %v3057_v63 = vrot.slane %v3043_v62, %v6190_v58  ;;  %3060 = vst.msk [vmem:[%s6535_s12 + $0x3] sm:$0x1] %vm2471_vm13, %v3050_v17 }
0x2471   :  { %3061 = vst.msk [vmem:[%s6535_s12 + $0x13] sm:$0x1] %vm2471_vm13, %v3057_v63 }
0x2478   :  { %v5254_v24 = vpop.eup %5253 }
0x2479   :  { %3141 = vrot.lane.b32.xlu1 %v5254_v24, %s5473_s26 }
0x247a   :  { %v5256_v26 = vpop.eup %5255 }
0x247b   :  { %v3135_v27 = vadd.f32 1.0, %v5256_v26 }
0x247d   :  { %5257 = vrcp.f32 %v3135_v27 }
0x248a   :  { %v5258_v28 = vpop.eup %5257 }
0x248b   :  { %v3139_v16 = vmul.f32 %v5258_v28, %v2953_v5 }
0x24eb   :  { %v3142_v30 = vpop.permute.xlu1 %3141 }
0x24ec   :  { %v3144_v31 = vmul.f32 %v5258_v28, %v3142_v30 }
0x24ee   :  { %3146 = vrot.lane.b32.xlu0 %v3144_v31, %s5474_s2 }
0x2560   :  { %v3147_v33 = vpop.permute.xlu0 %3146 }
0x2561   :  { %v3149_v35 = vadd.f32 %v3147_v33, %v3139_v16 }
0x2563   :  { %5259 = vtanh.f32 %v3149_v35 }
0x2570   :  { %v5260_v36 = vpop.eup %5259 }
0x2571   :  { %3152 = vrot.lane.b32.xlu1 %v5260_v36, %s5473_s26 }
0x25e3   :  { %v3153_v7 = vpop.permute.xlu1 %3152 }
0x25e4   :  { %v3155_v29 = vmul.f32 %v5258_v28, %v3153_v7 }
0x25e6   :  { %3157 = vrot.lane.b32.xlu0 %v3155_v29, %s5474_s2 }
0x2658   :  { %v3158_v20 = vpop.permute.xlu0 %3157 }
0x2659   :  { %4903 = vmatmul.mubr.msk.f32.vlgmr.msra.gmra.mxu1 %vm255_vm4, %v3158_v20  ;;  %4914 = vmatmul.mubr.msk.f32.vlgmr.msra.gmra.mxu0 %vm255_vm4, %v3158_v20 }
0x265a   :  { %4917 = vmatpush3.msra.mxu1 %v6124_v23  ;;  %4928 = vmatpush3.msra.mxu0 %v6126_v40 }
0x265b   :  { %4918 = vmatprep.subr.mxu1 %v5471_v0  ;;  %4929 = vmatprep.subr.mxu0 %v5471_v0 }
0x265c   :  { %4919 = vmatpush3.msra.mxu1 %v6128_v49  ;;  %4930 = vmatpush3.msra.mxu0 %v6132_v2 }
0x265d   :  { %4920 = vmatprep.subr.mxu1 %v5471_v0  ;;  %4931 = vmatprep.subr.mxu0 %v5471_v0 }
0x265e   :  { %4921 = vmatpush3.msra.mxu1 %v6136_v32  ;;  %4932 = vmatpush3.msra.mxu0 %v6138_v4 }
0x265f   :  { %4922 = vmatprep.subr.mxu1 %v5471_v0  ;;  %4933 = vmatprep.subr.mxu0 %v5471_v0 }
0x2660   :  { %4934 = vmatpush3.msra.mxu0 %v6146_v34  ;;  %4935 = vmatprep.mubr.msk.f32.mxu0 %vm5472_vm0, %v5471_v0 }
0x2661   :  { %4923 = vmatpush3.msra.mxu1 %v6144_v6  ;;  %4924 = vmatprep.mubr.msk.f32.mxu1 %vm5472_vm0, %v5471_v0 }
0x2662   :  { %4938 = vmatprep.subr.mxu1 %v5471_v0  ;;  %4949 = vmatprep.subr.mxu0 %v5471_v0 }
0x2719   :  { %v3227_v41 = vpop.f32.mrf.mxu1  ;;  %v3324_v39 = vpop.f32.mrf.mxu0 }
0x271a   :  { %v3228_v8 = vadd.f32 %v6183_v45, %v3227_v41  ;;  %v3325_v52 = vadd.f32 %v6188_v47, %v3324_v39 }
0x271b   :  { %v4904_v38 = vpop.f32.mrf.mxu1  ;;  %v4915_v54 = vpop.f32.mrf.mxu0 }
0x271c   :  { %v3238_v55 = vrot.slane %v3228_v8, %v6190_v58  ;;  %5261 = vtanh.f32 %v3325_v52  ;;  %v4309_v37 = vmul.f32 -1.442695, %v3325_v52 }
0x271e   :  { %v3239_v56 = vcombine.high %v3238_v55, %v3238_v55  ;;  %v3246_v59 = vrot.slane %v3238_v55, %v6190_v58  ;;  %5263 = vpow2.f32 %v4309_v37 }
0x2720   :  { %v3253_v50 = vrot.slane %v3239_v56, %v6190_v58  ;;  %3256 = vst.msk [vmem:[%s6535_s12 + $0x4] sm:$0x1] %vm2471_vm13, %v3246_v59 }
0x2722   :  { %3257 = vst.msk [vmem:[%s6535_s12 + $0x14] sm:$0x1] %vm2471_vm13, %v3253_v50 }
0x2729   :  { %v5262_v3 = vpop.eup %5261 }
0x272a   :  { %3337 = vrot.lane.b32.xlu1 %v5262_v3, %s5473_s26 }
0x272b   :  { %v5264_v51 = vpop.eup %5263 }
0x272c   :  { %v3331_v46 = vadd.f32 1.0, %v5264_v51 }
0x272e   :  { %5265 = vrcp.f32 %v3331_v46 }
0x273b   :  { %v5266_v9 = vpop.eup %5265 }
0x273c   :  { %v3335_v13 = vmul.f32 %v5266_v9, %v3149_v35 }
0x279c   :  { %v3338_v10 = vpop.permute.xlu1 %3337 }
0x279d   :  { %v3340_v11 = vmul.f32 %v5266_v9, %v3338_v10 }
0x279f   :  { %3342 = vrot.lane.b32.xlu0 %v3340_v11, %s5474_s2 }
0x2811   :  { %v3343_v60 = vpop.permute.xlu0 %3342 }
0x2812   :  { %v3345_v61 = vadd.f32 %v3343_v60, %v3335_v13 }
0x2814   :  { %5267 = vtanh.f32 %v3345_v61 }
0x2821   :  { %v5268_v48 = vpop.eup %5267 }
0x2822   :  { %3348 = vrot.lane.b32.xlu1 %v5268_v48, %s5473_s26 }
0x2894   :  { %v3349_v1 = vpop.permute.xlu1 %3348 }
0x2895   :  { %v3351_v57 = vmul.f32 %v5266_v9, %v3349_v1 }
0x2897   :  { %3353 = vrot.lane.b32.xlu0 %v3351_v57, %s5474_s2 }
0x2909   :  { %v3354_v5 = vpop.permute.xlu0 %3353 }
0x290a   :  { %4925 = vmatmul.mubr.msk.f32.vlgmr.msra.gmra.mxu1 %vm255_vm4, %v3354_v5  ;;  %4936 = vmatmul.mubr.msk.f32.vlgmr.msra.gmra.mxu0 %vm255_vm4, %v3354_v5 }
0x290b   :  { %4939 = vmatpush3.msra.mxu1 %v6124_v23  ;;  %4950 = vmatpush3.msra.mxu0 %v6126_v40 }
0x290c   :  { %4940 = vmatprep.subr.mxu1 %v5471_v0  ;;  %4951 = vmatprep.subr.mxu0 %v5471_v0 }
0x290d   :  { %4941 = vmatpush3.msra.mxu1 %v6128_v49  ;;  %4952 = vmatpush3.msra.mxu0 %v6132_v2 }
0x290e   :  { %4942 = vmatprep.subr.mxu1 %v5471_v0  ;;  %4953 = vmatprep.subr.mxu0 %v5471_v0 }
0x290f   :  { %4943 = vmatpush3.msra.mxu1 %v6136_v32  ;;  %4954 = vmatpush3.msra.mxu0 %v6138_v4 }
0x2910   :  { %4944 = vmatprep.subr.mxu1 %v5471_v0  ;;  %4955 = vmatprep.subr.mxu0 %v5471_v0 }
0x2911   :  { %4956 = vmatpush3.msra.mxu0 %v6146_v34  ;;  %4957 = vmatprep.mubr.msk.f32.mxu0 %vm5472_vm0, %v5471_v0 }
0x2912   :  { %4945 = vmatpush3.msra.mxu1 %v6144_v6  ;;  %4946 = vmatprep.mubr.msk.f32.mxu1 %vm5472_vm0, %v5471_v0 }
0x2913   :  { %4960 = vmatprep.subr.mxu1 %v5471_v0  ;;  %4971 = vmatprep.subr.mxu0 %v5471_v0 }
0x29ca   :  { %v3423_v53 = vpop.f32.mrf.mxu1  ;;  %v3520_v42 = vpop.f32.mrf.mxu0 }
0x29cb   :  { %v3424_v14 = vadd.f32 %v6183_v45, %v3423_v53  ;;  %v3521_v43 = vadd.f32 %v6188_v47, %v3520_v42 }
0x29cc   :  { %v4926_v44 = vpop.f32.mrf.mxu1  ;;  %v4937_v12 = vpop.f32.mrf.mxu0 }
0x29cd   :  { %v3434_v15 = vrot.slane %v3424_v14, %v6190_v58  ;;  %5269 = vtanh.f32 %v3521_v43  ;;  %v4312_v62 = vmul.f32 -1.442695, %v3521_v43 }
0x29cf   :  { %v3435_v18 = vcombine.high %v3434_v15, %v3434_v15  ;;  %v3442_v21 = vrot.slane %v3434_v15, %v6190_v58  ;;  %5271 = vpow2.f32 %v4312_v62 }
0x29d1   :  { %v3449_v22 = vrot.slane %v3435_v18, %v6190_v58  ;;  %3452 = vst.msk [vmem:[%s6535_s12 + $0x5] sm:$0x1] %vm2471_vm13, %v3442_v21 }
0x29d3   :  { %3453 = vst.msk [vmem:[%s6535_s12 + $0x15] sm:$0x1] %vm2471_vm13, %v3449_v22 }
0x29da   :  { %v5270_v19 = vpop.eup %5269 }
0x29db   :  { %3533 = vrot.lane.b32.xlu1 %v5270_v19, %s5473_s26 }
0x29dc   :  { %v5272_v17 = vpop.eup %5271 }
0x29dd   :  { %v3527_v63 = vadd.f32 1.0, %v5272_v17 }
0x29df   :  { %5273 = vrcp.f32 %v3527_v63 }
0x29ec   :  { %v5274_v24 = vpop.eup %5273 }
0x29ed   :  { %v3531_v27 = vmul.f32 %v5274_v24, %v3345_v61 }
0x2a4d   :  { %v3534_v25 = vpop.permute.xlu1 %3533 }
0x2a4e   :  { %v3536_v26 = vmul.f32 %v5274_v24, %v3534_v25 }
0x2a50   :  { %3538 = vrot.lane.b32.xlu0 %v3536_v26, %s5474_s2 }
0x2ac2   :  { %v3539_v28 = vpop.permute.xlu0 %3538 }
0x2ac3   :  { %v3541_v30 = vadd.f32 %v3539_v28, %v3531_v27 }
0x2ac5   :  { %5275 = vtanh.f32 %v3541_v30 }
0x2ad2   :  { %v5276_v31 = vpop.eup %5275 }
0x2ad3   :  { %3544 = vrot.lane.b32.xlu1 %v5276_v31, %s5473_s26 }
0x2b45   :  { %v3545_v16 = vpop.permute.xlu1 %3544 }
0x2b46   :  { %v3547_v33 = vmul.f32 %v5274_v24, %v3545_v16 }
0x2b48   :  { %3549 = vrot.lane.b32.xlu0 %v3547_v33, %s5474_s2 }
0x2bba   :  { %v3550_v35 = vpop.permute.xlu0 %3549 }
0x2bbb   :  { %4947 = vmatmul.mubr.msk.f32.vlgmr.msra.gmra.mxu1 %vm255_vm4, %v3550_v35  ;;  %4958 = vmatmul.mubr.msk.f32.vlgmr.msra.gmra.mxu0 %vm255_vm4, %v3550_v35 }
0x2bbc   :  { %4961 = vmatpush3.msra.mxu1 %v6124_v23  ;;  %4972 = vmatpush3.msra.mxu0 %v6126_v40 }
0x2bbd   :  { %4962 = vmatprep.subr.mxu1 %v5471_v0  ;;  %4973 = vmatprep.subr.mxu0 %v5471_v0 }
0x2bbe   :  { %4963 = vmatpush3.msra.mxu1 %v6128_v49  ;;  %4974 = vmatpush3.msra.mxu0 %v6132_v2 }
0x2bbf   :  { %4964 = vmatprep.subr.mxu1 %v5471_v0  ;;  %4975 = vmatprep.subr.mxu0 %v5471_v0 }
0x2bc0   :  { %4965 = vmatpush3.msra.mxu1 %v6136_v32  ;;  %4976 = vmatpush3.msra.mxu0 %v6138_v4 }
0x2bc1   :  { %4966 = vmatprep.subr.mxu1 %v5471_v0  ;;  %4977 = vmatprep.subr.mxu0 %v5471_v0 }
0x2bc2   :  { %4978 = vmatpush3.msra.mxu0 %v6146_v34  ;;  %4979 = vmatprep.mubr.msk.f32.mxu0 %vm5472_vm0, %v5471_v0 }
0x2bc3   :  { %4967 = vmatpush3.msra.mxu1 %v6144_v6  ;;  %4968 = vmatprep.mubr.msk.f32.mxu1 %vm5472_vm0, %v5471_v0 }
0x2bc4   :  { %4982 = vmatprep.subr.mxu1 %v5471_v0  ;;  %4993 = vmatprep.subr.mxu0 %v5471_v0 }
0x2c7b   :  { %v3619_v36 = vpop.f32.mrf.mxu1  ;;  %v3716_v7 = vpop.f32.mrf.mxu0 }
0x2c7c   :  { %v3620_v29 = vadd.f32 %v6183_v45, %v3619_v36  ;;  %v3717_v20 = vadd.f32 %v6188_v47, %v3716_v7 }
0x2c7d   :  { %v4948_v41 = vpop.f32.mrf.mxu1  ;;  %v4959_v39 = vpop.f32.mrf.mxu0 }
0x2c7e   :  { %v3630_v8 = vrot.slane %v3620_v29, %v6190_v58  ;;  %5277 = vtanh.f32 %v3717_v20  ;;  %v4315_v56 = vmul.f32 -1.442695, %v3717_v20 }
0x2c80   :  { %v3631_v52 = vcombine.high %v3630_v8, %v3630_v8  ;;  %v3638_v38 = vrot.slane %v3630_v8, %v6190_v58  ;;  %5279 = vpow2.f32 %v4315_v56 }
0x2c82   :  { %v3645_v54 = vrot.slane %v3631_v52, %v6190_v58  ;;  %3648 = vst.msk [vmem:[%s6535_s12 + $0x6] sm:$0x1] %vm2471_vm13, %v3638_v38 }
0x2c84   :  { %3649 = vst.msk [vmem:[%s6535_s12 + $0x16] sm:$0x1] %vm2471_vm13, %v3645_v54 }
0x2c8b   :  { %v5278_v55 = vpop.eup %5277 }
0x2c8c   :  { %3729 = vrot.lane.b32.xlu1 %v5278_v55, %s5473_s26 }
0x2c8d   :  { %v5280_v59 = vpop.eup %5279 }
0x2c8e   :  { %v3723_v50 = vadd.f32 1.0, %v5280_v59 }
0x2c90   :  { %5281 = vrcp.f32 %v3723_v50 }
0x2c9d   :  { %v5282_v3 = vpop.eup %5281 }
0x2c9e   :  { %v3727_v46 = vmul.f32 %v5282_v3, %v3541_v30 }
0x2cfe   :  { %v3730_v37 = vpop.permute.xlu1 %3729 }
0x2cff   :  { %v3732_v51 = vmul.f32 %v5282_v3, %v3730_v37 }
0x2d01   :  { %3734 = vrot.lane.b32.xlu0 %v3732_v51, %s5474_s2 }
0x2d73   :  { %v3735_v9 = vpop.permute.xlu0 %3734 }
0x2d74   :  { %v3737_v10 = vadd.f32 %v3735_v9, %v3727_v46 }
0x2d76   :  { %5283 = vtanh.f32 %v3737_v10 }
0x2d83   :  { %v5284_v11 = vpop.eup %5283 }
0x2d84   :  { %3740 = vrot.lane.b32.xlu1 %v5284_v11, %s5473_s26 }
0x2df6   :  { %v3741_v13 = vpop.permute.xlu1 %3740 }
0x2df7   :  { %v3743_v60 = vmul.f32 %v5282_v3, %v3741_v13 }
0x2df9   :  { %3745 = vrot.lane.b32.xlu0 %v3743_v60, %s5474_s2 }
0x2e6b   :  { %v3746_v61 = vpop.permute.xlu0 %3745 }
0x2e6c   :  { %4969 = vmatmul.mubr.msk.f32.vlgmr.msra.gmra.mxu1 %vm255_vm4, %v3746_v61  ;;  %4980 = vmatmul.mubr.msk.f32.vlgmr.msra.gmra.mxu0 %vm255_vm4, %v3746_v61 }
0x2e6d   :  { %4983 = vmatpush3.msra.mxu1 %v6124_v23  ;;  %4994 = vmatpush3.msra.mxu0 %v6126_v40 }
0x2e6e   :  { %4984 = vmatprep.subr.mxu1 %v5471_v0  ;;  %4995 = vmatprep.subr.mxu0 %v5471_v0 }
0x2e6f   :  { %4985 = vmatpush3.msra.mxu1 %v6128_v49  ;;  %4996 = vmatpush3.msra.mxu0 %v6132_v2 }
0x2e70   :  { %4986 = vmatprep.subr.mxu1 %v5471_v0  ;;  %4997 = vmatprep.subr.mxu0 %v5471_v0 }
0x2e71   :  { %4987 = vmatpush3.msra.mxu1 %v6136_v32  ;;  %4998 = vmatpush3.msra.mxu0 %v6138_v4 }
0x2e72   :  { %4988 = vmatprep.subr.mxu1 %v5471_v0  ;;  %4999 = vmatprep.subr.mxu0 %v5471_v0 }
0x2e73   :  { %5000 = vmatpush3.msra.mxu0 %v6146_v34  ;;  %5001 = vmatprep.mubr.msk.f32.mxu0 %vm5472_vm0, %v5471_v0 }
0x2e74   :  { %4989 = vmatpush3.msra.mxu1 %v6144_v6  ;;  %4990 = vmatprep.mubr.msk.f32.mxu1 %vm5472_vm0, %v5471_v0 }
0x2e75   :  { %5004 = vmatprep.subr.mxu1 %v5471_v0 }
0x2f2c   :  { %v3815_v40 = vpop.f32.mrf.mxu1  ;;  %v3912_v2 = vpop.f32.mrf.mxu0 }
0x2f2d   :  { %v3816_v4 = vadd.f32 %v6183_v45, %v3815_v40  ;;  %v3913_v48 = vadd.f32 %v6188_v47, %v3912_v2 }
0x2f2e   :  { %v4970_v1 = vpop.f32.mrf.mxu1  ;;  %v4981_v57 = vpop.f32.mrf.mxu0 }
0x2f2f   :  { %v3826_v34 = vrot.slane %v3816_v4, %v6190_v58  ;;  %5285 = vtanh.f32 %v3913_v48  ;;  %v4318_v43 = vmul.f32 -1.442695, %v3913_v48 }
0x2f31   :  { %v3827_v5 = vcombine.high %v3826_v34, %v3826_v34  ;;  %v3834_v53 = vrot.slane %v3826_v34, %v6190_v58  ;;  %5287 = vpow2.f32 %v4318_v43 }
0x2f33   :  { %v3841_v42 = vrot.slane %v3827_v5, %v6190_v58  ;;  %3844 = vst.msk [vmem:[%s6535_s12 + $0x7] sm:$0x1] %vm2471_vm13, %v3834_v53 }
0x2f35   :  { %3845 = vst.msk [vmem:[%s6535_s12 + $0x17] sm:$0x1] %vm2471_vm13, %v3841_v42 }
0x2f3c   :  { %v5286_v14 = vpop.eup %5285 }
0x2f3d   :  { %3925 = vrot.lane.b32.xlu1 %v5286_v14, %s5473_s26 }
0x2f3e   :  { %v5288_v44 = vpop.eup %5287 }
0x2f3f   :  { %v3919_v12 = vadd.f32 1.0, %v5288_v44 }
0x2f41   :  { %5289 = vrcp.f32 %v3919_v12 }
0x2f4e   :  { %v5290_v15 = vpop.eup %5289 }
0x2f4f   :  { %v3923_v22 = vmul.f32 %v5290_v15, %v3737_v10 }
0x2faf   :  { %v3926_v18 = vpop.permute.xlu1 %3925 }
0x2fb0   :  { %v3928_v21 = vmul.f32 %v5290_v15, %v3926_v18 }
0x2fb2   :  { %3930 = vrot.lane.b32.xlu0 %v3928_v21, %s5474_s2 }
0x3024   :  { %v3931_v19 = vpop.permute.xlu0 %3930 }
0x3025   :  { %v3933_v62 = vadd.f32 %v3931_v19, %v3923_v22 }
0x3027   :  { %5291 = vtanh.f32 %v3933_v62 }
0x3034   :  { %v5292_v17 = vpop.eup %5291 }
0x3035   :  { %3936 = vrot.lane.b32.xlu1 %v5292_v17, %s5473_s26 }
0x30a7   :  { %v3937_v63 = vpop.permute.xlu1 %3936 }
0x30a8   :  { %v3939_v24 = vmul.f32 %v5290_v15, %v3937_v63 }
0x30aa   :  { %3941 = vrot.lane.b32.xlu0 %v3939_v24, %s5474_s2 }
0x311c   :  { %v3942_v25 = vpop.permute.xlu0 %3941 }
0x311d   :  { %4991 = vmatmul.mubr.msk.f32.vlgmr.msra.gmra.mxu1 %vm255_vm4, %v3942_v25  ;;  %5002 = vmatmul.mubr.msk.f32.vlgmr.msra.gmra.mxu0 %vm255_vm4, %v3942_v25 }
0x311e   :  { %5005 = vmatpush3.msra.mxu1 %v6124_v23  ;;  %5012 = vmatprep.mubr.msk.f32.mxu1 %vm5472_vm0, %v5471_v0 }
0x311f   :  { %5006 = vmatprep.subr.mxu1 %v5471_v0 }
0x3120   :  { %5007 = vmatpush3.msra.mxu1 %v6128_v49 }
0x3121   :  { %5008 = vmatprep.subr.mxu1 %v5471_v0 }
0x3122   :  { %5009 = vmatpush3.msra.mxu1 %v6136_v32 }
0x3123   :  { %5010 = vmatprep.subr.mxu1 %v5471_v0 }
0x3124   :  { %5011 = vmatpush3.msra.mxu1 %v6144_v6 }
0x31dd   :  { %v4011_v26 = vpop.f32.mrf.mxu1  ;;  %v4108_v27 = vpop.f32.mrf.mxu0 }
0x31de   :  { %v4012_v28 = vadd.f32 %v6183_v45, %v4011_v26  ;;  %v4109_v23 = vadd.f32 %v6188_v47, %v4108_v27 }
0x31df   :  { %v4992_v30 = vpop.f32.mrf.mxu1  ;;  %v5003_v31 = vpop.f32.mrf.mxu0 }
0x31e0   :  { %v4022_v16 = vrot.slane %v4012_v28, %v6190_v58  ;;  %5293 = vtanh.f32 %v4109_v23  ;;  %v4321_v6 = vmul.f32 -1.442695, %v4109_v23 }
0x31e2   :  { %v4023_v49 = vcombine.high %v4022_v16, %v4022_v16  ;;  %v4030_v33 = vrot.slane %v4022_v16, %v6190_v58  ;;  %5295 = vpow2.f32 %v4321_v6 }
0x31e4   :  { %v4037_v32 = vrot.slane %v4023_v49, %v6190_v58  ;;  %4040 = vst.msk [vmem:[%s6535_s12 + $0x8] sm:$0x1] %vm2471_vm13, %v4030_v33 }
0x31e6   :  { %4041 = vst.msk [vmem:[%s6535_s12 + $0x18] sm:$0x1] %vm2471_vm13, %v4037_v32 }
0x31ed   :  { %v5294_v0 = vpop.eup %5293 }
0x31ee   :  { %4121 = vrot.lane.b32.xlu1 %v5294_v0, %s5473_s26 }
0x31ef   :  { %v5296_v47 = vpop.eup %5295 }
0x31f0   :  { %v4115_v35 = vadd.f32 1.0, %v5296_v47 }
0x31f2   :  { %5297 = vrcp.f32 %v4115_v35 }
0x31ff   :  { %v5298_v36 = vpop.eup %5297 }
0x3200   :  { %v4119_v20 = vmul.f32 %v5298_v36, %v3933_v62 }
0x3260   :  { %v4122_v7 = vpop.permute.xlu1 %4121 }
0x3261   :  { %v4124_v29 = vmul.f32 %v5298_v36, %v4122_v7 }
0x3263   :  { %4126 = vrot.lane.b32.xlu0 %v4124_v29, %s5474_s2 }
0x32d5   :  { %v4127_v41 = vpop.permute.xlu0 %4126 }
0x32d6   :  { %v4129_v39 = vadd.f32 %v4127_v41, %v4119_v20 }
0x32d8   :  { %5299 = vtanh.f32 %v4129_v39 }
0x32e5   :  { %v5300_v8 = vpop.eup %5299 }
0x32e6   :  { %4132 = vrot.lane.b32.xlu1 %v5300_v8, %s5473_s26 }
0x3358   :  { %v4133_v52 = vpop.permute.xlu1 %4132 }
0x3359   :  { %v4135_v38 = vmul.f32 %v5298_v36, %v4133_v52 }
0x335b   :  { %4137 = vrot.lane.b32.xlu0 %v4135_v38, %s5474_s2 }
0x33cd   :  { %v4138_v54 = vpop.permute.xlu0 %4137 }
0x33ce   :  { %5013 = vmatmul.mubr.msk.f32.vlgmr.msra.gmra.mxu1 %vm255_vm4, %v4138_v54 }
0x348e   :  { %v4207_v55 = vpop.f32.mrf.mxu1 }
0x348f   :  { %v4208_v56 = vadd.f32 %v6183_v45, %v4207_v55 }
0x3490   :  { %v5014_v59 = vpop.f32.mrf.mxu1 }
0x3491   :  { %v4218_v50 = vrot.slane %v4208_v56, %v6190_v58 }
0x3493   :  { %v4219_v3 = vcombine.high %v4218_v50, %v4218_v50  ;;  %v4226_v37 = vrot.slane %v4218_v50, %v6190_v58 }
0x3495   :  { %v4233_v51 = vrot.slane %v4219_v3, %v6190_v58  ;;  %4236 = vst.msk [vmem:[%s6535_s12 + $0x9] sm:$0x1] %vm2471_vm13, %v4226_v37 }
0x3497   :  { %4237 = vst.msk [vmem:[%s6535_s12 + $0x19] sm:$0x1] %vm2471_vm13, %v4233_v51 }
0x3498   :  { %4242 = vsyncpa [#allocation3], 1 }
0x3499   :  { %4243 = vsyncpa [#allocation5], 1 }
0x349a   :  { %4244 = vsyncpa [#allocation8], 1 }
0x349b   :  { %4245 = vsyncpa [#allocation11], 1 }

</bundles_post_ra>
